<compile_context>
chip_gen: v7x
topology: tpu7x:2x2x1
jax: 0.10.0
libtpu: 0.0.40
codegen_flags: <defaults>
</compile_context>

<pallas_src>
import functools

import numpy as np
import jax
import jax.numpy as jnp
from jax.experimental import pallas as pl
from jax.experimental.pallas import tpu as pltpu

_BN_EPS = 1e-5
_PADW = 8          # left-halo padding of the hidden scratch (sublane/word alignment)


def _round_up(x, m):
    return (x + m - 1) // m * m


def _vmem_bytes(shape, dtype):
    """Pessimistic VMEM footprint of one buffer (lane dim -> 128, sublane -> native tile)."""
    itemsize = np.dtype(dtype).itemsize
    s = [int(d) for d in shape]
    if len(s) >= 1:
        s[-1] = _round_up(s[-1], 128)
    if len(s) >= 2:
        s[-2] = _round_up(s[-2], 8 * max(1, 4 // itemsize))
    n = 1
    for d in s:
        n *= d
    return n * itemsize


# ---------------------------------------------------------------------------
# Fused Pallas kernel: expand 1x1 + DW 3x3 + project 1x1 (+BN/ReLU6/residual)
# ---------------------------------------------------------------------------
def _fused_inverted_residual_kernel(stride, H, W, Ho, Wo, use_expand, use_res, *refs):
    if use_expand:
        (x_ref, ew_ref, eb_ref, dww_ref, dwb_ref, pw_ref, pb_ref,
         o_ref, hid_ref) = refs
    else:
        (x_ref, dww_ref, dwb_ref, pw_ref, pb_ref, o_ref, hid_ref) = refs
        ew_ref = eb_ref = None

    chid = hid_ref.shape[-1]
    wp = hid_ref.shape[1]

    # Re-zero only the 1-px halo ring each step (interior is fully overwritten below).
    zrow = jnp.zeros((1, wp, chid), hid_ref.dtype)
    hid_ref[0:1, :, :] = zrow
    hid_ref[H + 1:H + 2, :, :] = zrow
    zcol = jnp.zeros((H + 2, 1, chid), hid_ref.dtype)
    hid_ref[:, _PADW - 1:_PADW, :] = zcol
    hid_ref[:, _PADW + W:_PADW + W + 1, :] = zcol

    x = x_ref[0]                                     # (H, W, Cin) bf16
    cin = x.shape[-1]

    # 1x1 expand (MXU, bf16 operands / f32 accumulation) + folded-BN bias + ReLU6;
    # write into the halo'd scratch at sublane offset _PADW (aligned interior store).
    if use_expand:
        h = jnp.dot(x.reshape(H * W, cin), ew_ref[...],
                    preferred_element_type=jnp.float32)
        h = jnp.clip(h + eb_ref[...], 0.0, 6.0)
        hid_ref[1:H + 1, _PADW:_PADW + W, :] = (
            h.reshape(H, W, chid).astype(hid_ref.dtype))
    else:
        hid_ref[1:H + 1, _PADW:_PADW + W, :] = x.astype(hid_ref.dtype)

    # Depthwise 3x3 (padding=1), computed DENSE (stride 1): only 3 sublane-shifted
    # slabs are materialized (one per W tap) and reused across the 3 cheap row offsets;
    # 3 independent accumulators expose ILP across the VALU slots.
    wdw = dww_ref[...]                               # (3, 3, Chid) f32, BN folded
    slabs = [hid_ref[:, _PADW - 1 + dw:_PADW - 1 + dw + W, :].astype(jnp.float32)
             for dw in range(3)]                     # each (H+2, W, Chid)
    row_acc = []
    for dh in range(3):
        a = slabs[0][dh:dh + H] * wdw[dh:dh + 1, 0:1, :]
        a = a + slabs[1][dh:dh + H] * wdw[dh:dh + 1, 1:2, :]
        a = a + slabs[2][dh:dh + H] * wdw[dh:dh + 1, 2:3, :]
        row_acc.append(a)
    dense = (row_acc[0] + row_acc[1]) + row_acc[2]   # (H, W, Chid) f32
    hd = jnp.clip(dense + dwb_ref[...], 0.0, 6.0)    # folded-BN bias + ReLU6
    if stride == 2:
        hd = hd[::2, ::2, :]                         # single decimation, not 9 gathers

    # 1x1 project (+ folded-BN bias) and optional residual; single output store.
    ym = jnp.dot(hd.reshape(Ho * Wo, chid).astype(jnp.bfloat16), pw_ref[...],
                 preferred_element_type=jnp.float32)
    ym = ym + pb_ref[...]
    if use_res:
        ym = ym + x.reshape(H * W, cin).astype(jnp.float32)
    o_ref[...] = ym.reshape(1, Ho, Wo, o_ref.shape[-1]).astype(o_ref.dtype)


# ---------------------------------------------------------------------------
# Parameter init (deterministic, synthetic) + BN folding + kernel-ready prep
# ---------------------------------------------------------------------------
def _init_bn(key, c):
    k1, k2, k3, k4 = jax.random.split(key, 4)
    return dict(
        gamma=1.0 + 0.1 * jax.random.normal(k1, (c,), jnp.float32),
        beta=0.1 * jax.random.normal(k2, (c,), jnp.float32),
        mean=0.05 * jax.random.normal(k3, (c,), jnp.float32),
        var=0.5 + jax.random.uniform(k4, (c,), jnp.float32),
    )


def _fold_bn(bn):
    scale = bn["gamma"] / jnp.sqrt(bn["var"] + _BN_EPS)
    bias = bn["beta"] - bn["mean"] * scale
    return scale, bias


def init_inverted_residual(key, inp, oup, expand_ratio):
    hidden = int(round(inp * expand_ratio))
    keys = jax.random.split(key, 6)
    p = {"inp": inp, "oup": oup, "hidden": hidden, "expand_ratio": expand_ratio}
    if expand_ratio != 1:
        # torch Conv2d(inp, hidden, 1) weight (hidden, inp, 1, 1) -> (inp, hidden)
        p["expand_w"] = 0.2 * jax.random.normal(keys[0], (inp, hidden), jnp.float32)
        p["expand_bn"] = _init_bn(keys[1], hidden)
    # torch depthwise Conv2d weight (hidden, 1, 3, 3) -> (3, 3, hidden)
    p["dw_w"] = 0.2 * jax.random.normal(keys[2], (3, 3, hidden), jnp.float32)
    p["dw_bn"] = _init_bn(keys[3], hidden)
    # torch Conv2d(hidden, oup, 1) weight (oup, hidden, 1, 1) -> (hidden, oup)
    p["proj_w"] = 0.2 * jax.random.normal(keys[4], (hidden, oup), jnp.float32)
    p["proj_bn"] = _init_bn(keys[5], oup)
    return p


def prepare_inverted_residual(params):
    """One-time host-side prep: fold BN scales into the conv weights, cast MXU weights
    to bf16.  No HBM-side channel padding — small channel counts stay at their true
    extents (lane padding happens implicitly inside VMEM)."""
    inp, oup, hidden = params["inp"], params["oup"], params["hidden"]
    prep = dict(inp=inp, oup=oup, hidden=hidden, expand_ratio=params["expand_ratio"])
    if params["expand_ratio"] != 1:
        s, b = _fold_bn(params["expand_bn"])
        prep["ew"] = (params["expand_w"] * s[None, :]).astype(jnp.bfloat16)   # (inp, hid)
        prep["eb"] = b.reshape(1, hidden).astype(jnp.float32)
    else:
        assert hidden == inp
    s, b = _fold_bn(params["dw_bn"])
    prep["dw"] = (params["dw_w"] * s[None, None, :]).astype(jnp.float32)      # (3,3,hid)
    prep["db"] = b.reshape(1, 1, hidden).astype(jnp.float32)
    s, b = _fold_bn(params["proj_bn"])
    prep["pw"] = (params["proj_w"] * s[None, :]).astype(jnp.bfloat16)         # (hid, oup)
    prep["pb"] = b.reshape(1, oup).astype(jnp.float32)
    return prep


# ---------------------------------------------------------------------------
# Forward pass
# ---------------------------------------------------------------------------
def inverted_residual_forward_nhwc(x_nhwc, prep, stride):
    """NHWC (N,H,W,Cin) -> NHWC (N,Ho,Wo,Cout) float32.  Use this entry point when
    chaining blocks to skip per-block NCHW<->NHWC boundary transposes."""
    assert stride in (1, 2)
    inp, oup, hidden = prep["inp"], prep["oup"], prep["hidden"]
    use_expand = prep["expand_ratio"] != 1
    use_res = (stride == 1) and (inp == oup)
    n, h, w, cin = x_nhwc.shape
    assert cin == inp
    # TODO(synk): BatchNorm is applied in eval mode (folded running stats);
    # training-mode batch statistics are not modeled.

    x = x_nhwc.astype(jnp.bfloat16)            # halve input DMA traffic
    ho = (h - 1) // stride + 1
    wo = (w - 1) // stride + 1

    inputs = [x]
    in_specs = [pl.BlockSpec((1, h, w, cin), lambda b: (b, 0, 0, 0))]
    if use_expand:
        inputs += [prep["ew"], prep["eb"]]
        in_specs += [pl.BlockSpec(prep["ew"].shape, lambda b: (0, 0)),
                     pl.BlockSpec(prep["eb"].shape, lambda b: (0, 0))]
    inputs += [prep["dw"], prep["db"], prep["pw"], prep["pb"]]
    in_specs += [pl.BlockSpec(prep["dw"].shape, lambda b: (0, 0, 0)),
                 pl.BlockSpec(prep["db"].shape, lambda b: (0, 0, 0)),
                 pl.BlockSpec(prep["pw"].shape, lambda b: (0, 0)),
                 pl.BlockSpec(prep["pb"].shape, lambda b: (0, 0))]
    # TODO(synk): grid-invariant weight blocks could be single-buffered
    # (pipeline_mode=pl.Buffered(1)) to save VMEM on v7x; left default for portability.

    # VMEM budget: double-buffered x/out blocks + weights + halo'd hidden scratch,
    # clamped to the actual device VMEM capacity (v7x has only 64 MiB per TensorCore).
    est = (2 * _vmem_bytes((1, h, w, cin), jnp.bfloat16)
           + 2 * _vmem_bytes((1, ho, wo, oup), jnp.float32)
           + 2 * sum(_vmem_bytes(a.shape, a.dtype) for a in inputs[1:])
           + _vmem_bytes((h + 2, w + 2 * _PADW, hidden), jnp.bfloat16)
           + (4 << 20))
    try:
        cap = int(pltpu.get_tpu_info().vmem_capacity_bytes)
    except Exception:
        cap = 64 << 20                          # v7x-safe fallback
    vmem_limit = int(min(max(est, 32 << 20), cap - (8 << 20)))

    # TODO(synk): for large spatial extents add an H-band grid axis (1-row halo DMA per
    # band) so a row band, not the whole image, is VMEM-resident per pipeline step.
    kernel = functools.partial(_fused_inverted_residual_kernel,
                               stride, h, w, ho, wo, use_expand, use_res)
    y = pl.pallas_call(
        kernel,
        out_shape=jax.ShapeDtypeStruct((n, ho, wo, oup), jnp.float32),
        grid_spec=pltpu.PrefetchScalarGridSpec(
            num_scalar_prefetch=0,
            grid=(n,),
            in_specs=in_specs,
            out_specs=pl.BlockSpec((1, ho, wo, oup), lambda b: (b, 0, 0, 0)),
            scratch_shapes=[pltpu.VMEM((h + 2, w + 2 * _PADW, hidden), jnp.bfloat16)]),
        compiler_params=pltpu.CompilerParams(
            dimension_semantics=("parallel",),
            vmem_limit_bytes=vmem_limit),
    )(*inputs)
    return y


def inverted_residual_forward(x_nchw, prep, stride):
    """NCHW in / NCHW out, matching the PyTorch module interface."""
    x = jnp.transpose(x_nchw, (0, 2, 3, 1))          # NCHW -> NHWC
    y = inverted_residual_forward_nhwc(x, prep, stride)
    return jnp.transpose(y, (0, 3, 1, 2)).astype(x_nchw.dtype)


# ---------------------------------------------------------------------------
# Pure-JAX reference (mirrors the PyTorch module in eval mode) for validation
# ---------------------------------------------------------------------------
def _ref_forward(x_nchw, params, stride):
    def bn(y, bnp):
        s, b = _fold_bn(bnp)
        return y * s[None, :, None, None] + b[None, :, None, None]

    inp, oup, hidden = params["inp"], params["oup"], params["hidden"]
    dn = ("NCHW", "OIHW", "NCHW")
    hi = jax.lax.Precision.HIGHEST
    h = x_nchw
    if params["expand_ratio"] != 1:
        we = jnp.transpose(params["expand_w"], (1, 0))[:, :, None, None]
        h = jax.lax.conv_general_dilated(h, we, (1, 1), "VALID",
                                         dimension_numbers=dn, precision=hi)
        h = jnp.clip(bn(h, params["expand_bn"]), 0.0, 6.0)
    wdw = jnp.transpose(params["dw_w"], (2, 0, 1))[:, None, :, :]
    h = jax.lax.conv_general_dilated(h, wdw, (stride, stride), ((1, 1), (1, 1)),
                                     feature_group_count=hidden,
                                     dimension_numbers=dn, precision=hi)
    h = jnp.clip(bn(h, params["dw_bn"]), 0.0, 6.0)
    wp = jnp.transpose(params["proj_w"], (1, 0))[:, :, None, None]
    h = jax.lax.conv_general_dilated(h, wp, (1, 1), "VALID",
                                     dimension_numbers=dn, precision=hi)
    h = bn(h, params["proj_bn"])
    if stride == 1 and inp == oup:
        h = h + x_nchw
    return h


if __name__ == "__main__":
    key = jax.random.PRNGKey(0)
    kx, kp = jax.random.split(key)

    # Small InvertedResidual: inp=8, oup=8, stride=1, expand_ratio=4 (residual path).
    inp, oup, stride, expand_ratio = 8, 8, 1, 4
    x = jax.random.normal(kx, (2, inp, 16, 16), jnp.float32)
    params = init_inverted_residual(kp, inp, oup, expand_ratio)
    prep = prepare_inverted_residual(params)

    fwd = jax.jit(lambda xx: inverted_residual_forward(xx, prep, stride))
    out = jax.block_until_ready(fwd(x))

    ref = _ref_forward(x, params, stride)
    assert out.shape == ref.shape == (2, oup, 16, 16)
    # Kernel uses bf16 input DMA / bf16 hidden scratch / bf16 MXU operands; reference is
    # f32 @ HIGHEST, so allow bf16-sized absolute AND relative tolerances.
    abs_err = float(jnp.max(jnp.abs(out - ref)))
    rel_err = abs_err / max(float(jnp.max(jnp.abs(ref))), 1.0)
    assert abs_err < 1.3e-1 and rel_err < 5e-2, (abs_err, rel_err)

    print("KERNEL_OK")
</pallas_src>

<mosaic_0001>
module attributes {stable_mosaic.version = 11 : i64} {
  func.func @_fused_inverted_residual_kernel(%arg0: i32, %arg1: memref<1x16x16x8xbf16, #tpu.memory_space<vmem>>, %arg2: memref<8x32xbf16, #tpu.memory_space<vmem>>, %arg3: memref<1x32xf32, #tpu.memory_space<vmem>>, %arg4: memref<3x3x32xf32, #tpu.memory_space<vmem>>, %arg5: memref<1x1x32xf32, #tpu.memory_space<vmem>>, %arg6: memref<32x8xbf16, #tpu.memory_space<vmem>>, %arg7: memref<1x8xf32, #tpu.memory_space<vmem>>, %arg8: memref<1x16x16x8xf32, #tpu.memory_space<vmem>>, %arg9: memref<18x32x32xbf16, #tpu.memory_space<vmem>>) attributes {dimension_semantics = [#tpu.dimension_semantics<parallel>], iteration_bounds = array<i64: 2>, scalar_prefetch = 0 : i64, scratch_operands = 1 : i64, tpu.core_type = #tpu.core_type<tc>, window_params = [{transform_indices = @transform_0, window_bounds = array<i64: 1, 16, 16, 8>}, {pipeline_mode = #tpu.pipeline_mode<synchronous>, transform_indices = @transform_1, window_bounds = array<i64: 8, 32>}, {pipeline_mode = #tpu.pipeline_mode<synchronous>, transform_indices = @transform_2, window_bounds = array<i64: 1, 32>}, {pipeline_mode = #tpu.pipeline_mode<synchronous>, transform_indices = @transform_3, window_bounds = array<i64: 3, 3, 32>}, {pipeline_mode = #tpu.pipeline_mode<synchronous>, transform_indices = @transform_4, window_bounds = array<i64: 1, 1, 32>}, {pipeline_mode = #tpu.pipeline_mode<synchronous>, transform_indices = @transform_5, window_bounds = array<i64: 32, 8>}, {pipeline_mode = #tpu.pipeline_mode<synchronous>, transform_indices = @transform_6, window_bounds = array<i64: 1, 8>}, {transform_indices = @transform_7, window_bounds = array<i64: 1, 16, 16, 8>}]} {
    %cst = arith.constant 0.000000e+00 : bf16
    %0 = vector.broadcast %cst : bf16 to vector<1x32x32xbf16>
    %c0 = arith.constant 0 : index
    %c0_0 = arith.constant 0 : index
    %c0_1 = arith.constant 0 : index
    %1 = vector.load %arg9[%c0, %c0_0, %c0_1] : memref<18x32x32xbf16, #tpu.memory_space<vmem>>, vector<1x32x32xbf16>
    tpu.vector_store %arg9[%c0, %c0_0, %c0_1], %0 {strides = array<i32>} : memref<18x32x32xbf16, #tpu.memory_space<vmem>>, vector<1x32x32xbf16>,
    %c17 = arith.constant 17 : index
    %c0_2 = arith.constant 0 : index
    %c0_3 = arith.constant 0 : index
    %2 = vector.load %arg9[%c17, %c0_2, %c0_3] : memref<18x32x32xbf16, #tpu.memory_space<vmem>>, vector<1x32x32xbf16>
    tpu.vector_store %arg9[%c17, %c0_2, %c0_3], %0 {strides = array<i32>} : memref<18x32x32xbf16, #tpu.memory_space<vmem>>, vector<1x32x32xbf16>,
    %cst_4 = arith.constant 0.000000e+00 : bf16
    %3 = vector.broadcast %cst_4 : bf16 to vector<18x1x32xbf16>
    %c0_5 = arith.constant 0 : index
    %c7 = arith.constant 7 : index
    %c0_6 = arith.constant 0 : index
    %4 = vector.load %arg9[%c0_5, %c7, %c0_6] : memref<18x32x32xbf16, #tpu.memory_space<vmem>>, vector<18x1x32xbf16>
    tpu.vector_store %arg9[%c0_5, %c7, %c0_6], %3 {strides = array<i32>} : memref<18x32x32xbf16, #tpu.memory_space<vmem>>, vector<18x1x32xbf16>,
    %c0_7 = arith.constant 0 : index
    %c24 = arith.constant 24 : index
    %c0_8 = arith.constant 0 : index
    %5 = vector.load %arg9[%c0_7, %c24, %c0_8] : memref<18x32x32xbf16, #tpu.memory_space<vmem>>, vector<18x1x32xbf16>
    tpu.vector_store %arg9[%c0_7, %c24, %c0_8], %3 {strides = array<i32>} : memref<18x32x32xbf16, #tpu.memory_space<vmem>>, vector<18x1x32xbf16>,
    %c0_9 = arith.constant 0 : index
    %c0_10 = arith.constant 0 : index
    %c0_11 = arith.constant 0 : index
    %c0_12 = arith.constant 0 : index
    %6 = vector.load %arg1[%c0_9, %c0_10, %c0_11, %c0_12] : memref<1x16x16x8xbf16, #tpu.memory_space<vmem>>, vector<1x16x16x8xbf16>
    %7 = vector.shape_cast %6 : vector<1x16x16x8xbf16> to vector<16x16x8xbf16>
    %8 = vector.shape_cast %7 : vector<16x16x8xbf16> to vector<256x8xbf16>
    %c0_13 = arith.constant 0 : index
    %c0_14 = arith.constant 0 : index
    %9 = vector.load %arg2[%c0_13, %c0_14] : memref<8x32xbf16, #tpu.memory_space<vmem>>, vector<8x32xbf16>
    %cst_15 = arith.constant dense<0.000000e+00> : vector<256x32xf32>
    %10 = tpu.matmul %8, %9, %cst_15 {dimension_numbers = #tpu.dot_dimension_numbers<[1], [0], [0], [1], [0, 0, 1, 1], [], []>} : vector<256x8xbf16>, vector<8x32xbf16>, vector<256x32xf32> -> vector<256x32xf32>
    %c0_16 = arith.constant 0 : index
    %c0_17 = arith.constant 0 : index
    %11 = vector.load %arg3[%c0_16, %c0_17] : memref<1x32xf32, #tpu.memory_space<vmem>>, vector<1x32xf32>
    %12 = vector.broadcast %11 : vector<1x32xf32> to vector<256x32xf32>
    %13 = arith.addf %10, %12 : vector<256x32xf32>
    %cst_18 = arith.constant 0.000000e+00 : f32
    %cst_19 = arith.constant 6.000000e+00 : f32
    %14 = vector.broadcast %cst_18 : f32 to vector<256x32xf32>
    %15 = arith.maximumf %14, %13 : vector<256x32xf32>
    %16 = vector.broadcast %cst_19 : f32 to vector<256x32xf32>
    %17 = arith.minimumf %16, %15 : vector<256x32xf32>
    %18 = vector.shape_cast %17 : vector<256x32xf32> to vector<16x16x32xf32>
    %19 = arith.truncf %18 : vector<16x16x32xf32> to vector<16x16x32xbf16>
    %c1 = arith.constant 1 : index
    %c8 = arith.constant 8 : index
    %c0_20 = arith.constant 0 : index
    %20 = vector.load %arg9[%c1, %c8, %c0_20] : memref<18x32x32xbf16, #tpu.memory_space<vmem>>, vector<16x16x32xbf16>
    tpu.vector_store %arg9[%c1, %c8, %c0_20], %19 {strides = array<i32>} : memref<18x32x32xbf16, #tpu.memory_space<vmem>>, vector<16x16x32xbf16>,
    %c0_21 = arith.constant 0 : index
    %c0_22 = arith.constant 0 : index
    %c0_23 = arith.constant 0 : index
    %21 = vector.load %arg4[%c0_21, %c0_22, %c0_23] : memref<3x3x32xf32, #tpu.memory_space<vmem>>, vector<3x3x32xf32>
    %c0_24 = arith.constant 0 : index
    %c7_25 = arith.constant 7 : index
    %c0_26 = arith.constant 0 : index
    %22 = vector.load %arg9[%c0_24, %c7_25, %c0_26] : memref<18x32x32xbf16, #tpu.memory_space<vmem>>, vector<18x16x32xbf16>
    %23 = arith.extf %22 : vector<18x16x32xbf16> to vector<18x16x32xf32>
    %c0_27 = arith.constant 0 : index
    %c8_28 = arith.constant 8 : index
    %c0_29 = arith.constant 0 : index
    %24 = vector.load %arg9[%c0_27, %c8_28, %c0_29] : memref<18x32x32xbf16, #tpu.memory_space<vmem>>, vector<18x16x32xbf16>
    %25 = arith.extf %24 : vector<18x16x32xbf16> to vector<18x16x32xf32>
    %c0_30 = arith.constant 0 : index
    %c9 = arith.constant 9 : index
    %c0_31 = arith.constant 0 : index
    %26 = vector.load %arg9[%c0_30, %c9, %c0_31] : memref<18x32x32xbf16, #tpu.memory_space<vmem>>, vector<18x16x32xbf16>
    %27 = arith.extf %26 : vector<18x16x32xbf16> to vector<18x16x32xf32>
    %28 = vector.extract_strided_slice %23 {offsets = [0, 0, 0], sizes = [16, 16, 32], strides = [1, 1, 1]} : vector<18x16x32xf32> to vector<16x16x32xf32>
    %29 = vector.extract_strided_slice %21 {offsets = [0, 0, 0], sizes = [1, 1, 32], strides = [1, 1, 1]} : vector<3x3x32xf32> to vector<1x1x32xf32>
    %30 = vector.broadcast %29 : vector<1x1x32xf32> to vector<16x16x32xf32>
    %31 = arith.mulf %28, %30 : vector<16x16x32xf32>
    %32 = vector.extract_strided_slice %25 {offsets = [0, 0, 0], sizes = [16, 16, 32], strides = [1, 1, 1]} : vector<18x16x32xf32> to vector<16x16x32xf32>
    %33 = vector.extract_strided_slice %21 {offsets = [0, 1, 0], sizes = [1, 1, 32], strides = [1, 1, 1]} : vector<3x3x32xf32> to vector<1x1x32xf32>
    %34 = vector.broadcast %33 : vector<1x1x32xf32> to vector<16x16x32xf32>
    %35 = arith.mulf %32, %34 : vector<16x16x32xf32>
    %36 = arith.addf %31, %35 : vector<16x16x32xf32>
    %37 = vector.extract_strided_slice %27 {offsets = [0, 0, 0], sizes = [16, 16, 32], strides = [1, 1, 1]} : vector<18x16x32xf32> to vector<16x16x32xf32>
    %38 = vector.extract_strided_slice %21 {offsets = [0, 2, 0], sizes = [1, 1, 32], strides = [1, 1, 1]} : vector<3x3x32xf32> to vector<1x1x32xf32>
    %39 = vector.broadcast %38 : vector<1x1x32xf32> to vector<16x16x32xf32>
    %40 = arith.mulf %37, %39 : vector<16x16x32xf32>
    %41 = arith.addf %36, %40 : vector<16x16x32xf32>
    %42 = vector.extract_strided_slice %23 {offsets = [1, 0, 0], sizes = [16, 16, 32], strides = [1, 1, 1]} : vector<18x16x32xf32> to vector<16x16x32xf32>
    %43 = vector.extract_strided_slice %21 {offsets = [1, 0, 0], sizes = [1, 1, 32], strides = [1, 1, 1]} : vector<3x3x32xf32> to vector<1x1x32xf32>
    %44 = vector.broadcast %43 : vector<1x1x32xf32> to vector<16x16x32xf32>
    %45 = arith.mulf %42, %44 : vector<16x16x32xf32>
    %46 = vector.extract_strided_slice %25 {offsets = [1, 0, 0], sizes = [16, 16, 32], strides = [1, 1, 1]} : vector<18x16x32xf32> to vector<16x16x32xf32>
    %47 = vector.extract_strided_slice %21 {offsets = [1, 1, 0], sizes = [1, 1, 32], strides = [1, 1, 1]} : vector<3x3x32xf32> to vector<1x1x32xf32>
    %48 = vector.broadcast %47 : vector<1x1x32xf32> to vector<16x16x32xf32>
    %49 = arith.mulf %46, %48 : vector<16x16x32xf32>
    %50 = arith.addf %45, %49 : vector<16x16x32xf32>
    %51 = vector.extract_strided_slice %27 {offsets = [1, 0, 0], sizes = [16, 16, 32], strides = [1, 1, 1]} : vector<18x16x32xf32> to vector<16x16x32xf32>
    %52 = vector.extract_strided_slice %21 {offsets = [1, 2, 0], sizes = [1, 1, 32], strides = [1, 1, 1]} : vector<3x3x32xf32> to vector<1x1x32xf32>
    %53 = vector.broadcast %52 : vector<1x1x32xf32> to vector<16x16x32xf32>
    %54 = arith.mulf %51, %53 : vector<16x16x32xf32>
    %55 = arith.addf %50, %54 : vector<16x16x32xf32>
    %56 = vector.extract_strided_slice %23 {offsets = [2, 0, 0], sizes = [16, 16, 32], strides = [1, 1, 1]} : vector<18x16x32xf32> to vector<16x16x32xf32>
    %57 = vector.extract_strided_slice %21 {offsets = [2, 0, 0], sizes = [1, 1, 32], strides = [1, 1, 1]} : vector<3x3x32xf32> to vector<1x1x32xf32>
    %58 = vector.broadcast %57 : vector<1x1x32xf32> to vector<16x16x32xf32>
    %59 = arith.mulf %56, %58 : vector<16x16x32xf32>
    %60 = vector.extract_strided_slice %25 {offsets = [2, 0, 0], sizes = [16, 16, 32], strides = [1, 1, 1]} : vector<18x16x32xf32> to vector<16x16x32xf32>
    %61 = vector.extract_strided_slice %21 {offsets = [2, 1, 0], sizes = [1, 1, 32], strides = [1, 1, 1]} : vector<3x3x32xf32> to vector<1x1x32xf32>
    %62 = vector.broadcast %61 : vector<1x1x32xf32> to vector<16x16x32xf32>
    %63 = arith.mulf %60, %62 : vector<16x16x32xf32>
    %64 = arith.addf %59, %63 : vector<16x16x32xf32>
    %65 = vector.extract_strided_slice %27 {offsets = [2, 0, 0], sizes = [16, 16, 32], strides = [1, 1, 1]} : vector<18x16x32xf32> to vector<16x16x32xf32>
    %66 = vector.extract_strided_slice %21 {offsets = [2, 2, 0], sizes = [1, 1, 32], strides = [1, 1, 1]} : vector<3x3x32xf32> to vector<1x1x32xf32>
    %67 = vector.broadcast %66 : vector<1x1x32xf32> to vector<16x16x32xf32>
    %68 = arith.mulf %65, %67 : vector<16x16x32xf32>
    %69 = arith.addf %64, %68 : vector<16x16x32xf32>
    %70 = arith.addf %41, %55 : vector<16x16x32xf32>
    %71 = arith.addf %70, %69 : vector<16x16x32xf32>
    %c0_32 = arith.constant 0 : index
    %c0_33 = arith.constant 0 : index
    %c0_34 = arith.constant 0 : index
    %72 = vector.load %arg5[%c0_32, %c0_33, %c0_34] : memref<1x1x32xf32, #tpu.memory_space<vmem>>, vector<1x1x32xf32>
    %73 = vector.broadcast %72 : vector<1x1x32xf32> to vector<16x16x32xf32>
    %74 = arith.addf %71, %73 : vector<16x16x32xf32>
    %cst_35 = arith.constant 0.000000e+00 : f32
    %cst_36 = arith.constant 6.000000e+00 : f32
    %75 = vector.broadcast %cst_35 : f32 to vector<16x16x32xf32>
    %76 = arith.maximumf %75, %74 : vector<16x16x32xf32>
    %77 = vector.broadcast %cst_36 : f32 to vector<16x16x32xf32>
    %78 = arith.minimumf %77, %76 : vector<16x16x32xf32>
    %79 = vector.shape_cast %78 : vector<16x16x32xf32> to vector<256x32xf32>
    %80 = arith.truncf %79 : vector<256x32xf32> to vector<256x32xbf16>
    %c0_37 = arith.constant 0 : index
    %c0_38 = arith.constant 0 : index
    %81 = vector.load %arg6[%c0_37, %c0_38] : memref<32x8xbf16, #tpu.memory_space<vmem>>, vector<32x8xbf16>
    %cst_39 = arith.constant dense<0.000000e+00> : vector<256x8xf32>
    %82 = tpu.matmul %80, %81, %cst_39 {dimension_numbers = #tpu.dot_dimension_numbers<[1], [0], [0], [1], [0, 0, 1, 1], [], []>} : vector<256x32xbf16>, vector<32x8xbf16>, vector<256x8xf32> -> vector<256x8xf32>
    %c0_40 = arith.constant 0 : index
    %c0_41 = arith.constant 0 : index
    %83 = vector.load %arg7[%c0_40, %c0_41] : memref<1x8xf32, #tpu.memory_space<vmem>>, vector<1x8xf32>
    %84 = vector.broadcast %83 : vector<1x8xf32> to vector<256x8xf32>
    %85 = arith.addf %82, %84 : vector<256x8xf32>
    %86 = vector.shape_cast %7 : vector<16x16x8xbf16> to vector<256x8xbf16>
    %87 = arith.extf %86 : vector<256x8xbf16> to vector<256x8xf32>
    %88 = arith.addf %85, %87 : vector<256x8xf32>
    %89 = vector.shape_cast %88 : vector<256x8xf32> to vector<1x16x16x8xf32>
    %c0_42 = arith.constant 0 : index
    %c0_43 = arith.constant 0 : index
    %c0_44 = arith.constant 0 : index
    %c0_45 = arith.constant 0 : index
    %90 = vector.load %arg8[%c0_42, %c0_43, %c0_44, %c0_45] : memref<1x16x16x8xf32, #tpu.memory_space<vmem>>, vector<1x16x16x8xf32>
    tpu.vector_store %arg8[%c0_42, %c0_43, %c0_44, %c0_45], %89 {strides = array<i32>} : memref<1x16x16x8xf32, #tpu.memory_space<vmem>>, vector<1x16x16x8xf32>,
    return
  }
  func.func @transform_0(%arg0: i32) -> (i32, i32, i32, i32) {
    %c0_i32 = arith.constant 0 : i32
    %c0_i32_0 = arith.constant 0 : i32
    %c0_i32_1 = arith.constant 0 : i32
    %c0_i32_2 = arith.constant 0 : i32
    return %arg0, %c0_i32, %c0_i32_0, %c0_i32_1 : i32, i32, i32, i32
  }
  func.func @transform_1(%arg0: i32) -> (i32, i32) {
    %c0_i32 = arith.constant 0 : i32
    %c0_i32_0 = arith.constant 0 : i32
    %c0_i32_1 = arith.constant 0 : i32
    return %c0_i32, %c0_i32_0 : i32, i32
  }
  func.func @transform_2(%arg0: i32) -> (i32, i32) {
    %c0_i32 = arith.constant 0 : i32
    %c0_i32_0 = arith.constant 0 : i32
    %c0_i32_1 = arith.constant 0 : i32
    return %c0_i32, %c0_i32_0 : i32, i32
  }
  func.func @transform_3(%arg0: i32) -> (i32, i32, i32) {
    %c0_i32 = arith.constant 0 : i32
    %c0_i32_0 = arith.constant 0 : i32
    %c0_i32_1 = arith.constant 0 : i32
    %c0_i32_2 = arith.constant 0 : i32
    return %c0_i32, %c0_i32_0, %c0_i32_1 : i32, i32, i32
  }
  func.func @transform_4(%arg0: i32) -> (i32, i32, i32) {
    %c0_i32 = arith.constant 0 : i32
    %c0_i32_0 = arith.constant 0 : i32
    %c0_i32_1 = arith.constant 0 : i32
    %c0_i32_2 = arith.constant 0 : i32
    return %c0_i32, %c0_i32_0, %c0_i32_1 : i32, i32, i32
  }
  func.func @transform_5(%arg0: i32) -> (i32, i32) {
    %c0_i32 = arith.constant 0 : i32
    %c0_i32_0 = arith.constant 0 : i32
    %c0_i32_1 = arith.constant 0 : i32
    return %c0_i32, %c0_i32_0 : i32, i32
  }
  func.func @transform_6(%arg0: i32) -> (i32, i32) {
    %c0_i32 = arith.constant 0 : i32
    %c0_i32_0 = arith.constant 0 : i32
    %c0_i32_1 = arith.constant 0 : i32
    return %c0_i32, %c0_i32_0 : i32, i32
  }
  func.func @transform_7(%arg0: i32) -> (i32, i32, i32, i32) {
    %c0_i32 = arith.constant 0 : i32
    %c0_i32_0 = arith.constant 0 : i32
    %c0_i32_1 = arith.constant 0 : i32
    %c0_i32_2 = arith.constant 0 : i32
    return %arg0, %c0_i32, %c0_i32_0, %c0_i32_1 : i32, i32, i32, i32
  }
}

</mosaic_0001>

<bundles_post_ra>
// kernel: _lambda_.1
= control target key start
LH: loop header
LB: loop body
LE: loop exit
PB: predicated region body
PF: predicated region fallthrough
CT: control target
= control target key end

     0   :  { %s4026_s24 = smov 0   ;;  %s5859_s0 = inlined_call_operand.vmem [shape: bf16[2,16,16,8], index: 0, kind: input, shape index: {}]   ;;  %s5860_s1 = inlined_call_operand.vmem [shape: bf16[8,32], index: 1, kind: input, shape index: {}]   ;;  %s5861_s2 = inlined_call_operand.vmem [shape: f32[1,32], index: 2, kind: input, shape index: {}]   ;;  %s5862_s3 = inlined_call_operand.vmem [shape: f32[3,3,32], index: 3, kind: input, shape index: {}]   ;;  %s5863_s4 = inlined_call_operand.vmem [shape: f32[1,1,32], index: 4, kind: input, shape index: {}]   ;;  %s5864_s5 = inlined_call_operand.vmem [shape: bf16[32,8], index: 5, kind: input, shape index: {}]   ;;  %s5865_s6 = inlined_call_operand.vmem [shape: f32[1,8], index: 6, kind: input, shape index: {}]   ;;  %s5866_s7 = inlined_call_operand.vmem [shape: f32[2,16,16,8], index: 7, kind: output, shape index: {}]  }
   0x1 LB: > { %s3744_s25 = sadd.s32 4294967295, %s3983_s24   ;;  %p3748_p0 = scmp.ge.s32.totalorder %s3983_s24, 1  ;;  %s3983_s24 = sphi %s4026_s24, %s17_s24  }
   0x2   : > { %p237_p1 = scmp.lt.s32.totalorder %s3983_s24, 3 }
   0x4   : > { %p238_p2 = pnand %p3748_p0, %p237_p1 }
   0x6   : > { %241 = sbr.rel (%p238_p2) target bundleno = 913 (0x391), region = 48 }
   0xd   : > { %v432_v0 = vld [vmem:[%s5860_s1] sm:$0xf]  ;;  %vm569_vm0 = vcmask 1043456   ;;  %p269_p3 = scmp.lt.s32.totalorder %s3744_s25, 1  ;;  %vm520_vm1 = vcmask 64512   ;;  %vm280_vm2 = vcmask 261120   ;;  %v1315_v49 = vlaneseq }
   0xe   : > { %3915 = vmatprep.subr.msk.bf16.mxu0 %vm569_vm0, %v432_v0  ;;  %v571_v1 = vsel %vm569_vm0, %v432_v0, 0  ;;  %v3985_v18 = vmov 0   ;;  %vm286_vm3 = vcmask 257027   ;;  %vm287_vm4 = vsmask.f32 7950  ;;  %v3941_v33 = vld [vmem:[%s5864_s5] sm:$0xff]  }
   0xf   : > { %3846 = vmatpush3.bf16.msra.mxu0 %v571_v1  ;;  %s5903_s25 = smov (!%p269_p3, %s3744_s25), 1  ;;  %281 = vst.msk [vmem:[#allocation2] sm:$0xff] %vm280_vm2, %v3985_v18  ;;  %282 = vst.msk [vmem:[#allocation2 + $0x8] sm:$0xff] %vm280_vm2, %v3985_v18  ;;  %vm343_vm5 = vcmask 258052   ;;  %vm344_vm6 = vsmask.f32 4352  ;;  %3879 = vmatprep.subr.bf16.mxu1 %v3941_v33 }
  0x10   : > { %s3808_s28 = sshll.u32 %s5903_s25, 7  ;;  %284 = vst.msk [vmem:[#allocation2 + $0x110] sm:$0xff] %vm280_vm2, %v3985_v18  ;;  %285 = vst.msk [vmem:[#allocation2 + $0x118] sm:$0xff] %vm280_vm2, %v3985_v18  ;;  %v295_v20 = vld [vmem:[#allocation2 + $0x20] sm:$0x8]  ;;  %3880 = vmatpush3.bf16.msra.mxu1 %v3941_v33  ;;  %v3942_v42 = vld [vmem:[%s5864_s5 + $0x8] sm:$0xff]  }
  0x11   : > { %s4045_s8 = scalar_lea.vmem %s5859_s0, %s3808_s28  ;;  %vm4086_vm7 = vmand %vm286_vm3, %vm287_vm4  ;;  %v352_v21 = vld [vmem:[#allocation2 + $0x28] sm:$0x10]  ;;  %v292_v22 = vld [vmem:[#allocation2 + $0x10] sm:$0x8]  ;;  %3881 = vmatprep.subr.bf16.mxu1 %v3942_v42  ;;  %v1316_v52 = vshrl.u32 %v1315_v49, 7  ;;  %vm863_vm9 = vcmask 261124  }
  0x12   : > { %v4048_v2 = vld [vmem:[%s4045_s8] sm:$0xff]   ;;  %v402_v3 = vld [vmem:[%s4045_s8 + $0x8] sm:$0xff]   ;;  %v404_v4 = vld [vmem:[%s4045_s8 + $0x10] sm:$0xff]   ;;  %v296_v23 = vsel %vm4086_vm7, 0, %v295_v20  ;;  %v293_v26 = vsel %vm4086_vm7, 0, %v292_v22  ;;  %vm1435_vm10 = vcmask 1046528  }
  0x13   : > { %5874 = vst [vmem:[#allocation3_spill] sm:$0xff] %v4048_v2  ;;  %3847 = vmatprep.mubr.msk.bf16.mxu0 %vm520_vm1, %v4048_v2  ;;  %v406_v5 = vld [vmem:[%s4045_s8 + $0x18] sm:$0xff]   ;;  %v408_v6 = vld [vmem:[%s4045_s8 + $0x20] sm:$0xff]   ;;  %v410_v7 = vld [vmem:[%s4045_s8 + $0x28] sm:$0xff]   ;;  %v4124_v54 = vsub.s32 1, %v1316_v52  ;;  %vm865_vm11 = vcmask 257024  }
  0x14   : > { %3848 = vmatmul.mubr.msk.bf16.vlgmr.msra.gmra.mrb[0].mxu0 %vm520_vm1, %v402_v3  ;;  %v412_v8 = vld [vmem:[%s4045_s8 + $0x30] sm:$0xff]   ;;  %v414_v9 = vld [vmem:[%s4045_s8 + $0x38] sm:$0xff]   ;;  %v416_v10 = vld [vmem:[%s4045_s8 + $0x40] sm:$0xff]   ;;  %297 = vst [vmem:[#allocation2 + $0x20] sm:$0x8] %v296_v23  ;;  %3882 = vmatpush3.bf16.msra.mxu1 %v3942_v42  ;;  %vm1680_vm12 = vcmask 1045504  }
  0x15   : > { %3851 = vmatprep.mubr.msk.bf16.mxu0 %vm520_vm1, %v404_v4  ;;  %v418_v11 = vld [vmem:[%s4045_s8 + $0x48] sm:$0xff]   ;;  %v420_v12 = vld [vmem:[%s4045_s8 + $0x50] sm:$0xff]   ;;  %v422_v13 = vld [vmem:[%s4045_s8 + $0x58] sm:$0xff]   ;;  %294 = vst [vmem:[#allocation2 + $0x10] sm:$0x8] %v293_v26  ;;  %vm3232_vm13 = vcmask 1040384  }
  0x16   : > { %v424_v14 = vld [vmem:[%s4045_s8 + $0x60] sm:$0xff]   ;;  %v426_v15 = vld [vmem:[%s4045_s8 + $0x68] sm:$0xff]   ;;  %v428_v16 = vld [vmem:[%s4045_s8 + $0x70] sm:$0xff]   ;;  %s3809_s9 = sshll.u32 %s5903_s25, 8 }
  0x17   : > { %v430_v17 = vld [vmem:[%s4045_s8 + $0x78] sm:$0xff]   ;;  %vm4092_vm8 = vmand %vm343_vm5, %vm344_vm6  ;;  %v346_v27 = vld [vmem:[#allocation2 + $0x8] sm:$0x10]  ;;  %s5724_s11 = scalar_lea.vmem %s5866_s7, %s3809_s9 }
  0x18   : > { %v349_v25 = vld [vmem:[#allocation2 + $0x18] sm:$0x10]  ;;  %v353_v29 = vsel %vm4092_vm8, 0, %v352_v21  ;;  %v347_v30 = vsel %vm4092_vm8, 0, %v346_v27  ;;  %v289_v31 = vld [vmem:[#allocation2] sm:$0x8] }
  0x19   : > { %v350_v28 = vsel %vm4092_vm8, 0, %v349_v25  ;;  %354 = vst [vmem:[#allocation2 + $0x28] sm:$0x10] %v353_v29  ;;  %348 = vst [vmem:[#allocation2 + $0x8] sm:$0x10] %v347_v30  ;;  %v290_v32 = vsel %vm4086_vm7, 0, %v289_v31 }
  0x1a   : > { %351 = vst [vmem:[#allocation2 + $0x18] sm:$0x10] %v350_v28  ;;  %291 = vst [vmem:[#allocation2] sm:$0x8] %v290_v32  ;;  %v298_v34 = vld [vmem:[#allocation2 + $0x30] sm:$0x8] }
  0x1b   : > { %v355_v35 = vld [vmem:[#allocation2 + $0x38] sm:$0x10]  ;;  %v299_v36 = vsel %vm4086_vm7, 0, %v298_v34  ;;  %v301_v38 = vld [vmem:[#allocation2 + $0x40] sm:$0x8] }
  0x1c   : > { %3852 = vmatmul.mubr.msk.bf16.gmra.mrb[4].mxu0 %vm520_vm1, %v406_v5  ;;  %v356_v37 = vsel %vm4092_vm8, 0, %v355_v35  ;;  %300 = vst [vmem:[#allocation2 + $0x30] sm:$0x8] %v299_v36  ;;  %v358_v39 = vld [vmem:[#allocation2 + $0x48] sm:$0x10]  ;;  %v302_v40 = vsel %vm4086_vm7, 0, %v301_v38 }
  0x1d   : > { %3855 = vmatprep.mubr.msk.bf16.mxu0 %vm520_vm1, %v408_v6  ;;  %357 = vst [vmem:[#allocation2 + $0x38] sm:$0x10] %v356_v37  ;;  %v359_v41 = vsel %vm4092_vm8, 0, %v358_v39  ;;  %303 = vst [vmem:[#allocation2 + $0x40] sm:$0x8] %v302_v40  ;;  %v4143_v6 = vsub.s32 2, %v1316_v52 }
  0x1e   : > { %360 = vst [vmem:[#allocation2 + $0x48] sm:$0x10] %v359_v41  ;;  %v304_v43 = vld [vmem:[#allocation2 + $0x50] sm:$0x8]  ;;  %v361_v44 = vld [vmem:[#allocation2 + $0x58] sm:$0x10] }
  0x1f   : > { %v305_v45 = vsel %vm4086_vm7, 0, %v304_v43  ;;  %v362_v46 = vsel %vm4092_vm8, 0, %v361_v44  ;;  %v901_v47 = vld [vmem:[#allocation2 + $0x8] sm:$0xf]  ;;  %v990_v48 = vld [vmem:[#allocation2] sm:$0xf0] }
  0x20   : > { %306 = vst [vmem:[#allocation2 + $0x50] sm:$0x8] %v305_v45  ;;  %363 = vst [vmem:[#allocation2 + $0x58] sm:$0x10] %v362_v46  ;;  %v1045_v50 = vrot.slane %v990_v48, 4  ;;  %v1046_v51 = vrot.slane %v901_v47, 4  ;;  %v938_v21 = vunpack.c.l.bf16 %v901_v47 }
  0x21   : > { %v1153_v53 = vld [vmem:[#allocation2 + $0x8] sm:$0x1f]  ;;  %v307_v55 = vld [vmem:[#allocation2 + $0x60] sm:$0x8]  ;;  %v897_v61 = vld [vmem:[%s5862_s3] sm:$0x7] }
  0x22   : > { %v364_v56 = vld [vmem:[#allocation2 + $0x68] sm:$0x10]  ;;  %v1047_v57 = vsel %vm569_vm0, %v1045_v50, %v1046_v51  ;;  %v308_v58 = vsel %vm4086_vm7, 0, %v307_v55  ;;  %v1189_v60 = vrot.slane %v1153_v53, 4  ;;  %v4135_v0 = vrot.slane %v897_v61, %v4124_v54  ;;  %v4140_v1 = vld [vmem:[%s5861_s2] ss:$0 sm:$0xff] }
  0x23   : > { %v365_v59 = vsel %vm4092_vm8, 0, %v364_v56  ;;  %309 = vst [vmem:[#allocation2 + $0x60] sm:$0x8] %v308_v58  ;;  %v1117_v62 = vunpack.c.l.bf16 %v1047_v57  ;;  %v1118_v63 = vunpack.c.h.bf16 %v1047_v57  ;;  %v900_v3 = vld [vmem:[#allocation2] sm:$0xf8]  ;;  %v4156_v27 = vrot.slane %v897_v61, %v4143_v6 }
  0x24   : > { %3856 = vmatmul.mubr.msk.bf16.gmra.mrb[8].mxu0 %vm520_vm1, %v410_v7  ;;  %366 = vst [vmem:[#allocation2 + $0x68] sm:$0x10] %v365_v59  ;;  %v1190_v4 = vsel %vm569_vm0, %v1045_v50, %v1189_v60  ;;  %v937_v26 = vunpack.c.h.bf16 %v900_v3  ;;  %v898_v51 = vld [vmem:[%s5862_s3 + $0x4] sm:$0x7] }
  0x25   : > { %3859 = vmatprep.mubr.msk.bf16.mxu0 %vm520_vm1, %v412_v8  ;;  %v1261_v22 = vunpack.c.l.bf16 %v1190_v4 }
  0x27   : > { %v1584_v37 = vmul.f32 %v4156_v27, %v1261_v22  ;;  %v4194_v22 = vrot.slane %v898_v51, %v4143_v6 }
  0x29   : > { %v1681_v59 = vrot.slane %v1584_v37, 2 }
  0x2c   : > { %3860 = vmatmul.mubr.msk.bf16.gmra.mrb[12].mxu0 %vm520_vm1, %v414_v9  ;;  %v4146_v9 = vsub.s32 0, %v1316_v52 }
  0x2d   : > { %3863 = vmatprep.mubr.msk.bf16.mxu0 %vm520_vm1, %v416_v10  ;;  %v1371_v10 = vmul.f32 %v4135_v0, %v1117_v62 }
  0x2e   : > { %v4159_v29 = vrot.slane %v897_v61, %v4146_v9 }
  0x2f   : > { %v1436_v30 = vrot.slane %v1371_v10, 1  ;;  %v899_v10 = vld [vmem:[%s5862_s3 + $0x8] sm:$0x7] }
  0x30   : > { %v1321_v42 = vmul.f32 %v4159_v29, %v938_v21  ;;  %v1320_v46 = vmul.f32 %v4159_v29, %v937_v26  ;;  %v4191_v21 = vrot.slane %v898_v51, %v4124_v54 }
  0x34   : > { %3864 = vmatmul.mubr.msk.bf16.gmra.mrb[16].mxu0 %vm520_vm1, %v418_v11  ;;  %v4150_v11 = vmul.f32 %v4135_v0, %v1118_v63 }
  0x35   : > { %3867 = vmatprep.mubr.msk.bf16.mxu0 %vm520_vm1, %v420_v12 }
  0x36   : > { %v1437_v31 = vrot.slane %v4150_v11, 1 }
  0x38   : > { %v1438_v47 = vsel %vm1435_vm10, %v1436_v30, %v1437_v31 }
  0x39   : > { %v1533_v11 = vadd.f32 %v1438_v47, %v1320_v46 }
  0x3c   : > { %3868 = vmatmul.mubr.msk.bf16.gmra.mrb[20].mxu0 %vm520_vm1, %v422_v13 }
  0x3d   : > { %3871 = vmatprep.mubr.msk.bf16.mxu0 %vm520_vm1, %v424_v14  ;;  %v936_v14 = vunpack.c.l.bf16 %v900_v3 }
  0x3f   : > { %v1319_v41 = vmul.f32 %v4159_v29, %v936_v14 }
  0x44   : > { %3872 = vmatmul.mubr.msk.bf16.gmra.mrb[24].mxu0 %vm520_vm1, %v426_v15  ;;  %v1262_v15 = vunpack.c.h.bf16 %v1190_v4 }
  0x45   : > { %3875 = vmatprep.mubr.msk.bf16.mxu0 %vm520_vm1, %v428_v16  ;;  %v1263_v16 = vunpack.c.l.bf16 %v1189_v60 }
  0x46   : > { %v1585_v33 = vmul.f32 %v4156_v27, %v1262_v15 }
  0x47   : > { %v1586_v34 = vmul.f32 %v4156_v27, %v1263_v16 }
  0x48   : > { %v1682_v52 = vrot.slane %v1585_v33, 2 }
  0x49   : > { %v1684_v53 = vrot.slane %v1586_v34, 2 }
  0x4a   : > { %v1683_v15 = vsel %vm1680_vm12, %v1681_v59, %v1682_v52 }
  0x4b   : > { %v1685_v16 = vsel %vm1680_vm12, %v1682_v52, %v1684_v53  ;;  %v4203_v34 = vadd.f32 %v1683_v15, %v1533_v11 }
  0x4c   : > { %3876 = vmatmul.mubr.msk.bf16.gmra.mrb[28].mxu0 %vm520_vm1, %v430_v17 }
  0xe7   : > { %v3849_v5 = vpop.f32.mrb[0].mxu0 }
  0xe8   : > { %v616_v7 = vadd.f32 %v3849_v5, %v4140_v1  ;;  %v607_v8 = vpop.f32.mrb[1].mxu0  ;;  %v1532_v5 = vadd.f32 %v1436_v30, %v1319_v41  ;;  %v4200_v30 = vrot.slane %v899_v10, %v4146_v9 }
  0xe9   : > { %v608_v12 = vadd.f32 %v4140_v1, %v607_v8  ;;  %v3850_v13 = vpop.f32.mrb[2].mxu0 }
  0xea   : > { %v736_v17 = vmax.f32 %v616_v7, 0.0  ;;  %v619_v18 = vadd.f32 %v3850_v13, %v4140_v1  ;;  %v610_v20 = vpop.f32.mrb[3].mxu0  ;;  %v4181_v7 = vrot.slane %v898_v51, %v4146_v9 }
  0xeb   : > { %v734_v23 = vmax.f32 %v608_v12, 0.0  ;;  %v611_v25 = vadd.f32 %v4140_v1, %v610_v20  ;;  %v1534_v12 = vadd.f32 %v1437_v31, %v1321_v42 }
  0xec   : > { %v737_v28 = vmax.f32 %v619_v18, 0.0  ;;  %v768_v35 = vmin.f32 %v736_v17, 6.0 }
  0xed   : > { %v735_v32 = vmax.f32 %v611_v25, 0.0  ;;  %v766_v38 = vmin.f32 %v734_v23, 6.0 }
  0xee   : > { %v769_v36 = vmin.f32 %v737_v28, 6.0  ;;  %v4197_v28 = vadd.f32 %v1681_v59, %v1532_v5 }
  0xef   : > { %v767_v39 = vmin.f32 %v735_v32, 6.0  ;;  %v3853_v40 = vpop.f32.mrb[4].mxu0 }
  0xf0   : > { %v799_v43 = vpack.c.bf16 %v769_v36, %v768_v35  ;;  %v632_v44 = vadd.f32 %v3853_v40, %v4140_v1  ;;  %v623_v45 = vpop.f32.mrb[5].mxu0  ;;  %v4205_v35 = vadd.f32 %v1685_v16, %v1534_v12  ;;  %v4209_v40 = vrot.slane %v899_v10, %v4143_v6 }
  0xf1   : > { %v798_v48 = vpack.c.bf16 %v767_v39, %v766_v38  ;;  %v624_v49 = vadd.f32 %v4140_v1, %v623_v45  ;;  %v3854_v50 = vpop.f32.mrb[6].mxu0  ;;  %v4213_v45 = vrot.slane %v899_v10, %v4124_v54 }
  0xf2   : > { %v831_v55 = vrot.slane %v799_v43, 4  ;;  %v740_v56 = vmax.f32 %v632_v44, 0.0  ;;  %v635_v57 = vadd.f32 %v3854_v50, %v4140_v1  ;;  %v626_v58 = vpop.f32.mrb[7].mxu0 }
  0xf3   : > { %v830_v61 = vrot.slane %v798_v48, 4  ;;  %v738_v62 = vmax.f32 %v624_v49, 0.0  ;;  %v627_v63 = vadd.f32 %v4140_v1, %v626_v58 }
  0xf4   : > { %867 = vst.msk [vmem:[#allocation2 + $0x20] sm:$0xf0] %vm863_vm9, %v831_v55  ;;  %v741_v4 = vmax.f32 %v635_v57, 0.0  ;;  %v772_v13 = vmin.f32 %v740_v56, 6.0 }
  0xf5   : > { %868 = vst.msk [vmem:[#allocation2 + $0x28] sm:$0xf] %vm865_vm11, %v831_v55  ;;  %866 = vst.msk [vmem:[#allocation2 + $0x18] sm:$0xf] %vm865_vm11, %v830_v61  ;;  %v739_v8 = vmax.f32 %v627_v63, 0.0  ;;  %v770_v17 = vmin.f32 %v738_v62, 6.0 }
  0xf6   : > { %864 = vst.msk [vmem:[#allocation2 + $0x10] sm:$0xf0] %vm863_vm9, %v830_v61  ;;  %v773_v14 = vmin.f32 %v741_v4, 6.0 }
  0xf7   : > { %v771_v18 = vmin.f32 %v739_v8, 6.0  ;;  %v3857_v20 = vpop.f32.mrb[8].mxu0 }
  0xf8   : > { %v801_v23 = vpack.c.bf16 %v773_v14, %v772_v13  ;;  %v648_v25 = vadd.f32 %v3857_v20, %v4140_v1  ;;  %v639_v26 = vpop.f32.mrb[9].mxu0 }
  0xf9   : > { %v800_v31 = vpack.c.bf16 %v771_v18, %v770_v17  ;;  %v640_v32 = vadd.f32 %v4140_v1, %v639_v26  ;;  %v3858_v33 = vpop.f32.mrb[10].mxu0 }
  0xfa   : > { %v833_v36 = vrot.slane %v801_v23, 4  ;;  %v744_v37 = vmax.f32 %v648_v25, 0.0  ;;  %v651_v38 = vadd.f32 %v3858_v33, %v4140_v1  ;;  %v642_v39 = vpop.f32.mrb[11].mxu0 }
  0xfb   : > { %v832_v41 = vrot.slane %v800_v31, 4  ;;  %v742_v42 = vmax.f32 %v640_v32, 0.0  ;;  %v643_v9 = vadd.f32 %v4140_v1, %v642_v39  ;;  %v904_v43 = vld [vmem:[#allocation2 + $0x20] sm:$0xf8] }
  0xfc   : > { %v905_v44 = vld [vmem:[#allocation2 + $0x28] sm:$0xf]  ;;  %871 = vst.msk [vmem:[#allocation2 + $0x40] sm:$0xf0] %vm863_vm9, %v833_v36  ;;  %v776_v46 = vmin.f32 %v744_v37, 6.0  ;;  %v745_v47 = vmax.f32 %v651_v38, 0.0  ;;  %v4221_v6 = vunpack.c.l.bf16 %v904_v43  ;;  %v4223_v50 = vunpack.c.h.bf16 %v904_v43 }
  0xfd   : > { %872 = vst.msk [vmem:[#allocation2 + $0x48] sm:$0xf] %vm865_vm11, %v833_v36  ;;  %v4217_v48 = vld [vmem:[#allocation2 + $0x10] sm:$0xf8]  ;;  %v4219_v49 = vld [vmem:[#allocation2 + $0x18] sm:$0xf]  ;;  %v4230_v59 = vunpack.c.l.bf16 %v905_v44 }
  0xfe   : > { %869 = vst.msk [vmem:[#allocation2 + $0x30] sm:$0xf0] %vm863_vm9, %v832_v41  ;;  %v774_v54 = vmin.f32 %v742_v42, 6.0  ;;  %v743_v51 = vmax.f32 %v643_v9, 0.0  ;;  %v939_v52 = vunpack.c.l.bf16 %v4217_v48  ;;  %v940_v53 = vunpack.c.h.bf16 %v4217_v48  ;;  %v991_v55 = vld [vmem:[#allocation2 + $0x10] sm:$0xf0] }
  0xff   : > { %870 = vst.msk [vmem:[#allocation2 + $0x38] sm:$0xf] %vm865_vm11, %v832_v41  ;;  %v992_v56 = vld [vmem:[#allocation2 + $0x20] sm:$0xf0]  ;;  %v777_v57 = vmin.f32 %v745_v47, 6.0  ;;  %v941_v58 = vunpack.c.l.bf16 %v4219_v49  ;;  %v1048_v61 = vrot.slane %v991_v55, 4 }
 0x100   : > { %v1154_v62 = vld [vmem:[#allocation2 + $0x18] sm:$0x1f]  ;;  %v1155_v63 = vld [vmem:[#allocation2 + $0x28] sm:$0x1f]  ;;  %v775_v4 = vmin.f32 %v743_v51, 6.0  ;;  %v3861_v5 = vpop.f32.mrb[12].mxu0 }
 0x101   : > { %v1049_v8 = vrot.slane %v4219_v49, 4  ;;  %v1051_v10 = vrot.slane %v992_v56, 4  ;;  %v1052_v11 = vrot.slane %v905_v44, 4  ;;  %v803_v12 = vpack.c.bf16 %v777_v57, %v776_v46  ;;  %v655_v14 = vpop.f32.mrb[13].mxu0 }
 0x102   : > { %v664_v13 = vadd.f32 %v3861_v5, %v4140_v1  ;;  %v1191_v15 = vrot.slane %v1154_v62, 4  ;;  %v1193_v16 = vrot.slane %v1155_v63, 4  ;;  %v802_v17 = vpack.c.bf16 %v775_v4, %v774_v54  ;;  %v3862_v20 = vpop.f32.mrb[14].mxu0 }
 0x103   : > { %v656_v18 = vadd.f32 %v4140_v1, %v655_v14  ;;  %v4236_v23 = vsel %vm569_vm0, %v1048_v61, %v1049_v8  ;;  %v1053_v25 = vsel %vm569_vm0, %v1051_v10, %v1052_v11  ;;  %v835_v26 = vrot.slane %v803_v12, 4  ;;  %v658_v33 = vpop.f32.mrb[15].mxu0 }
 0x104   : > { %v748_v31 = vmax.f32 %v664_v13, 0.0  ;;  %v667_v32 = vadd.f32 %v3862_v20, %v4140_v1  ;;  %v1119_v36 = vunpack.c.l.bf16 %v4236_v23  ;;  %v834_v37 = vrot.slane %v802_v17, 4 }
 0x105   : > { %v746_v38 = vmax.f32 %v656_v18, 0.0  ;;  %v659_v39 = vadd.f32 %v4140_v1, %v658_v33  ;;  %v1120_v41 = vunpack.c.h.bf16 %v4236_v23  ;;  %875 = vst.msk [vmem:[#allocation2 + $0x60] sm:$0xf0] %vm863_vm9, %v835_v26  ;;  %v4245_v43 = vunpack.c.l.bf16 %v1053_v25 }
 0x106   : > { %876 = vst.msk [vmem:[#allocation2 + $0x68] sm:$0xf] %vm865_vm11, %v835_v26  ;;  %v780_v42 = vmin.f32 %v748_v31, 6.0  ;;  %v749_v9 = vmax.f32 %v667_v32, 0.0  ;;  %v4247_v44 = vunpack.c.h.bf16 %v1053_v25  ;;  %874 = vst.msk [vmem:[#allocation2 + $0x58] sm:$0xf] %vm865_vm11, %v834_v37  ;;  %v4252_v54 = vsel %vm569_vm0, %v1048_v61, %v1191_v15 }
 0x107   : > { %873 = vst.msk [vmem:[#allocation2 + $0x50] sm:$0xf0] %vm863_vm9, %v834_v37  ;;  %v778_v46 = vmin.f32 %v746_v38, 6.0  ;;  %v747_v47 = vmax.f32 %v659_v39, 0.0  ;;  %v1194_v51 = vsel %vm569_vm0, %v1051_v10, %v1193_v16  ;;  %v1264_v56 = vunpack.c.l.bf16 %v4252_v54  ;;  %v3865_v4 = vpop.f32.mrb[16].mxu0 }
 0x108   : > { %v781_v55 = vmin.f32 %v749_v9, 6.0  ;;  %v1265_v57 = vunpack.c.h.bf16 %v4252_v54  ;;  %v4257_v62 = vunpack.c.l.bf16 %v1191_v15  ;;  %v4259_v5 = vunpack.c.l.bf16 %v1194_v51  ;;  %v671_v13 = vpop.f32.mrb[17].mxu0 }
 0x109   : > { %v779_v63 = vmin.f32 %v747_v47, 6.0  ;;  %v4261_v8 = vunpack.c.h.bf16 %v1194_v51  ;;  %v4263_v11 = vunpack.c.l.bf16 %v1193_v16  ;;  %v680_v61 = vadd.f32 %v3865_v4, %v4140_v1  ;;  %v3866_v18 = vpop.f32.mrb[18].mxu0 }
 0x10a   : > { %v805_v12 = vpack.c.bf16 %v781_v55, %v780_v42  ;;  %v4269_v10 = vmul.f32 %v4159_v29, %v939_v52  ;;  %v4274_v14 = vmul.f32 %v4159_v29, %v940_v53  ;;  %v672_v17 = vadd.f32 %v4140_v1, %v671_v13  ;;  %v674_v32 = vpop.f32.mrb[19].mxu0 }
 0x10b   : > { %v804_v15 = vpack.c.bf16 %v779_v63, %v778_v46  ;;  %v4280_v16 = vmul.f32 %v4159_v29, %v941_v58  ;;  %v4285_v20 = vmul.f32 %v4135_v0, %v1119_v36  ;;  %v752_v26 = vmax.f32 %v680_v61, 0.0 }
 0x10c   : > { %v837_v25 = vrot.slane %v805_v12, 4  ;;  %v683_v31 = vadd.f32 %v3866_v18, %v4140_v1  ;;  %v4291_v33 = vmul.f32 %v4135_v0, %v1120_v41  ;;  %v750_v38 = vmax.f32 %v672_v17, 0.0 }
 0x10d   : > { %v836_v37 = vrot.slane %v804_v15, 4  ;;  %v675_v39 = vadd.f32 %v4140_v1, %v674_v32  ;;  %v784_v9 = vmin.f32 %v752_v26, 6.0  ;;  %v4299_v51 = vmul.f32 %v4156_v27, %v1264_v56 }
 0x10e   : > { %879 = vst.msk [vmem:[#allocation2 + $0x80] sm:$0xf0] %vm863_vm9, %v837_v25  ;;  %v753_v46 = vmax.f32 %v683_v31, 0.0  ;;  %v782_v55 = vmin.f32 %v750_v38, 6.0  ;;  %v4306_v4 = vmul.f32 %v4156_v27, %v1265_v57  ;;  %v4310_v12 = vmul.f32 %v4156_v27, %v4257_v62 }
 0x10f   : > { %880 = vst.msk [vmem:[#allocation2 + $0x88] sm:$0xf] %vm865_vm11, %v837_v25  ;;  %878 = vst.msk [vmem:[#allocation2 + $0x78] sm:$0xf] %vm865_vm11, %v836_v37  ;;  %v751_v63 = vmax.f32 %v675_v39, 0.0  ;;  %v4314_v13 = vmul.f32 %v4156_v27, %v4261_v8  ;;  %v1861_v17 = vmul.f32 %v4181_v7, %v939_v52  ;;  %v3869_v25 = vpop.f32.mrb[20].mxu0  ;;  %v1862_v32 = vmul.f32 %v4181_v7, %v940_v53 }
 0x110   : > { %877 = vst.msk [vmem:[#allocation2 + $0x70] sm:$0xf0] %vm863_vm9, %v836_v37  ;;  %v785_v61 = vmin.f32 %v753_v46, 6.0  ;;  %v696_v38 = vadd.f32 %v3869_v25, %v4140_v1  ;;  %v687_v39 = vpop.f32.mrb[21].mxu0  ;;  %v1863_v46 = vmul.f32 %v4181_v7, %v941_v58  ;;  %v1913_v52 = vmul.f32 %v4191_v21, %v1119_v36 }
 0x111   : > { %v783_v18 = vmin.f32 %v751_v63, 6.0  ;;  %v688_v3 = vadd.f32 %v4140_v1, %v687_v39  ;;  %v3870_v60 = vpop.f32.mrb[22].mxu0  ;;  %v1914_v48 = vmul.f32 %v4191_v21, %v1120_v41  ;;  %v2125_v53 = vmul.f32 %v4194_v22, %v1264_v56 }
 0x112   : > { %v807_v37 = vpack.c.bf16 %v785_v61, %v784_v9  ;;  %v756_v61 = vmax.f32 %v696_v38, 0.0  ;;  %v699_v49 = vadd.f32 %v3870_v60, %v4140_v1  ;;  %v690_v25 = vpop.f32.mrb[23].mxu0  ;;  %v1977_v58 = vrot.slane %v1913_v52, 1 }
 0x113   : > { %v806_v63 = vpack.c.bf16 %v783_v18, %v782_v55  ;;  %v754_v15 = vmax.f32 %v688_v3, 0.0  ;;  %v691_v36 = vadd.f32 %v4140_v1, %v690_v25  ;;  %v1978_v55 = vrot.slane %v1914_v48, 1 }
 0x114   : > { %v839_v9 = vrot.slane %v807_v37, 4  ;;  %v788_v23 = vmin.f32 %v756_v61, 6.0  ;;  %v757_v18 = vmax.f32 %v699_v49, 0.0  ;;  %v2073_v41 = vadd.f32 %v1977_v58, %v1861_v17 }
 0x115   : > { %v838_v31 = vrot.slane %v806_v63, 4  ;;  %v2126_v56 = vmul.f32 %v4194_v22, %v1265_v57  ;;  %v786_v60 = vmin.f32 %v754_v15, 6.0  ;;  %v755_v3 = vmax.f32 %v691_v36, 0.0 }
 0x116   : > { %883 = vst.msk [vmem:[#allocation2 + $0xa0] sm:$0xf0] %vm863_vm9, %v839_v9  ;;  %v1979_v37 = vsel %vm1435_vm10, %v1977_v58, %v1978_v55  ;;  %v2075_v38 = vadd.f32 %v1978_v55, %v1863_v46  ;;  %v789_v39 = vmin.f32 %v757_v18, 6.0  ;;  %v2127_v63 = vmul.f32 %v4194_v22, %v4257_v62 }
 0x117   : > { %884 = vst.msk [vmem:[#allocation2 + $0xa8] sm:$0xf] %vm865_vm11, %v839_v9  ;;  %882 = vst.msk [vmem:[#allocation2 + $0x98] sm:$0xf] %vm865_vm11, %v838_v31  ;;  %v2074_v52 = vadd.f32 %v1979_v37, %v1862_v32  ;;  %v4351_v17 = vmul.f32 %v4194_v22, %v4261_v8  ;;  %v787_v54 = vmin.f32 %v755_v3, 6.0  ;;  %v3873_v57 = vpop.f32.mrb[24].mxu0  ;;  %v2401_v15 = vmul.f32 %v4200_v30, %v4221_v6 }
 0x118   : > { %881 = vst.msk [vmem:[#allocation2 + $0x90] sm:$0xf0] %vm863_vm9, %v838_v31  ;;  %v2221_v48 = vrot.slane %v2125_v53, 2  ;;  %v2222_v9 = vrot.slane %v2126_v56, 2  ;;  %v809_v31 = vpack.c.bf16 %v789_v39, %v788_v23  ;;  %v712_v61 = vadd.f32 %v3873_v57, %v4140_v1  ;;  %v703_v46 = vpop.f32.mrb[25].mxu0 }
 0x119   : > { %v2224_v49 = vrot.slane %v2127_v63, 2  ;;  %v2402_v32 = vmul.f32 %v4200_v30, %v4223_v50  ;;  %v808_v62 = vpack.c.bf16 %v787_v54, %v786_v60  ;;  %v704_v25 = vadd.f32 %v4140_v1, %v703_v46  ;;  %v3874_v58 = vpop.f32.mrb[26].mxu0 }
 0x11a   : > { %v2223_v36 = vsel %vm1680_vm12, %v2221_v48, %v2222_v9  ;;  %v2349_v55 = vadd.f32 %v2221_v48, %v2073_v41  ;;  %v841_v53 = vrot.slane %v809_v31, 4  ;;  %v760_v18 = vmax.f32 %v712_v61, 0.0  ;;  %v706_v3 = vpop.f32.mrb[27].mxu0 }
 0x11b   : > { %v715_v56 = vadd.f32 %v3874_v58, %v4140_v1  ;;  %v2225_v23 = vsel %vm1680_vm12, %v2222_v9, %v2224_v49  ;;  %v840_v37 = vrot.slane %v808_v62, 4  ;;  %v758_v39 = vmax.f32 %v704_v25, 0.0 }
 0x11c   : > { %v707_v63 = vadd.f32 %v4140_v1, %v706_v3  ;;  %v2350_v57 = vadd.f32 %v2223_v36, %v2074_v52  ;;  %887 = vst.msk [vmem:[#allocation2 + $0xc0] sm:$0xf0] %vm863_vm9, %v841_v53  ;;  %v792_v60 = vmin.f32 %v760_v18, 6.0  ;;  %v2351_v46 = vadd.f32 %v2225_v23, %v2075_v38 }
 0x11d   : > { %888 = vst.msk [vmem:[#allocation2 + $0xc8] sm:$0xf] %vm865_vm11, %v841_v53  ;;  %v761_v54 = vmax.f32 %v715_v56, 0.0  ;;  %v2403_v41 = vmul.f32 %v4200_v30, %v4230_v59  ;;  %886 = vst.msk [vmem:[#allocation2 + $0xb8] sm:$0xf] %vm865_vm11, %v840_v37  ;;  %v790_v48 = vmin.f32 %v758_v39, 6.0  ;;  %v2453_v31 = vmul.f32 %v4213_v45, %v4245_v43 }
 0x11e   : > { %885 = vst.msk [vmem:[#allocation2 + $0xb0] sm:$0xf0] %vm863_vm9, %v840_v37  ;;  %v759_v9 = vmax.f32 %v707_v63, 0.0  ;;  %v2454_v52 = vmul.f32 %v4213_v45, %v4247_v44  ;;  %v2665_v49 = vmul.f32 %v4209_v40, %v4259_v5  ;;  %v2666_v38 = vmul.f32 %v4209_v40, %v4261_v8 }
 0x11f   : > { %v793_v61 = vmin.f32 %v761_v54, 6.0  ;;  %v2667_v62 = vmul.f32 %v4209_v40, %v4263_v11  ;;  %v2517_v58 = vrot.slane %v2453_v31, 1  ;;  %v2937_v53 = vadd.f32 %v2349_v55, %v4197_v28  ;;  %v3877_v18 = vpop.f32.mrb[28].mxu0  ;;  %v906_v28 = vld [vmem:[#allocation2 + $0x30] sm:$0xf8] }
 0x120   : > { %v791_v25 = vmin.f32 %v759_v9, 6.0  ;;  %v2518_v36 = vrot.slane %v2454_v52, 1  ;;  %v2761_v3 = vrot.slane %v2665_v49, 2  ;;  %v2762_v23 = vrot.slane %v2666_v38, 2  ;;  %v719_v39 = vpop.f32.mrb[29].mxu0 }
 0x121   : > { %v811_v56 = vpack.c.bf16 %v793_v61, %v792_v60  ;;  %v2764_v37 = vrot.slane %v2667_v62, 2  ;;  %v2613_v26 = vadd.f32 %v2517_v58, %v2401_v15  ;;  %v4381_v8 = vpop.f32.mrb[30].mxu0  ;;  %v907_v55 = vld [vmem:[#allocation2 + $0x38] sm:$0xf]  ;;  %v728_v38 = vadd.f32 %v3877_v18, %v4140_v1 }
 0x122   : > { %v810_v63 = vpack.c.bf16 %v791_v25, %v790_v48  ;;  %v2519_v54 = vsel %vm1435_vm10, %v2517_v58, %v2518_v36  ;;  %v2615_v42 = vadd.f32 %v2518_v36, %v2403_v41  ;;  %v2763_v9 = vsel %vm1680_vm12, %v2761_v3, %v2762_v23  ;;  %v4385_v60 = vpop.f32.mrb[31].mxu0  ;;  %v4394_v41 = vld [vmem:[%s5863_s4] ss:$0 sm:$0xff] }
 0x123   : > { %v843_v47 = vrot.slane %v811_v56, 4  ;;  %v2614_v2 = vadd.f32 %v2519_v54, %v2402_v32  ;;  %v2765_v31 = vsel %vm1680_vm12, %v2762_v23, %v2764_v37  ;;  %v2889_v61 = vadd.f32 %v2761_v3, %v2613_v26  ;;  %v993_v26 = vld [vmem:[#allocation2 + $0x30] sm:$0xf0] }
 0x124   : > { %v842_v52 = vrot.slane %v810_v63, 4  ;;  %v2891_v49 = vadd.f32 %v2765_v31, %v2615_v42  ;;  %v2938_v48 = vadd.f32 %v2350_v57, %v4203_v34  ;;  %v2939_v32 = vadd.f32 %v2351_v46, %v4205_v35  ;;  %v1156_v42 = vld [vmem:[#allocation2 + $0x38] sm:$0x1f] }
 0x125   : > { %891 = vst.msk [vmem:[#allocation2 + $0xe0] sm:$0xf0] %vm863_vm9, %v843_v47  ;;  %v2890_v15 = vadd.f32 %v2763_v9, %v2614_v2  ;;  %v720_v62 = vadd.f32 %v4140_v1, %v719_v39  ;;  %v2985_v34 = vadd.f32 %v2937_v53, %v2889_v61  ;;  %v4400_v2 = vunpack.c.l.bf16 %v906_v28 }
 0x126   : > { %892 = vst.msk [vmem:[#allocation2 + $0xe8] sm:$0xf] %vm865_vm11, %v843_v47  ;;  %890 = vst.msk [vmem:[#allocation2 + $0xd8] sm:$0xf] %vm865_vm11, %v842_v52  ;;  %v4402_v35 = vunpack.c.h.bf16 %v906_v28  ;;  %v4404_v47 = vunpack.c.l.bf16 %v907_v55  ;;  %v2987_v46 = vadd.f32 %v2939_v32, %v2891_v49  ;;  %v764_v25 = vmax.f32 %v728_v38, 0.0 }
 0x127   : > { %889 = vst.msk [vmem:[#allocation2 + $0xd0] sm:$0xf0] %vm863_vm9, %v842_v52  ;;  %v2986_v57 = vadd.f32 %v2938_v48, %v2890_v15  ;;  %v762_v58 = vmax.f32 %v720_v62, 0.0  ;;  %v3040_v36 = vadd.f32 %v4394_v41, %v2985_v34  ;;  %v1054_v18 = vrot.slane %v993_v26, 4 }
 0x128   : > { %v1055_v56 = vrot.slane %v907_v55, 4  ;;  %v1195_v3 = vrot.slane %v1156_v42, 4  ;;  %v3042_v53 = vadd.f32 %v4394_v41, %v2987_v46  ;;  %v4409_v37 = vmin.f32 %v764_v25, 6.0 }
 0x129   : > { %v3041_v23 = vadd.f32 %v4394_v41, %v2986_v57  ;;  %v4411_v39 = vmin.f32 %v762_v58, 6.0  ;;  %v3088_v63 = vmax.f32 %v3040_v36, 0.0  ;;  %v5879_v32 = vrot.slane %v4291_v33, 1 }
 0x12a   : > { %v1056_v54 = vsel %vm569_vm0, %v1054_v18, %v1055_v56  ;;  %v1196_v9 = vsel %vm569_vm0, %v1054_v18, %v1195_v3  ;;  %v4415_v31 = vunpack.c.l.bf16 %v1195_v3  ;;  %v3090_v52 = vmax.f32 %v3042_v53, 0.0 }
 0x12b   : > { %v3089_v28 = vmax.f32 %v3041_v23, 0.0  ;;  %v4417_v61 = vunpack.c.l.bf16 %v1056_v54  ;;  %v4419_v55 = vunpack.c.h.bf16 %v1056_v54  ;;  %v3136_v49 = vmin.f32 %v3088_v63, 6.0 }
 0x12c   : > { %v4421_v48 = vunpack.c.l.bf16 %v1196_v9  ;;  %v4423_v15 = vunpack.c.h.bf16 %v1196_v9  ;;  %v5880_v38 = vrot.slane %v4285_v20, 1  ;;  %v3138_v42 = vmin.f32 %v3090_v52, 6.0 }
 0x12d   : > { %v3137_v26 = vmin.f32 %v3089_v28, 6.0  ;;  %v3233_v25 = vrot.slane %v3136_v49, 7  ;;  %v5882_v58 = vmov %v5879_v32  ;;  %v5883_v18 = vrot.slane %v4306_v4, 2 }
 0x12e   : > { %v1441_v62 = vsel %vm1435_vm10, %v5880_v38, %v5879_v32  ;;  %v5881_v34 = vmov %v5880_v38  ;;  %v1537_v36 = vadd.f32 %v5882_v58, %v4280_v16  ;;  %v5884_v56 = vrot.slane %v4299_v51, 2 }
 0x12f   : > { %v1535_v57 = vadd.f32 %v5881_v34, %v4269_v10  ;;  %v1536_v46 = vadd.f32 %v1441_v62, %v4274_v14  ;;  %v5885_v23 = vrot.slane %v4310_v12, 2  ;;  %v5886_v53 = vmov %v5883_v18 }
 0x130   : > { %v1688_v3 = vsel %vm1680_vm12, %v5884_v56, %v5883_v18  ;;  %v3234_v10 = vrot.slane %v3137_v26, 7  ;;  %v3236_v63 = vrot.slane %v3138_v42, 7  ;;  %v5887_v14 = vmov %v5884_v56 }
 0x131   : > { %v1690_v20 = vsel %vm1680_vm12, %v5886_v53, %v5885_v23  ;;  %v1812_v54 = vadd.f32 %v5887_v14, %v1535_v57  ;;  %v1813_v9 = vadd.f32 %v1688_v3, %v1536_v46  ;;  %v1864_v16 = vmul.f32 %v4181_v7, %v4221_v6 }
 0x132   : > { %v1814_v33 = vadd.f32 %v1690_v20, %v1537_v36  ;;  %v1865_v28 = vmul.f32 %v4181_v7, %v4223_v50  ;;  %v1866_v12 = vmul.f32 %v4181_v7, %v4230_v59  ;;  %v3235_v4 = vsel %vm3232_vm13, %v3233_v25, %v3234_v10 }
 0x133   : > { %v3237_v52 = vsel %vm3232_vm13, %v3234_v10, %v3236_v63  ;;  %v1915_v49 = vmul.f32 %v4191_v21, %v4245_v43  ;;  %v1916_v51 = vmul.f32 %v4191_v21, %v4247_v44  ;;  %v2128_v38 = vmul.f32 %v4194_v22, %v4259_v5 }
 0x134   : > { %v3345_v32 = vpack.c.bf16 %v3237_v52, %v3235_v4  ;;  %v2130_v62 = vmul.f32 %v4194_v22, %v4263_v11  ;;  %v2227_v26 = vrot.slane %v4351_v17, 2  ;;  %v2404_v57 = vmul.f32 %v4200_v30, %v4400_v2 }
 0x135   : > { %v1980_v42 = vrot.slane %v1915_v49, 1  ;;  %v1981_v34 = vrot.slane %v1916_v51, 1  ;;  %v2405_v46 = vmul.f32 %v4200_v30, %v4402_v35  ;;  %v2226_v25 = vrot.slane %v2128_v38, 2 }
 0x136   : > { %3883 = vmatprep.mubr.msk.bf16.mxu1 %vm280_vm2, %v3345_v32  ;;  %v2229_v58 = vrot.slane %v2130_v62, 2  ;;  %v2406_v36 = vmul.f32 %v4200_v30, %v4404_v47  ;;  %v2455_v18 = vmul.f32 %v4213_v45, %v4417_v61  ;;  %v2456_v23 = vmul.f32 %v4213_v45, %v4419_v55 }
 0x137   : > { %v1982_v17 = vsel %vm1435_vm10, %v1980_v42, %v1981_v34  ;;  %v2076_v56 = vadd.f32 %v1980_v42, %v1864_v16  ;;  %v2078_v3 = vadd.f32 %v1981_v34, %v1866_v12  ;;  %v2228_v20 = vsel %vm1680_vm12, %v2226_v25, %v2227_v26  ;;  %v908_v42 = vld [vmem:[#allocation2 + $0x40] sm:$0xf8] }
 0x138   : > { %v2077_v53 = vadd.f32 %v1982_v17, %v1865_v28  ;;  %v2230_v10 = vsel %vm1680_vm12, %v2227_v26, %v2229_v58  ;;  %v2520_v63 = vrot.slane %v2455_v18, 1  ;;  %v2521_v52 = vrot.slane %v2456_v23, 1  ;;  %v909_v23 = vld [vmem:[#allocation2 + $0x48] sm:$0xf] }
 0x139   : > { %v2352_v14 = vadd.f32 %v2226_v25, %v2076_v56  ;;  %v2354_v4 = vadd.f32 %v2230_v10, %v2078_v3  ;;  %v2668_v49 = vmul.f32 %v4209_v40, %v4421_v48  ;;  %v2669_v16 = vmul.f32 %v4209_v40, %v4423_v15 }
 0x13a   : > { %v2353_v51 = vadd.f32 %v2228_v20, %v2077_v53  ;;  %v2616_v32 = vadd.f32 %v2520_v63, %v2404_v57  ;;  %v2670_v12 = vmul.f32 %v4209_v40, %v4415_v31  ;;  %v2522_v28 = vsel %vm1435_vm10, %v2520_v63, %v2521_v52  ;;  %v994_v53 = vld [vmem:[#allocation2 + $0x40] sm:$0xf0] }
 0x13b   : > { %v2618_v38 = vadd.f32 %v2521_v52, %v2406_v36  ;;  %v2766_v62 = vrot.slane %v2668_v49, 2  ;;  %v2940_v26 = vadd.f32 %v2352_v14, %v1812_v54  ;;  %v2617_v34 = vadd.f32 %v2522_v28, %v2405_v46  ;;  %v1157_v14 = vld [vmem:[#allocation2 + $0x48] sm:$0x1f] }
 0x13c   : > { %v2767_v25 = vrot.slane %v2669_v16, 2  ;;  %v2769_v58 = vrot.slane %v2670_v12, 2  ;;  %v2941_v18 = vadd.f32 %v2353_v51, %v1813_v9  ;;  %v2942_v56 = vadd.f32 %v2354_v4, %v1814_v33 }
 0x13d   : > { %v2892_v17 = vadd.f32 %v2766_v62, %v2616_v32  ;;  %v731_v57 = vadd.f32 %v4381_v8, %v4140_v1  ;;  %v723_v3 = vadd.f32 %v4140_v1, %v4385_v60  ;;  %v4493_v54 = vunpack.c.l.bf16 %v908_v42 }
 0x13e   : > { %v2768_v20 = vsel %vm1680_vm12, %v2766_v62, %v2767_v25  ;;  %v2770_v36 = vsel %vm1680_vm12, %v2767_v25, %v2769_v58  ;;  %v4495_v46 = vunpack.c.h.bf16 %v908_v42  ;;  %v4497_v8 = vunpack.c.l.bf16 %v909_v23 }
 0x13f   : > { %v2893_v10 = vadd.f32 %v2768_v20, %v2617_v34  ;;  %v2894_v9 = vadd.f32 %v2770_v36, %v2618_v38  ;;  %v2988_v63 = vadd.f32 %v2940_v26, %v2892_v17  ;;  %v765_v33 = vmax.f32 %v731_v57, 0.0 }
 0x140   : > { %v763_v4 = vmax.f32 %v723_v3, 0.0  ;;  %v1057_v52 = vrot.slane %v994_v53, 4  ;;  %v1058_v1 = vrot.slane %v909_v23, 4  ;;  %v1197_v28 = vrot.slane %v1157_v14, 4 }
 0x141   : > { %v2989_v60 = vadd.f32 %v2941_v18, %v2893_v10  ;;  %v2990_v49 = vadd.f32 %v2942_v56, %v2894_v9  ;;  %v3043_v51 = vadd.f32 %v4394_v41, %v2988_v63  ;;  %v797_v32 = vmin.f32 %v765_v33, 6.0 }
 0x142   : > { %v795_v16 = vmin.f32 %v763_v4, 6.0  ;;  %v1059_v12 = vsel %vm569_vm0, %v1057_v52, %v1058_v1  ;;  %v1325_v38 = vmul.f32 %v4159_v29, %v4221_v6  ;;  %v1198_v17 = vsel %vm569_vm0, %v1057_v52, %v1197_v28 }
 0x143   : > { %v3044_v62 = vadd.f32 %v4394_v41, %v2989_v60  ;;  %v3045_v26 = vadd.f32 %v4394_v41, %v2990_v49  ;;  %v3091_v42 = vmax.f32 %v3043_v51, 0.0  ;;  %v813_v34 = vpack.c.bf16 %v797_v32, %v4409_v37 }
 0x144   : > { %v812_v25 = vpack.c.bf16 %v795_v16, %v4411_v39  ;;  %v4507_v58 = vunpack.c.l.bf16 %v1059_v12  ;;  %v4509_v18 = vunpack.c.h.bf16 %v1059_v12  ;;  %v4512_v53 = vunpack.c.l.bf16 %v1198_v17 }
 0x145   : > { %v3092_v56 = vmax.f32 %v3044_v62, 0.0  ;;  %v3093_v57 = vmax.f32 %v3045_v26, 0.0  ;;  %v3139_v3 = vmin.f32 %v3091_v42, 6.0  ;;  %v845_v23 = vrot.slane %v813_v34, 4 }
 0x146   : > { %v844_v6 = vrot.slane %v812_v25, 4  ;;  %v4514_v20 = vunpack.c.h.bf16 %v1198_v17  ;;  %v4516_v36 = vunpack.c.l.bf16 %v1197_v28  ;;  %v1326_v9 = vmul.f32 %v4159_v29, %v4223_v50 }
 0x147   : > { %v3140_v37 = vmin.f32 %v3092_v56, 6.0  ;;  %v3141_v10 = vmin.f32 %v3093_v57, 6.0  ;;  %v3238_v39 = vrot.slane %v3139_v3, 7  ;;  %895 = vst.msk [vmem:[#allocation2 + $0x100] sm:$0xf0] %vm863_vm9, %v845_v23  ;;  %v1327_v63 = vmul.f32 %v4159_v29, %v4230_v59 }
 0x148   : > { %896 = vst.msk [vmem:[#allocation2 + $0x108] sm:$0xf] %vm865_vm11, %v845_v23  ;;  %894 = vst.msk [vmem:[#allocation2 + $0xf8] sm:$0xf] %vm865_vm11, %v844_v6  ;;  %v1375_v33 = vmul.f32 %v4135_v0, %v4245_v43  ;;  %v1376_v14 = vmul.f32 %v4135_v0, %v4247_v44  ;;  %v1590_v4 = vmul.f32 %v4156_v27, %v4259_v5  ;;  %v1692_v60 = vrot.slane %v4314_v13, 2 }
 0x149   : > { %893 = vst.msk [vmem:[#allocation2 + $0xf0] sm:$0xf0] %vm863_vm9, %v844_v6  ;;  %v3239_v52 = vrot.slane %v3140_v37, 7  ;;  %v3241_v1 = vrot.slane %v3141_v10, 7  ;;  %v1592_v50 = vmul.f32 %v4156_v27, %v4263_v11  ;;  %v1867_v59 = vmul.f32 %v4181_v7, %v4400_v2 }
 0x14a   : > { %v1442_v49 = vrot.slane %v1375_v33, 1  ;;  %v1443_v51 = vrot.slane %v1376_v14, 1  ;;  %v1691_v32 = vrot.slane %v1590_v4, 2  ;;  %v1868_v5 = vmul.f32 %v4181_v7, %v4402_v35 }
 0x14b   : > { %v3240_v43 = vsel %vm3232_vm13, %v3238_v39, %v3239_v52  ;;  %v3242_v44 = vsel %vm3232_vm13, %v3239_v52, %v3241_v1  ;;  %v1694_v16 = vrot.slane %v1592_v50, 2  ;;  %v1869_v34 = vmul.f32 %v4181_v7, %v4404_v47 }
 0x14c   : > { %v3346_v12 = vpack.c.bf16 %v3242_v44, %v3240_v43  ;;  %v1444_v28 = vsel %vm1435_vm10, %v1442_v49, %v1443_v51  ;;  %v1538_v11 = vadd.f32 %v1442_v49, %v1325_v38  ;;  %v1540_v62 = vadd.f32 %v1443_v51, %v1327_v63 }
 0x14d   : > { %v1539_v13 = vadd.f32 %v1444_v28, %v1326_v9  ;;  %v1693_v26 = vsel %vm1680_vm12, %v1691_v32, %v1692_v60  ;;  %v1695_v42 = vsel %vm1680_vm12, %v1692_v60, %v1694_v16  ;;  %v1917_v56 = vmul.f32 %v4191_v21, %v4417_v61 }
 0x14e   : > { %3884 = vmatmul.mubr.msk.bf16.vlgmr.msra.gmra.mrb[0].mxu1 %vm280_vm2, %v3346_v12  ;;  %v1815_v25 = vadd.f32 %v1691_v32, %v1538_v11  ;;  %v1817_v17 = vadd.f32 %v1695_v42, %v1540_v62  ;;  %v1918_v57 = vmul.f32 %v4191_v21, %v4419_v55  ;;  %v2131_v3 = vmul.f32 %v4194_v22, %v4421_v48 }
 0x14f   : > { %v1816_v38 = vadd.f32 %v1693_v26, %v1539_v13  ;;  %v2132_v23 = vmul.f32 %v4194_v22, %v4423_v15  ;;  %v2133_v6 = vmul.f32 %v4194_v22, %v4415_v31  ;;  %v1983_v37 = vrot.slane %v1917_v56, 1  ;;  %v910_v13 = vld [vmem:[#allocation2 + $0x50] sm:$0xf8] }
 0x150   : > { %v1984_v10 = vrot.slane %v1918_v57, 1  ;;  %v2407_v39 = vmul.f32 %v4200_v30, %v4493_v54  ;;  %v2408_v9 = vmul.f32 %v4200_v30, %v4495_v46  ;;  %v2231_v63 = vrot.slane %v2131_v3, 2  ;;  %v911_v57 = vld [vmem:[#allocation2 + $0x58] sm:$0xf] }
 0x151   : > { %v2232_v33 = vrot.slane %v2132_v23, 2  ;;  %v2234_v14 = vrot.slane %v2133_v6, 2  ;;  %v2409_v4 = vmul.f32 %v4200_v30, %v4497_v8  ;;  %v2079_v1 = vadd.f32 %v1983_v37, %v1867_v59 }
 0x152   : > { %v1985_v52 = vsel %vm1435_vm10, %v1983_v37, %v1984_v10  ;;  %v2081_v50 = vadd.f32 %v1984_v10, %v1869_v34  ;;  %v2457_v60 = vmul.f32 %v4213_v45, %v4507_v58  ;;  %v2458_v43 = vmul.f32 %v4213_v45, %v4509_v18  ;;  %v995_v10 = vld [vmem:[#allocation2 + $0x50] sm:$0xf0] }
 0x153   : > { %v2080_v49 = vadd.f32 %v1985_v52, %v1868_v5  ;;  %v2233_v51 = vsel %vm1680_vm12, %v2231_v63, %v2232_v33  ;;  %v2235_v32 = vsel %vm1680_vm12, %v2232_v33, %v2234_v14  ;;  %v2355_v44 = vadd.f32 %v2231_v63, %v2079_v1  ;;  %v1158_v1 = vld [vmem:[#allocation2 + $0x58] sm:$0x1f] }
 0x154   : > { %v2357_v16 = vadd.f32 %v2235_v32, %v2081_v50  ;;  %v2523_v12 = vrot.slane %v2457_v60, 1  ;;  %v2671_v28 = vmul.f32 %v4209_v40, %v4512_v53  ;;  %v2524_v59 = vrot.slane %v2458_v43, 1 }
 0x155   : > { %v2356_v11 = vadd.f32 %v2233_v51, %v2080_v49  ;;  %v2672_v62 = vmul.f32 %v4209_v40, %v4514_v20  ;;  %v2673_v5 = vmul.f32 %v4209_v40, %v4516_v36  ;;  %v2943_v34 = vadd.f32 %v2355_v44, %v1815_v25 }
 0x156   : > { %v2619_v26 = vadd.f32 %v2523_v12, %v2407_v39  ;;  %v2771_v42 = vrot.slane %v2671_v28, 2  ;;  %v2945_v56 = vadd.f32 %v2357_v16, %v1817_v17  ;;  %v2525_v3 = vsel %vm1435_vm10, %v2523_v12, %v2524_v59 }
 0x157   : > { %v2621_v23 = vadd.f32 %v2524_v59, %v2409_v4  ;;  %v2772_v6 = vrot.slane %v2672_v62, 2  ;;  %v2774_v37 = vrot.slane %v2673_v5, 2  ;;  %v2620_v63 = vadd.f32 %v2525_v3, %v2408_v9 }
 0x158   : > { %v2895_v33 = vadd.f32 %v2771_v42, %v2619_v26  ;;  %v2944_v14 = vadd.f32 %v2356_v11, %v1816_v38  ;;  %v4577_v52 = vunpack.c.l.bf16 %v910_v13  ;;  %v4581_v60 = vunpack.c.h.bf16 %v910_v13 }
 0x159   : > { %v2773_v50 = vsel %vm1680_vm12, %v2771_v42, %v2772_v6  ;;  %v2775_v39 = vsel %vm1680_vm12, %v2772_v6, %v2774_v37  ;;  %v4583_v25 = vunpack.c.l.bf16 %v911_v57  ;;  %v1060_v51 = vrot.slane %v995_v10, 4 }
 0x15a   : > { %v2896_v17 = vadd.f32 %v2773_v50, %v2620_v63  ;;  %v2897_v49 = vadd.f32 %v2775_v39, %v2621_v23  ;;  %v2991_v4 = vadd.f32 %v2943_v34, %v2895_v33  ;;  %v1061_v32 = vrot.slane %v911_v57, 4 }
 0x15b   : > { %v1199_v43 = vrot.slane %v1158_v1, 4  ;;  %v1328_v38 = vmul.f32 %v4159_v29, %v4400_v2  ;;  %v1329_v9 = vmul.f32 %v4159_v29, %v4402_v35  ;;  %v1330_v28 = vmul.f32 %v4159_v29, %v4404_v47 }
 0x15c   : > { %v2992_v44 = vadd.f32 %v2944_v14, %v2896_v17  ;;  %v2993_v16 = vadd.f32 %v2945_v56, %v2897_v49  ;;  %v3046_v12 = vadd.f32 %v4394_v41, %v2991_v4  ;;  %v1062_v11 = vsel %vm569_vm0, %v1060_v51, %v1061_v32 }
 0x15d   : > { %v1200_v59 = vsel %vm569_vm0, %v1060_v51, %v1199_v43  ;;  %v4594_v62 = vunpack.c.l.bf16 %v1199_v43  ;;  %v1377_v5 = vmul.f32 %v4135_v0, %v4417_v61  ;;  %v4600_v26 = vunpack.c.l.bf16 %v1062_v11 }
 0x15e   : > { %v3047_v2 = vadd.f32 %v4394_v41, %v2992_v44  ;;  %v3048_v35 = vadd.f32 %v4394_v41, %v2993_v16  ;;  %v3094_v13 = vmax.f32 %v3046_v12, 0.0  ;;  %v4602_v42 = vunpack.c.h.bf16 %v1062_v11 }
 0x15f   : > { %v4604_v34 = vunpack.c.l.bf16 %v1200_v59  ;;  %v4606_v47 = vunpack.c.h.bf16 %v1200_v59  ;;  %v1378_v56 = vmul.f32 %v4135_v0, %v4419_v55  ;;  %v1445_v61 = vrot.slane %v1377_v5, 1 }
 0x160   : > { %v3095_v57 = vmax.f32 %v3047_v2, 0.0  ;;  %v3096_v3 = vmax.f32 %v3048_v35, 0.0  ;;  %v3142_v23 = vmin.f32 %v3094_v13, 6.0  ;;  %v1593_v37 = vmul.f32 %v4156_v27, %v4421_v48 }
 0x161   : > { %v1446_v6 = vrot.slane %v1378_v56, 1  ;;  %v1594_v10 = vmul.f32 %v4156_v27, %v4423_v15  ;;  %v1595_v63 = vmul.f32 %v4156_v27, %v4415_v31  ;;  %v1541_v50 = vadd.f32 %v1445_v61, %v1328_v38 }
 0x162   : > { %v3143_v33 = vmin.f32 %v3095_v57, 6.0  ;;  %v3144_v14 = vmin.f32 %v3096_v3, 6.0  ;;  %v3243_v1 = vrot.slane %v3142_v23, 7  ;;  %v1696_v17 = vrot.slane %v1593_v37, 2 }
 0x163   : > { %v1447_v55 = vsel %vm1435_vm10, %v1445_v61, %v1446_v6  ;;  %v1543_v39 = vadd.f32 %v1446_v6, %v1330_v28  ;;  %v1697_v49 = vrot.slane %v1594_v10, 2  ;;  %v1699_v43 = vrot.slane %v1595_v63, 2 }
 0x164   : > { %v3244_v4 = vrot.slane %v3143_v33, 7  ;;  %v3246_v51 = vrot.slane %v3144_v14, 7  ;;  %v1542_v32 = vadd.f32 %v1447_v55, %v1329_v9  ;;  %v1818_v44 = vadd.f32 %v1696_v17, %v1541_v50 }
 0x165   : > { %v1698_v48 = vsel %vm1680_vm12, %v1696_v17, %v1697_v49  ;;  %v1870_v15 = vmul.f32 %v4181_v7, %v4493_v54  ;;  %v1871_v31 = vmul.f32 %v4181_v7, %v4495_v46  ;;  %v1700_v12 = vsel %vm1680_vm12, %v1697_v49, %v1699_v43 }
 0x166   : > { %v3245_v38 = vsel %vm3232_vm13, %v3243_v1, %v3244_v4  ;;  %v3247_v16 = vsel %vm3232_vm13, %v3244_v4, %v3246_v51  ;;  %v1819_v28 = vadd.f32 %v1698_v48, %v1542_v32  ;;  %v1820_v59 = vadd.f32 %v1700_v12, %v1543_v39  ;;  %v912_v12 = vld [vmem:[#allocation2 + $0x60] sm:$0xf8] }
 0x167   : > { %v3347_v11 = vpack.c.bf16 %v3247_v16, %v3245_v38  ;;  %v1872_v9 = vmul.f32 %v4181_v7, %v4497_v8  ;;  %v1919_v5 = vmul.f32 %v4191_v21, %v4507_v58  ;;  %v1920_v2 = vmul.f32 %v4191_v21, %v4509_v18 }
 0x168   : > { %v2134_v35 = vmul.f32 %v4194_v22, %v4512_v53  ;;  %v2135_v13 = vmul.f32 %v4194_v22, %v4514_v20  ;;  %v2136_v56 = vmul.f32 %v4194_v22, %v4516_v36  ;;  %v2410_v3 = vmul.f32 %v4200_v30, %v4577_v52 }
 0x169   : > { %3887 = vmatprep.mubr.msk.bf16.mxu1 %vm280_vm2, %v3347_v11  ;;  %v1986_v57 = vrot.slane %v1919_v5, 1  ;;  %v2411_v23 = vmul.f32 %v4200_v30, %v4581_v60  ;;  %v2412_v61 = vmul.f32 %v4200_v30, %v4583_v25  ;;  %v1987_v6 = vrot.slane %v1920_v2, 1 }
 0x16a   : > { %v2236_v37 = vrot.slane %v2134_v35, 2  ;;  %v2237_v10 = vrot.slane %v2135_v13, 2  ;;  %v2239_v63 = vrot.slane %v2136_v56, 2  ;;  %v2459_v14 = vmul.f32 %v4213_v45, %v4600_v26  ;;  %v913_v35 = vld [vmem:[#allocation2 + $0x68] sm:$0xf] }
 0x16b   : > { %v2082_v33 = vadd.f32 %v1986_v57, %v1870_v15  ;;  %v2460_v1 = vmul.f32 %v4213_v45, %v4602_v42  ;;  %v2674_v50 = vmul.f32 %v4209_v40, %v4604_v34  ;;  %v1988_v55 = vsel %vm1435_vm10, %v1986_v57, %v1987_v6 }
 0x16c   : > { %v2084_v39 = vadd.f32 %v1987_v6, %v1872_v9  ;;  %v2238_v17 = vsel %vm1680_vm12, %v2236_v37, %v2237_v10  ;;  %v2240_v49 = vsel %vm1680_vm12, %v2237_v10, %v2239_v63  ;;  %v2083_v4 = vadd.f32 %v1988_v55, %v1871_v31  ;;  %v996_v6 = vld [vmem:[#allocation2 + $0x60] sm:$0xf0] }
 0x16d   : > { %v2358_v51 = vadd.f32 %v2236_v37, %v2082_v33  ;;  %v2526_v32 = vrot.slane %v2459_v14, 1  ;;  %v2527_v43 = vrot.slane %v2460_v1, 1  ;;  %v2675_v15 = vmul.f32 %v4209_v40, %v4606_v47  ;;  %v1159_v14 = vld [vmem:[#allocation2 + $0x68] sm:$0x1f] }
 0x16e   : > { %v2360_v48 = vadd.f32 %v2240_v49, %v2084_v39  ;;  %v2676_v38 = vmul.f32 %v4209_v40, %v4594_v62  ;;  %v2776_v16 = vrot.slane %v2674_v50, 2  ;;  %v2359_v11 = vadd.f32 %v2238_v17, %v2083_v4 }
 0x16f   : > { %v2528_v9 = vsel %vm1435_vm10, %v2526_v32, %v2527_v43  ;;  %v2622_v5 = vadd.f32 %v2526_v32, %v2410_v3  ;;  %v2624_v2 = vadd.f32 %v2527_v43, %v2412_v61  ;;  %v2777_v31 = vrot.slane %v2675_v15, 2 }
 0x170   : > { %v2623_v13 = vadd.f32 %v2528_v9, %v2411_v23  ;;  %v2779_v56 = vrot.slane %v2676_v38, 2  ;;  %v2946_v57 = vadd.f32 %v2358_v51, %v1818_v44  ;;  %v2947_v10 = vadd.f32 %v2359_v11, %v1819_v28 }
 0x171   : > { %v2898_v37 = vadd.f32 %v2776_v16, %v2622_v5  ;;  %v2948_v63 = vadd.f32 %v2360_v48, %v1820_v59  ;;  %v4658_v33 = vunpack.c.l.bf16 %v912_v12  ;;  %v2778_v1 = vsel %vm1680_vm12, %v2776_v16, %v2777_v31 }
 0x172   : > { %v2780_v50 = vsel %vm1680_vm12, %v2777_v31, %v2779_v56  ;;  %v4662_v55 = vunpack.c.h.bf16 %v912_v12  ;;  %v4664_v3 = vunpack.c.l.bf16 %v913_v35  ;;  %v2899_v61 = vadd.f32 %v2778_v1, %v2623_v13 }
 0x173   : > { %v2900_v23 = vadd.f32 %v2780_v50, %v2624_v2  ;;  %v2994_v39 = vadd.f32 %v2946_v57, %v2898_v37  ;;  %v1063_v17 = vrot.slane %v996_v6, 4  ;;  %v1064_v44 = vrot.slane %v913_v35, 4 }
 0x174   : > { %v1201_v49 = vrot.slane %v1159_v14, 4  ;;  %v1331_v28 = vmul.f32 %v4159_v29, %v4493_v54  ;;  %v1332_v59 = vmul.f32 %v4159_v29, %v4495_v46  ;;  %v2995_v4 = vadd.f32 %v2947_v10, %v2899_v61 }
 0x175   : > { %v2996_v51 = vadd.f32 %v2948_v63, %v2900_v23  ;;  %v3049_v32 = vadd.f32 %v4394_v41, %v2994_v39  ;;  %v1333_v43 = vmul.f32 %v4159_v29, %v4497_v8  ;;  %v1065_v48 = vsel %vm569_vm0, %v1063_v17, %v1064_v44 }
 0x176   : > { %v1202_v15 = vsel %vm569_vm0, %v1063_v17, %v1201_v49  ;;  %v4675_v38 = vunpack.c.l.bf16 %v1201_v49  ;;  %v1379_v16 = vmul.f32 %v4135_v0, %v4507_v58  ;;  %v3050_v54 = vadd.f32 %v4394_v41, %v2995_v4 }
 0x177   : > { %v3051_v46 = vadd.f32 %v4394_v41, %v2996_v51  ;;  %v3097_v12 = vmax.f32 %v3049_v32, 0.0  ;;  %v4681_v11 = vunpack.c.l.bf16 %v1065_v48  ;;  %v4683_v9 = vunpack.c.h.bf16 %v1065_v48 }
 0x178   : > { %v4685_v5 = vunpack.c.l.bf16 %v1202_v15  ;;  %v4687_v8 = vunpack.c.h.bf16 %v1202_v15  ;;  %v1380_v2 = vmul.f32 %v4135_v0, %v4509_v18  ;;  %v3098_v35 = vmax.f32 %v3050_v54, 0.0 }
 0x179   : > { %v3099_v13 = vmax.f32 %v3051_v46, 0.0  ;;  %v3145_v31 = vmin.f32 %v3097_v12, 6.0  ;;  %v1448_v58 = vrot.slane %v1379_v16, 1  ;;  %v1596_v57 = vmul.f32 %v4156_v27, %v4512_v53 }
 0x17a   : > { %v1449_v56 = vrot.slane %v1380_v2, 1  ;;  %v1597_v6 = vmul.f32 %v4156_v27, %v4514_v20  ;;  %v1598_v37 = vmul.f32 %v4156_v27, %v4516_v36  ;;  %v3146_v10 = vmin.f32 %v3098_v35, 6.0 }
 0x17b   : > { %v3147_v63 = vmin.f32 %v3099_v13, 6.0  ;;  %v3248_v14 = vrot.slane %v3145_v31, 7  ;;  %v1544_v1 = vadd.f32 %v1448_v58, %v1331_v28  ;;  %v1701_v61 = vrot.slane %v1596_v57, 2 }
 0x17c   : > { %v1450_v18 = vsel %vm1435_vm10, %v1448_v58, %v1449_v56  ;;  %v1546_v50 = vadd.f32 %v1449_v56, %v1333_v43  ;;  %v1702_v23 = vrot.slane %v1597_v6, 2  ;;  %v3249_v39 = vrot.slane %v3146_v10, 7 }
 0x17d   : > { %v3251_v17 = vrot.slane %v3147_v63, 7  ;;  %v1545_v44 = vadd.f32 %v1450_v18, %v1332_v59  ;;  %v1704_v49 = vrot.slane %v1598_v37, 2  ;;  %v1821_v4 = vadd.f32 %v1701_v61, %v1544_v1 }
 0x17e   : > { %v1703_v53 = vsel %vm1680_vm12, %v1701_v61, %v1702_v23  ;;  %v1873_v20 = vmul.f32 %v4181_v7, %v4577_v52  ;;  %v1874_v36 = vmul.f32 %v4181_v7, %v4581_v60  ;;  %v3250_v28 = vsel %vm3232_vm13, %v3248_v14, %v3249_v39 }
 0x17f   : > { %v3252_v51 = vsel %vm3232_vm13, %v3249_v39, %v3251_v17  ;;  %v1705_v32 = vsel %vm1680_vm12, %v1702_v23, %v1704_v49  ;;  %v1822_v43 = vadd.f32 %v1703_v53, %v1545_v44  ;;  %v1875_v59 = vmul.f32 %v4181_v7, %v4583_v25 }
 0x180   : > { %v3348_v48 = vpack.c.bf16 %v3252_v51, %v3250_v28  ;;  %v1823_v15 = vadd.f32 %v1705_v32, %v1546_v50  ;;  %v1921_v16 = vmul.f32 %v4191_v21, %v4600_v26  ;;  %v1922_v54 = vmul.f32 %v4191_v21, %v4602_v42  ;;  %v310_v32 = vld [vmem:[#allocation2 + $0x70] sm:$0x8] }
 0x181   : > { %v2137_v46 = vmul.f32 %v4194_v22, %v4604_v34  ;;  %v2138_v12 = vmul.f32 %v4194_v22, %v4606_v47  ;;  %v2139_v2 = vmul.f32 %v4194_v22, %v4594_v62  ;;  %v2413_v13 = vmul.f32 %v4200_v30, %v4658_v33 }
 0x182   : > { %3888 = vmatmul.mubr.msk.bf16.gmra.mrb[4].mxu1 %vm280_vm2, %v3348_v48  ;;  %v1989_v35 = vrot.slane %v1921_v16, 1  ;;  %v2414_v31 = vmul.f32 %v4200_v30, %v4662_v55  ;;  %v2415_v58 = vmul.f32 %v4200_v30, %v4664_v3  ;;  %v1990_v56 = vrot.slane %v1922_v54, 1 }
 0x183   : > { %v2241_v57 = vrot.slane %v2137_v46, 2  ;;  %v2242_v6 = vrot.slane %v2138_v12, 2  ;;  %v2244_v37 = vrot.slane %v2139_v2, 2  ;;  %v2461_v63 = vmul.f32 %v4213_v45, %v4681_v11  ;;  %v367_v46 = vld [vmem:[#allocation2 + $0x78] sm:$0x10] }
 0x184   : > { %v2085_v10 = vadd.f32 %v1989_v35, %v1873_v20  ;;  %v2462_v14 = vmul.f32 %v4213_v45, %v4683_v9  ;;  %v2677_v1 = vmul.f32 %v4209_v40, %v4685_v5  ;;  %v1991_v18 = vsel %vm1435_vm10, %v1989_v35, %v1990_v56  ;;  %v915_v12 = vld [vmem:[#allocation2 + $0x78] sm:$0xf] }
 0x185   : > { %v2087_v50 = vadd.f32 %v1990_v56, %v1875_v59  ;;  %v2243_v61 = vsel %vm1680_vm12, %v2241_v57, %v2242_v6  ;;  %v2245_v23 = vsel %vm1680_vm12, %v2242_v6, %v2244_v37  ;;  %v2086_v39 = vadd.f32 %v1991_v18, %v1874_v36 }
 0x186   : > { %v2361_v17 = vadd.f32 %v2241_v57, %v2085_v10  ;;  %v2529_v44 = vrot.slane %v2461_v63, 1  ;;  %v2530_v49 = vrot.slane %v2462_v14, 1  ;;  %v2678_v20 = vmul.f32 %v4209_v40, %v4687_v8  ;;  %v997_v57 = vld [vmem:[#allocation2 + $0x70] sm:$0xf0] }
 0x187   : > { %v2363_v53 = vadd.f32 %v2245_v23, %v2087_v50  ;;  %v2679_v28 = vmul.f32 %v4209_v40, %v4675_v38  ;;  %v2781_v51 = vrot.slane %v2677_v1, 2  ;;  %v2362_v48 = vadd.f32 %v2243_v61, %v2086_v39 }
 0x188   : > { %v2531_v59 = vsel %vm1435_vm10, %v2529_v44, %v2530_v49  ;;  %v2625_v16 = vadd.f32 %v2529_v44, %v2413_v13  ;;  %v2627_v54 = vadd.f32 %v2530_v49, %v2415_v58  ;;  %v2782_v2 = vrot.slane %v2678_v20, 2 }
 0x189   : > { %v2626_v36 = vadd.f32 %v2531_v59, %v2414_v31  ;;  %v2784_v35 = vrot.slane %v2679_v28, 2  ;;  %v2949_v56 = vadd.f32 %v2361_v17, %v1821_v4  ;;  %v2950_v37 = vadd.f32 %v2362_v48, %v1822_v43 }
 0x18a   : > { %v2901_v6 = vadd.f32 %v2781_v51, %v2625_v16  ;;  %v2951_v10 = vadd.f32 %v2363_v53, %v1823_v15  ;;  %v311_v63 = vsel %vm4086_vm7, 0, %v310_v32  ;;  %v2783_v14 = vsel %vm1680_vm12, %v2781_v51, %v2782_v2 }
 0x18b   : > { %v2785_v1 = vsel %vm1680_vm12, %v2782_v2, %v2784_v35  ;;  %312 = vst [vmem:[#allocation2 + $0x70] sm:$0x8] %v311_v63  ;;  %v368_v13 = vsel %vm4092_vm8, 0, %v367_v46  ;;  %v4745_v58 = vunpack.c.l.bf16 %v915_v12  ;;  %v2902_v31 = vadd.f32 %v2783_v14, %v2626_v36 }
 0x18c   : > { %v2903_v18 = vadd.f32 %v2785_v1, %v2627_v54  ;;  %v2997_v4 = vadd.f32 %v2949_v56, %v2901_v6  ;;  %369 = vst [vmem:[#allocation2 + $0x78] sm:$0x10] %v368_v13  ;;  %v1066_v50 = vrot.slane %v997_v57, 4  ;;  %v1067_v43 = vrot.slane %v915_v12, 4 }
 0x18d   : > { %v1334_v15 = vmul.f32 %v4159_v29, %v4577_v52  ;;  %v1335_v61 = vmul.f32 %v4159_v29, %v4581_v60  ;;  %v1336_v23 = vmul.f32 %v4159_v29, %v4583_v25  ;;  %v2998_v39 = vadd.f32 %v2950_v37, %v2902_v31 }
 0x18e   : > { %v2999_v17 = vadd.f32 %v2951_v10, %v2903_v18  ;;  %v3052_v44 = vadd.f32 %v4394_v41, %v2997_v4  ;;  %v1381_v49 = vmul.f32 %v4135_v0, %v4600_v26  ;;  %v1068_v53 = vsel %vm569_vm0, %v1066_v50, %v1067_v43 }
 0x18f   : > { %v1382_v20 = vmul.f32 %v4135_v0, %v4602_v42  ;;  %v1599_v52 = vmul.f32 %v4156_v27, %v4604_v34  ;;  %v1600_v60 = vmul.f32 %v4156_v27, %v4606_v47  ;;  %v3053_v25 = vadd.f32 %v4394_v41, %v2998_v39 }
 0x190   : > { %v3054_v28 = vadd.f32 %v4394_v41, %v2999_v17  ;;  %v3100_v51 = vmax.f32 %v3052_v44, 0.0  ;;  %v4765_v32 = vunpack.c.l.bf16 %v1068_v53  ;;  %v4767_v48 = vunpack.c.h.bf16 %v1068_v53 }
 0x191   : > { %v1451_v26 = vrot.slane %v1381_v49, 1  ;;  %v1452_v59 = vrot.slane %v1382_v20, 1  ;;  %v1601_v42 = vmul.f32 %v4156_v27, %v4594_v62  ;;  %v3101_v16 = vmax.f32 %v3053_v25, 0.0 }
 0x192   : > { %v3102_v54 = vmax.f32 %v3054_v28, 0.0  ;;  %v3148_v34 = vmin.f32 %v3100_v51, 6.0  ;;  %v914_v46 = vld [vmem:[#allocation2 + $0x70] sm:$0xf8]  ;;  %v1706_v12 = vrot.slane %v1599_v52, 2  ;;  %v1707_v62 = vrot.slane %v1600_v60, 2 }
 0x193   : > { %v4771_v47 = vunpack.c.l.bf16 %v914_v46  ;;  %v4773_v36 = vunpack.c.h.bf16 %v914_v46  ;;  %v1160_v41 = vld [vmem:[#allocation2 + $0x78] sm:$0x1f]  ;;  %v1453_v2 = vsel %vm1435_vm10, %v1451_v26, %v1452_v59  ;;  %v1547_v35 = vadd.f32 %v1451_v26, %v1334_v15 }
 0x194   : > { %v3149_v56 = vmin.f32 %v3101_v16, 6.0  ;;  %v3150_v57 = vmin.f32 %v3102_v54, 6.0  ;;  %v3253_v6 = vrot.slane %v3148_v34, 7  ;;  %v1203_v37 = vrot.slane %v1160_v41, 4 }
 0x195   : > { %v1548_v10 = vadd.f32 %v1453_v2, %v1335_v61  ;;  %v1549_v63 = vadd.f32 %v1452_v59, %v1336_v23  ;;  %v1709_v14 = vrot.slane %v1601_v42, 2  ;;  %v1708_v15 = vsel %vm1680_vm12, %v1706_v12, %v1707_v62 }
 0x196   : > { %v3254_v1 = vrot.slane %v3149_v56, 7  ;;  %v3256_v13 = vrot.slane %v3150_v57, 7  ;;  %v1204_v31 = vsel %vm569_vm0, %v1066_v50, %v1203_v37  ;;  %v4777_v18 = vunpack.c.l.bf16 %v1203_v37 }
 0x197   : > { %v4779_v4 = vunpack.c.l.bf16 %v1204_v31  ;;  %v4781_v43 = vunpack.c.h.bf16 %v1204_v31  ;;  %v1710_v39 = vsel %vm1680_vm12, %v1707_v62, %v1709_v14  ;;  %v1824_v23 = vadd.f32 %v1706_v12, %v1547_v35 }
 0x198   : > { %v3255_v17 = vsel %vm3232_vm13, %v3253_v6, %v3254_v1  ;;  %v3257_v61 = vsel %vm3232_vm13, %v3254_v1, %v3256_v13  ;;  %v1825_v44 = vadd.f32 %v1708_v15, %v1548_v10  ;;  %v1826_v53 = vadd.f32 %v1710_v39, %v1549_v63 }
 0x199   : > { %v3349_v49 = vpack.c.bf16 %v3257_v61, %v3255_v17  ;;  %v1876_v50 = vmul.f32 %v4181_v7, %v4658_v33  ;;  %v1877_v20 = vmul.f32 %v4181_v7, %v4662_v55  ;;  %v1878_v52 = vmul.f32 %v4181_v7, %v4664_v3 }
 0x19a   : > { %v1923_v60 = vmul.f32 %v4191_v21, %v4681_v11  ;;  %v1924_v25 = vmul.f32 %v4191_v21, %v4683_v9  ;;  %v2140_v28 = vmul.f32 %v4194_v22, %v4685_v5  ;;  %v2141_v51 = vmul.f32 %v4194_v22, %v4687_v8 }
 0x19b   : > { %3891 = vmatprep.mubr.msk.bf16.mxu1 %vm280_vm2, %v3349_v49  ;;  %v2142_v26 = vmul.f32 %v4194_v22, %v4675_v38  ;;  %v2416_v59 = vmul.f32 %v4200_v30, %v4771_v47  ;;  %v2417_v42 = vmul.f32 %v4200_v30, %v4773_v36  ;;  %v2418_v46 = vmul.f32 %v4200_v30, %v4745_v58 }
 0x19c   : > { %v1992_v16 = vrot.slane %v1923_v60, 1  ;;  %v1993_v54 = vrot.slane %v1924_v25, 1  ;;  %v2246_v34 = vrot.slane %v2140_v28, 2  ;;  %v2247_v12 = vrot.slane %v2141_v51, 2  ;;  %v917_v51 = vld [vmem:[#allocation2 + $0x88] sm:$0xf] }
 0x19d   : > { %v2249_v41 = vrot.slane %v2142_v26, 2  ;;  %v2463_v2 = vmul.f32 %v4213_v45, %v4765_v32  ;;  %v2464_v35 = vmul.f32 %v4213_v45, %v4767_v48  ;;  %v2680_v37 = vmul.f32 %v4209_v40, %v4779_v4 }
 0x19e   : > { %v1994_v56 = vsel %vm1435_vm10, %v1992_v16, %v1993_v54  ;;  %v2088_v57 = vadd.f32 %v1992_v16, %v1876_v50  ;;  %v2090_v6 = vadd.f32 %v1993_v54, %v1878_v52  ;;  %v2248_v63 = vsel %vm1680_vm12, %v2246_v34, %v2247_v12  ;;  %v313_v50 = vld [vmem:[#allocation2 + $0x80] sm:$0x8]  ;;  %v370_v52 = vld [vmem:[#allocation2 + $0x88] sm:$0x10] }
 0x19f   : > { %v2089_v10 = vadd.f32 %v1994_v56, %v1877_v20  ;;  %v2250_v62 = vsel %vm1680_vm12, %v2247_v12, %v2249_v41  ;;  %v2532_v14 = vrot.slane %v2463_v2, 1  ;;  %v2533_v31 = vrot.slane %v2464_v35, 1  ;;  %v998_v12 = vld [vmem:[#allocation2 + $0x80] sm:$0xf0] }
 0x1a0   : > { %v2364_v1 = vadd.f32 %v2246_v34, %v2088_v57  ;;  %v2366_v13 = vadd.f32 %v2250_v62, %v2090_v6  ;;  %v2681_v15 = vmul.f32 %v4209_v40, %v4781_v43  ;;  %v2682_v61 = vmul.f32 %v4209_v40, %v4777_v18 }
 0x1a1   : > { %v2365_v39 = vadd.f32 %v2248_v63, %v2089_v10  ;;  %v2628_v17 = vadd.f32 %v2532_v14, %v2416_v59  ;;  %v2786_v49 = vrot.slane %v2680_v37, 2  ;;  %v2534_v20 = vsel %vm1435_vm10, %v2532_v14, %v2533_v31  ;;  %v4837_v10 = vld [vmem:[%s5863_s4] ss:$0 sm:$0xff] }
 0x1a2   : > { %v2630_v60 = vadd.f32 %v2533_v31, %v2418_v46  ;;  %v2787_v25 = vrot.slane %v2681_v15, 2  ;;  %v2952_v28 = vadd.f32 %v2364_v1, %v1824_v23  ;;  %v2629_v26 = vadd.f32 %v2534_v20, %v2417_v42 }
 0x1a3   : > { %v2789_v16 = vrot.slane %v2682_v61, 2  ;;  %v2904_v54 = vadd.f32 %v2786_v49, %v2628_v17  ;;  %v2953_v34 = vadd.f32 %v2365_v39, %v1825_v44  ;;  %v2954_v59 = vadd.f32 %v2366_v13, %v1826_v53 }
 0x1a4   : > { %v2788_v41 = vsel %vm1680_vm12, %v2786_v49, %v2787_v25  ;;  %v314_v2 = vsel %vm4086_vm7, 0, %v313_v50  ;;  %v371_v35 = vsel %vm4092_vm8, 0, %v370_v52  ;;  %v4830_v23 = vunpack.c.l.bf16 %v917_v51 }
 0x1a5   : > { %v2790_v56 = vsel %vm1680_vm12, %v2787_v25, %v2789_v16  ;;  %v2905_v46 = vadd.f32 %v2788_v41, %v2629_v26  ;;  %v3000_v57 = vadd.f32 %v2952_v28, %v2904_v54  ;;  %315 = vst [vmem:[#allocation2 + $0x80] sm:$0x8] %v314_v2  ;;  %372 = vst [vmem:[#allocation2 + $0x88] sm:$0x10] %v371_v35  ;;  %v1069_v44 = vrot.slane %v998_v12, 4 }
 0x1a6   : > { %v2906_v42 = vadd.f32 %v2790_v56, %v2630_v60  ;;  %v1070_v6 = vrot.slane %v917_v51, 4  ;;  %v1337_v53 = vmul.f32 %v4159_v29, %v4658_v33  ;;  %v1338_v62 = vmul.f32 %v4159_v29, %v4662_v55 }
 0x1a7   : > { %v3001_v37 = vadd.f32 %v2953_v34, %v2905_v46  ;;  %v3055_v63 = vadd.f32 %v4837_v10, %v3000_v57  ;;  %v1339_v14 = vmul.f32 %v4159_v29, %v4664_v3  ;;  %v1383_v33 = vmul.f32 %v4135_v0, %v4681_v11 }
 0x1a8   : > { %v3002_v1 = vadd.f32 %v2954_v59, %v2906_v42  ;;  %v1071_v13 = vsel %vm569_vm0, %v1069_v44, %v1070_v6  ;;  %v1384_v31 = vmul.f32 %v4135_v0, %v4683_v9  ;;  %v1602_v50 = vmul.f32 %v4156_v27, %v4685_v5 }
 0x1a9   : > { %v3056_v15 = vadd.f32 %v4837_v10, %v3001_v37  ;;  %v3103_v39 = vmax.f32 %v3055_v63, 0.0  ;;  %v4850_v17 = vunpack.c.l.bf16 %v1071_v13  ;;  %v4852_v61 = vunpack.c.h.bf16 %v1071_v13 }
 0x1aa   : > { %v3057_v55 = vadd.f32 %v4837_v10, %v3002_v1  ;;  %v1454_v49 = vrot.slane %v1383_v33, 1  ;;  %v1455_v3 = vrot.slane %v1384_v31, 1  ;;  %v1603_v11 = vmul.f32 %v4156_v27, %v4687_v8 }
 0x1ab   : > { %v3104_v52 = vmax.f32 %v3056_v15, 0.0  ;;  %v3151_v20 = vmin.f32 %v3103_v39, 6.0  ;;  %v1604_v9 = vmul.f32 %v4156_v27, %v4675_v38  ;;  %v1711_v8 = vrot.slane %v1602_v50, 2 }
 0x1ac   : > { %v3105_v60 = vmax.f32 %v3057_v55, 0.0  ;;  %v916_v25 = vld [vmem:[#allocation2 + $0x80] sm:$0xf8]  ;;  %v1161_v28 = vld [vmem:[#allocation2 + $0x88] sm:$0x1f]  ;;  %v1456_v51 = vsel %vm1435_vm10, %v1454_v49, %v1455_v3  ;;  %v1550_v26 = vadd.f32 %v1454_v49, %v1337_v53  ;;  %v1552_v16 = vadd.f32 %v1455_v3, %v1339_v14 }
 0x1ad   : > { %v3152_v54 = vmin.f32 %v3104_v52, 6.0  ;;  %v3258_v34 = vrot.slane %v3151_v20, 7  ;;  %v4862_v12 = vunpack.c.l.bf16 %v916_v25  ;;  %v4864_v5 = vunpack.c.h.bf16 %v916_v25 }
 0x1ae   : > { %v3153_v41 = vmin.f32 %v3105_v60, 6.0  ;;  %v1205_v59 = vrot.slane %v1161_v28, 4  ;;  %v1551_v2 = vadd.f32 %v1456_v51, %v1338_v62  ;;  %v1712_v56 = vrot.slane %v1603_v11, 2 }
 0x1af   : > { %v3259_v35 = vrot.slane %v3152_v54, 7  ;;  %v1714_v38 = vrot.slane %v1604_v9, 2  ;;  %v1879_v46 = vmul.f32 %v4181_v7, %v4771_v47  ;;  %v1827_v53 = vadd.f32 %v1711_v8, %v1550_v26 }
 0x1b0   : > { %v3261_v57 = vrot.slane %v3153_v41, 7  ;;  %v1206_v42 = vsel %vm569_vm0, %v1069_v44, %v1205_v59  ;;  %v4869_v6 = vunpack.c.l.bf16 %v1205_v59  ;;  %v1713_v62 = vsel %vm1680_vm12, %v1711_v8, %v1712_v56 }
 0x1b1   : > { %v3260_v37 = vsel %vm3232_vm13, %v3258_v34, %v3259_v35  ;;  %v4872_v63 = vunpack.c.l.bf16 %v1206_v42  ;;  %v4874_v14 = vunpack.c.h.bf16 %v1206_v42  ;;  %v1715_v13 = vsel %vm1680_vm12, %v1712_v56, %v1714_v38 }
 0x1b2   : > { %v3262_v1 = vsel %vm3232_vm13, %v3259_v35, %v3261_v57  ;;  %v1828_v33 = vadd.f32 %v1713_v62, %v1551_v2  ;;  %v1880_v31 = vmul.f32 %v4181_v7, %v4773_v36  ;;  %v1829_v15 = vadd.f32 %v1715_v13, %v1552_v16  ;;  %v316_v13 = vld [vmem:[#allocation2 + $0x90] sm:$0x8] }
 0x1b3   : > { %v3350_v44 = vpack.c.bf16 %v3262_v1, %v3260_v37  ;;  %v1881_v39 = vmul.f32 %v4181_v7, %v4745_v58  ;;  %v1925_v55 = vmul.f32 %v4191_v21, %v4765_v32  ;;  %v1926_v49 = vmul.f32 %v4191_v21, %v4767_v48 }
 0x1b4   : > { %v2143_v3 = vmul.f32 %v4194_v22, %v4779_v4  ;;  %v2144_v50 = vmul.f32 %v4194_v22, %v4781_v43  ;;  %v2145_v52 = vmul.f32 %v4194_v22, %v4777_v18  ;;  %v2419_v11 = vmul.f32 %v4200_v30, %v4862_v12 }
 0x1b5   : > { %3892 = vmatmul.mubr.msk.bf16.gmra.mrb[8].mxu1 %vm280_vm2, %v3350_v44  ;;  %v1995_v20 = vrot.slane %v1925_v55, 1  ;;  %v2420_v9 = vmul.f32 %v4200_v30, %v4864_v5  ;;  %v2421_v60 = vmul.f32 %v4200_v30, %v4830_v23  ;;  %v1996_v25 = vrot.slane %v1926_v49, 1 }
 0x1b6   : > { %v2251_v28 = vrot.slane %v2143_v3, 2  ;;  %v2252_v51 = vrot.slane %v2144_v50, 2  ;;  %v2254_v26 = vrot.slane %v2145_v52, 2  ;;  %v2465_v54 = vmul.f32 %v4213_v45, %v4850_v17  ;;  %v373_v3 = vld [vmem:[#allocation2 + $0x98] sm:$0x10] }
 0x1b7   : > { %v2091_v16 = vadd.f32 %v1995_v20, %v1879_v46  ;;  %v2466_v34 = vmul.f32 %v4213_v45, %v4852_v61  ;;  %v2683_v41 = vmul.f32 %v4209_v40, %v4872_v63  ;;  %v1997_v59 = vsel %vm1435_vm10, %v1995_v20, %v1996_v25  ;;  %v919_v50 = vld [vmem:[#allocation2 + $0x98] sm:$0xf] }
 0x1b8   : > { %v2093_v2 = vadd.f32 %v1996_v25, %v1881_v39  ;;  %v2253_v8 = vsel %vm1680_vm12, %v2251_v28, %v2252_v51  ;;  %v2255_v35 = vsel %vm1680_vm12, %v2252_v51, %v2254_v26  ;;  %v2092_v56 = vadd.f32 %v1997_v59, %v1880_v31 }
 0x1b9   : > { %v2367_v38 = vadd.f32 %v2251_v28, %v2091_v16  ;;  %v2535_v57 = vrot.slane %v2465_v54, 1  ;;  %v2536_v46 = vrot.slane %v2466_v34, 1  ;;  %v2684_v37 = vmul.f32 %v4209_v40, %v4874_v14  ;;  %v999_v28 = vld [vmem:[#allocation2 + $0x90] sm:$0xf0] }
 0x1ba   : > { %v2369_v42 = vadd.f32 %v2255_v35, %v2093_v2  ;;  %v2685_v62 = vmul.f32 %v4209_v40, %v4869_v6  ;;  %v2791_v1 = vrot.slane %v2683_v41, 2  ;;  %v2368_v44 = vadd.f32 %v2253_v8, %v2092_v56 }
 0x1bb   : > { %v2537_v39 = vsel %vm1435_vm10, %v2535_v57, %v2536_v46  ;;  %v2631_v55 = vadd.f32 %v2535_v57, %v2419_v11  ;;  %v2633_v49 = vadd.f32 %v2536_v46, %v2421_v60  ;;  %v2792_v52 = vrot.slane %v2684_v37, 2 }
 0x1bc   : > { %v2632_v31 = vadd.f32 %v2537_v39, %v2420_v9  ;;  %v2794_v20 = vrot.slane %v2685_v62, 2  ;;  %v2955_v25 = vadd.f32 %v2367_v38, %v1827_v53  ;;  %v2956_v26 = vadd.f32 %v2368_v44, %v1828_v33 }
 0x1bd   : > { %v2907_v51 = vadd.f32 %v2791_v1, %v2631_v55  ;;  %v2957_v16 = vadd.f32 %v2369_v42, %v1829_v15  ;;  %v317_v54 = vsel %vm4086_vm7, 0, %v316_v13  ;;  %v2793_v34 = vsel %vm1680_vm12, %v2791_v1, %v2792_v52 }
 0x1be   : > { %v2795_v41 = vsel %vm1680_vm12, %v2792_v52, %v2794_v20  ;;  %318 = vst [vmem:[#allocation2 + $0x90] sm:$0x8] %v317_v54  ;;  %v374_v11 = vsel %vm4092_vm8, 0, %v373_v3  ;;  %v4920_v60 = vunpack.c.l.bf16 %v919_v50  ;;  %v2908_v9 = vadd.f32 %v2793_v34, %v2632_v31 }
 0x1bf   : > { %v2909_v59 = vadd.f32 %v2795_v41, %v2633_v49  ;;  %v3003_v53 = vadd.f32 %v2955_v25, %v2907_v51  ;;  %375 = vst [vmem:[#allocation2 + $0x98] sm:$0x10] %v374_v11  ;;  %v1072_v2 = vrot.slane %v999_v28, 4  ;;  %v1073_v33 = vrot.slane %v919_v50, 4 }
 0x1c0   : > { %v1340_v15 = vmul.f32 %v4159_v29, %v4771_v47  ;;  %v1341_v8 = vmul.f32 %v4159_v29, %v4773_v36  ;;  %v1342_v35 = vmul.f32 %v4159_v29, %v4745_v58  ;;  %v3004_v56 = vadd.f32 %v2956_v26, %v2908_v9 }
 0x1c1   : > { %v3005_v38 = vadd.f32 %v2957_v16, %v2909_v59  ;;  %v3058_v57 = vadd.f32 %v4837_v10, %v3003_v53  ;;  %v1385_v46 = vmul.f32 %v4135_v0, %v4765_v32  ;;  %v1074_v42 = vsel %vm569_vm0, %v1072_v2, %v1073_v33 }
 0x1c2   : > { %v1386_v37 = vmul.f32 %v4135_v0, %v4767_v48  ;;  %v1605_v47 = vmul.f32 %v4156_v27, %v4779_v4  ;;  %v1606_v36 = vmul.f32 %v4156_v27, %v4781_v43  ;;  %v3059_v58 = vadd.f32 %v4837_v10, %v3004_v56 }
 0x1c3   : > { %v3060_v62 = vadd.f32 %v4837_v10, %v3005_v38  ;;  %v3106_v1 = vmax.f32 %v3058_v57, 0.0  ;;  %v4940_v13 = vunpack.c.l.bf16 %v1074_v42  ;;  %v4942_v44 = vunpack.c.h.bf16 %v1074_v42 }
 0x1c4   : > { %v1457_v32 = vrot.slane %v1385_v46, 1  ;;  %v1458_v39 = vrot.slane %v1386_v37, 1  ;;  %v1607_v48 = vmul.f32 %v4156_v27, %v4777_v18  ;;  %v3107_v55 = vmax.f32 %v3059_v58, 0.0 }
 0x1c5   : > { %v3108_v49 = vmax.f32 %v3060_v62, 0.0  ;;  %v3154_v4 = vmin.f32 %v3106_v1, 6.0  ;;  %v918_v3 = vld [vmem:[#allocation2 + $0x90] sm:$0xf8]  ;;  %v1716_v50 = vrot.slane %v1605_v47, 2  ;;  %v1717_v18 = vrot.slane %v1606_v36, 2 }
 0x1c6   : > { %v4946_v43 = vunpack.c.l.bf16 %v918_v3  ;;  %v4948_v31 = vunpack.c.h.bf16 %v918_v3  ;;  %v1162_v52 = vld [vmem:[#allocation2 + $0x98] sm:$0x1f]  ;;  %v1459_v20 = vsel %vm1435_vm10, %v1457_v32, %v1458_v39  ;;  %v1553_v25 = vadd.f32 %v1457_v32, %v1340_v15 }
 0x1c7   : > { %v3155_v28 = vmin.f32 %v3107_v55, 6.0  ;;  %v3156_v51 = vmin.f32 %v3108_v49, 6.0  ;;  %v3263_v26 = vrot.slane %v3154_v4, 7  ;;  %v1207_v16 = vrot.slane %v1162_v52, 4 }
 0x1c8   : > { %v1554_v54 = vadd.f32 %v1459_v20, %v1341_v8  ;;  %v1555_v34 = vadd.f32 %v1458_v39, %v1342_v35  ;;  %v1719_v41 = vrot.slane %v1607_v48, 2  ;;  %v1718_v15 = vsel %vm1680_vm12, %v1716_v50, %v1717_v18 }
 0x1c9   : > { %v3264_v11 = vrot.slane %v3155_v28, 7  ;;  %v3266_v9 = vrot.slane %v3156_v51, 7  ;;  %v1208_v59 = vsel %vm569_vm0, %v1072_v2, %v1207_v16  ;;  %v4952_v53 = vunpack.c.l.bf16 %v1207_v16 }
 0x1ca   : > { %v4954_v33 = vunpack.c.l.bf16 %v1208_v59  ;;  %v4956_v56 = vunpack.c.h.bf16 %v1208_v59  ;;  %v1720_v38 = vsel %vm1680_vm12, %v1717_v18, %v1719_v41  ;;  %v1830_v35 = vadd.f32 %v1716_v50, %v1553_v25 }
 0x1cb   : > { %v3265_v57 = vsel %vm3232_vm13, %v3263_v26, %v3264_v11  ;;  %v3267_v8 = vsel %vm3232_vm13, %v3264_v11, %v3266_v9  ;;  %v1831_v46 = vadd.f32 %v1718_v15, %v1554_v54  ;;  %v1832_v37 = vadd.f32 %v1720_v38, %v1555_v34 }
 0x1cc   : > { %v3351_v42 = vpack.c.bf16 %v3267_v8, %v3265_v57  ;;  %v1882_v2 = vmul.f32 %v4181_v7, %v4862_v12  ;;  %v1883_v47 = vmul.f32 %v4181_v7, %v4864_v5  ;;  %v1884_v36 = vmul.f32 %v4181_v7, %v4830_v23 }
 0x1cd   : > { %v1927_v58 = vmul.f32 %v4191_v21, %v4850_v17  ;;  %v1928_v62 = vmul.f32 %v4191_v21, %v4852_v61  ;;  %v2146_v1 = vmul.f32 %v4194_v22, %v4872_v63  ;;  %v2147_v32 = vmul.f32 %v4194_v22, %v4874_v14 }
 0x1ce   : > { %3895 = vmatprep.mubr.msk.bf16.mxu1 %vm280_vm2, %v3351_v42  ;;  %v2148_v39 = vmul.f32 %v4194_v22, %v4869_v6  ;;  %v2422_v48 = vmul.f32 %v4200_v30, %v4946_v43  ;;  %v2423_v55 = vmul.f32 %v4200_v30, %v4948_v31  ;;  %v2424_v50 = vmul.f32 %v4200_v30, %v4920_v60 }
 0x1cf   : > { %v1998_v49 = vrot.slane %v1927_v58, 1  ;;  %v1999_v4 = vrot.slane %v1928_v62, 1  ;;  %v2256_v3 = vrot.slane %v2146_v1, 2  ;;  %v2257_v52 = vrot.slane %v2147_v32, 2  ;;  %v376_v58 = vld [vmem:[#allocation2 + $0xa8] sm:$0x10] }
 0x1d0   : > { %v2259_v20 = vrot.slane %v2148_v39, 2  ;;  %v2467_v25 = vmul.f32 %v4213_v45, %v4940_v13  ;;  %v2468_v28 = vmul.f32 %v4213_v45, %v4942_v44  ;;  %v2686_v54 = vmul.f32 %v4209_v40, %v4954_v33  ;;  %v921_v39 = vld [vmem:[#allocation2 + $0xa8] sm:$0xf] }
 0x1d1   : > { %v2000_v51 = vsel %vm1435_vm10, %v1998_v49, %v1999_v4  ;;  %v2094_v26 = vadd.f32 %v1998_v49, %v1882_v2  ;;  %v2096_v16 = vadd.f32 %v1999_v4, %v1884_v36  ;;  %v2258_v18 = vsel %vm1680_vm12, %v2256_v3, %v2257_v52  ;;  %v319_v36 = vld [vmem:[#allocation2 + $0xa0] sm:$0x8] }
 0x1d2   : > { %v2095_v34 = vadd.f32 %v2000_v51, %v1883_v47  ;;  %v2260_v41 = vsel %vm1680_vm12, %v2257_v52, %v2259_v20  ;;  %v2538_v11 = vrot.slane %v2467_v25, 1  ;;  %v2539_v15 = vrot.slane %v2468_v28, 1  ;;  %v1000_v20 = vld [vmem:[#allocation2 + $0xa0] sm:$0xf0] }
 0x1d3   : > { %v2370_v9 = vadd.f32 %v2256_v3, %v2094_v26  ;;  %v2372_v59 = vadd.f32 %v2260_v41, %v2096_v16  ;;  %v2687_v38 = vmul.f32 %v4209_v40, %v4956_v56  ;;  %v2688_v42 = vmul.f32 %v4209_v40, %v4952_v53 }
 0x1d4   : > { %v2371_v57 = vadd.f32 %v2258_v18, %v2095_v34  ;;  %v2634_v8 = vadd.f32 %v2538_v11, %v2422_v48  ;;  %v2796_v2 = vrot.slane %v2686_v54, 2  ;;  %v2540_v47 = vsel %vm1435_vm10, %v2538_v11, %v2539_v15 }
 0x1d5   : > { %v2636_v62 = vadd.f32 %v2539_v15, %v2424_v50  ;;  %v2797_v1 = vrot.slane %v2687_v38, 2  ;;  %v2958_v32 = vadd.f32 %v2370_v9, %v1830_v35  ;;  %v2635_v49 = vadd.f32 %v2540_v47, %v2423_v55 }
 0x1d6   : > { %v2799_v4 = vrot.slane %v2688_v42, 2  ;;  %v2910_v3 = vadd.f32 %v2796_v2, %v2634_v8  ;;  %v2959_v52 = vadd.f32 %v2371_v57, %v1831_v46  ;;  %v2960_v48 = vadd.f32 %v2372_v59, %v1832_v37 }
 0x1d7   : > { %v2798_v25 = vsel %vm1680_vm12, %v2796_v2, %v2797_v1  ;;  %v320_v28 = vsel %vm4086_vm7, 0, %v319_v36  ;;  %v377_v51 = vsel %vm4092_vm8, 0, %v376_v58  ;;  %v5005_v35 = vunpack.c.l.bf16 %v921_v39 }
 0x1d8   : > { %v2800_v26 = vsel %vm1680_vm12, %v2797_v1, %v2799_v4  ;;  %v2911_v50 = vadd.f32 %v2798_v25, %v2635_v49  ;;  %v3006_v16 = vadd.f32 %v2958_v32, %v2910_v3  ;;  %321 = vst [vmem:[#allocation2 + $0xa0] sm:$0x8] %v320_v28  ;;  %378 = vst [vmem:[#allocation2 + $0xa8] sm:$0x10] %v377_v51  ;;  %v1075_v46 = vrot.slane %v1000_v20, 4 }
 0x1d9   : > { %v2912_v55 = vadd.f32 %v2800_v26, %v2636_v62  ;;  %v1076_v54 = vrot.slane %v921_v39, 4  ;;  %v1343_v37 = vmul.f32 %v4159_v29, %v4862_v12  ;;  %v1344_v41 = vmul.f32 %v4159_v29, %v4864_v5 }
 0x1da   : > { %v3007_v34 = vadd.f32 %v2959_v52, %v2911_v50  ;;  %v3061_v18 = vadd.f32 %v4837_v10, %v3006_v16  ;;  %v1345_v11 = vmul.f32 %v4159_v29, %v4830_v23  ;;  %v1387_v15 = vmul.f32 %v4135_v0, %v4850_v17 }
 0x1db   : > { %v3008_v9 = vadd.f32 %v2960_v48, %v2912_v55  ;;  %v1077_v59 = vsel %vm569_vm0, %v1075_v46, %v1076_v54  ;;  %v1388_v38 = vmul.f32 %v4135_v0, %v4852_v61  ;;  %v1608_v36 = vmul.f32 %v4156_v27, %v4872_v63 }
 0x1dc   : > { %v3062_v12 = vadd.f32 %v4837_v10, %v3007_v34  ;;  %v3109_v57 = vmax.f32 %v3061_v18, 0.0  ;;  %v5020_v8 = vunpack.c.l.bf16 %v1077_v59  ;;  %v5022_v42 = vunpack.c.h.bf16 %v1077_v59 }
 0x1dd   : > { %v3063_v5 = vadd.f32 %v4837_v10, %v3008_v9  ;;  %v1460_v2 = vrot.slane %v1387_v15, 1  ;;  %v1461_v23 = vrot.slane %v1388_v38, 1  ;;  %v1609_v17 = vmul.f32 %v4156_v27, %v4874_v14 }
 0x1de   : > { %v3110_v58 = vmax.f32 %v3062_v12, 0.0  ;;  %v3157_v47 = vmin.f32 %v3109_v57, 6.0  ;;  %v1610_v61 = vmul.f32 %v4156_v27, %v4869_v6  ;;  %v1721_v14 = vrot.slane %v1608_v36, 2 }
 0x1df   : > { %v3111_v62 = vmax.f32 %v3063_v5, 0.0  ;;  %v920_v1 = vld [vmem:[#allocation2 + $0xa0] sm:$0xf8]  ;;  %v1163_v32 = vld [vmem:[#allocation2 + $0xa8] sm:$0x1f]  ;;  %v1462_v39 = vsel %vm1435_vm10, %v1460_v2, %v1461_v23  ;;  %v1556_v49 = vadd.f32 %v1460_v2, %v1343_v37  ;;  %v1558_v4 = vadd.f32 %v1461_v23, %v1345_v11 }
 0x1e0   : > { %v3158_v3 = vmin.f32 %v3110_v58, 6.0  ;;  %v3268_v52 = vrot.slane %v3157_v47, 7  ;;  %v5032_v20 = vunpack.c.l.bf16 %v920_v1  ;;  %v5034_v63 = vunpack.c.h.bf16 %v920_v1 }
 0x1e1   : > { %v3159_v25 = vmin.f32 %v3111_v62, 6.0  ;;  %v1209_v48 = vrot.slane %v1163_v32, 4  ;;  %v1557_v28 = vadd.f32 %v1462_v39, %v1344_v41  ;;  %v1722_v26 = vrot.slane %v1609_v17, 2 }
 0x1e2   : > { %v3269_v51 = vrot.slane %v3158_v3, 7  ;;  %v1724_v6 = vrot.slane %v1610_v61, 2  ;;  %v1885_v50 = vmul.f32 %v4181_v7, %v4946_v43  ;;  %v1833_v37 = vadd.f32 %v1721_v14, %v1556_v49 }
 0x1e3   : > { %v3271_v16 = vrot.slane %v3159_v25, 7  ;;  %v1210_v55 = vsel %vm569_vm0, %v1075_v46, %v1209_v48  ;;  %v5039_v54 = vunpack.c.l.bf16 %v1209_v48  ;;  %v1723_v41 = vsel %vm1680_vm12, %v1721_v14, %v1722_v26 }
 0x1e4   : > { %v3270_v34 = vsel %vm3232_vm13, %v3268_v52, %v3269_v51  ;;  %v5042_v18 = vunpack.c.l.bf16 %v1210_v55  ;;  %v5044_v11 = vunpack.c.h.bf16 %v1210_v55  ;;  %v1725_v59 = vsel %vm1680_vm12, %v1722_v26, %v1724_v6 }
 0x1e5   : > { %v3272_v9 = vsel %vm3232_vm13, %v3269_v51, %v3271_v16  ;;  %v1834_v15 = vadd.f32 %v1723_v41, %v1557_v28  ;;  %v1886_v38 = vmul.f32 %v4181_v7, %v4948_v31  ;;  %v1835_v12 = vadd.f32 %v1725_v59, %v1558_v4  ;;  %v322_v59 = vld [vmem:[#allocation2 + $0xb0] sm:$0x8] }
 0x1e6   : > { %v3352_v46 = vpack.c.bf16 %v3272_v9, %v3270_v34  ;;  %v1887_v57 = vmul.f32 %v4181_v7, %v4920_v60  ;;  %v1929_v5 = vmul.f32 %v4191_v21, %v4940_v13  ;;  %v1930_v2 = vmul.f32 %v4191_v21, %v4942_v44 }
 0x1e7   : > { %v2149_v23 = vmul.f32 %v4194_v22, %v4954_v33  ;;  %v2150_v36 = vmul.f32 %v4194_v22, %v4956_v56  ;;  %v2151_v58 = vmul.f32 %v4194_v22, %v4952_v53  ;;  %v2425_v17 = vmul.f32 %v4200_v30, %v5032_v20 }
 0x1e8   : > { %3896 = vmatmul.mubr.msk.bf16.gmra.mrb[12].mxu1 %vm280_vm2, %v3352_v46  ;;  %v2001_v47 = vrot.slane %v1929_v5, 1  ;;  %v2426_v61 = vmul.f32 %v4200_v30, %v5034_v63  ;;  %v2427_v62 = vmul.f32 %v4200_v30, %v5005_v35  ;;  %v2002_v1 = vrot.slane %v1930_v2, 1 }
 0x1e9   : > { %v2261_v32 = vrot.slane %v2149_v23, 2  ;;  %v2262_v39 = vrot.slane %v2150_v36, 2  ;;  %v2264_v49 = vrot.slane %v2151_v58, 2  ;;  %v2469_v3 = vmul.f32 %v4213_v45, %v5020_v8  ;;  %v379_v23 = vld [vmem:[#allocation2 + $0xb8] sm:$0x10] }
 0x1ea   : > { %v2097_v4 = vadd.f32 %v2001_v47, %v1885_v50  ;;  %v2470_v52 = vmul.f32 %v4213_v45, %v5022_v42  ;;  %v2689_v25 = vmul.f32 %v4209_v40, %v5042_v18  ;;  %v2003_v48 = vsel %vm1435_vm10, %v2001_v47, %v2002_v1  ;;  %v923_v36 = vld [vmem:[#allocation2 + $0xb8] sm:$0xf] }
 0x1eb   : > { %v2099_v28 = vadd.f32 %v2002_v1, %v1887_v57  ;;  %v2263_v14 = vsel %vm1680_vm12, %v2261_v32, %v2262_v39  ;;  %v2265_v51 = vsel %vm1680_vm12, %v2262_v39, %v2264_v49  ;;  %v2098_v26 = vadd.f32 %v2003_v48, %v1886_v38 }
 0x1ec   : > { %v2373_v6 = vadd.f32 %v2261_v32, %v2097_v4  ;;  %v2541_v16 = vrot.slane %v2469_v3, 1  ;;  %v2542_v50 = vrot.slane %v2470_v52, 1  ;;  %v2690_v34 = vmul.f32 %v4209_v40, %v5044_v11  ;;  %v1001_v32 = vld [vmem:[#allocation2 + $0xb0] sm:$0xf0] }
 0x1ed   : > { %v2375_v55 = vadd.f32 %v2265_v51, %v2099_v28  ;;  %v2691_v41 = vmul.f32 %v4209_v40, %v5039_v54  ;;  %v2801_v9 = vrot.slane %v2689_v25, 2  ;;  %v2374_v46 = vadd.f32 %v2263_v14, %v2098_v26 }
 0x1ee   : > { %v2543_v57 = vsel %vm1435_vm10, %v2541_v16, %v2542_v50  ;;  %v2637_v5 = vadd.f32 %v2541_v16, %v2425_v17  ;;  %v2639_v2 = vadd.f32 %v2542_v50, %v2427_v62  ;;  %v2802_v58 = vrot.slane %v2690_v34, 2 }
 0x1ef   : > { %v2638_v38 = vadd.f32 %v2543_v57, %v2426_v61  ;;  %v2804_v47 = vrot.slane %v2691_v41, 2  ;;  %v2961_v1 = vadd.f32 %v2373_v6, %v1833_v37  ;;  %v2962_v49 = vadd.f32 %v2374_v46, %v1834_v15 }
 0x1f0   : > { %v2913_v39 = vadd.f32 %v2801_v9, %v2637_v5  ;;  %v2963_v4 = vadd.f32 %v2375_v55, %v1835_v12  ;;  %v323_v3 = vsel %vm4086_vm7, 0, %v322_v59  ;;  %v2803_v52 = vsel %vm1680_vm12, %v2801_v9, %v2802_v58 }
 0x1f1   : > { %v2805_v25 = vsel %vm1680_vm12, %v2802_v58, %v2804_v47  ;;  %324 = vst [vmem:[#allocation2 + $0xb0] sm:$0x8] %v323_v3  ;;  %v380_v17 = vsel %vm4092_vm8, 0, %v379_v23  ;;  %v5090_v62 = vunpack.c.l.bf16 %v923_v36  ;;  %v2914_v61 = vadd.f32 %v2803_v52, %v2638_v38 }
 0x1f2   : > { %v2915_v48 = vadd.f32 %v2805_v25, %v2639_v2  ;;  %v3009_v37 = vadd.f32 %v2961_v1, %v2913_v39  ;;  %381 = vst [vmem:[#allocation2 + $0xb8] sm:$0x10] %v380_v17  ;;  %v1078_v28 = vrot.slane %v1001_v32, 4  ;;  %v1079_v15 = vrot.slane %v923_v36, 4 }
 0x1f3   : > { %v1346_v12 = vmul.f32 %v4159_v29, %v4946_v43  ;;  %v1347_v14 = vmul.f32 %v4159_v29, %v4948_v31  ;;  %v1348_v51 = vmul.f32 %v4159_v29, %v4920_v60  ;;  %v3010_v26 = vadd.f32 %v2962_v49, %v2914_v61 }
 0x1f4   : > { %v3011_v6 = vadd.f32 %v2963_v4, %v2915_v48  ;;  %v3064_v16 = vadd.f32 %v4837_v10, %v3009_v37  ;;  %v1389_v50 = vmul.f32 %v4135_v0, %v4940_v13  ;;  %v1080_v55 = vsel %vm569_vm0, %v1078_v28, %v1079_v15 }
 0x1f5   : > { %v1390_v34 = vmul.f32 %v4135_v0, %v4942_v44  ;;  %v1611_v43 = vmul.f32 %v4156_v27, %v4954_v33  ;;  %v1612_v31 = vmul.f32 %v4156_v27, %v4956_v56  ;;  %v3065_v60 = vadd.f32 %v4837_v10, %v3010_v26 }
 0x1f6   : > { %v3066_v41 = vadd.f32 %v4837_v10, %v3011_v6  ;;  %v3112_v9 = vmax.f32 %v3064_v16, 0.0  ;;  %v5110_v59 = vunpack.c.l.bf16 %v1080_v55  ;;  %v5112_v46 = vunpack.c.h.bf16 %v1080_v55 }
 0x1f7   : > { %v1463_v13 = vrot.slane %v1389_v50, 1  ;;  %v1464_v57 = vrot.slane %v1390_v34, 1  ;;  %v1613_v44 = vmul.f32 %v4156_v27, %v4952_v53  ;;  %v3113_v5 = vmax.f32 %v3065_v60, 0.0 }
 0x1f8   : > { %v3114_v2 = vmax.f32 %v3066_v41, 0.0  ;;  %v3160_v33 = vmin.f32 %v3112_v9, 6.0  ;;  %v922_v23 = vld [vmem:[#allocation2 + $0xb0] sm:$0xf8]  ;;  %v1726_v36 = vrot.slane %v1611_v43, 2  ;;  %v1727_v53 = vrot.slane %v1612_v31, 2 }
 0x1f9   : > { %v5116_v56 = vunpack.c.l.bf16 %v922_v23  ;;  %v5118_v38 = vunpack.c.h.bf16 %v922_v23  ;;  %v1164_v58 = vld [vmem:[#allocation2 + $0xb8] sm:$0x1f]  ;;  %v1465_v47 = vsel %vm1435_vm10, %v1463_v13, %v1464_v57  ;;  %v1559_v1 = vadd.f32 %v1463_v13, %v1346_v12 }
 0x1fa   : > { %v3161_v32 = vmin.f32 %v3113_v5, 6.0  ;;  %v3162_v39 = vmin.f32 %v3114_v2, 6.0  ;;  %v3273_v49 = vrot.slane %v3160_v33, 7  ;;  %v1211_v4 = vrot.slane %v1164_v58, 4 }
 0x1fb   : > { %v1560_v3 = vadd.f32 %v1465_v47, %v1347_v14  ;;  %v1561_v52 = vadd.f32 %v1464_v57, %v1348_v51  ;;  %v1729_v25 = vrot.slane %v1613_v44, 2  ;;  %v1728_v12 = vsel %vm1680_vm12, %v1726_v36, %v1727_v53 }
 0x1fc   : > { %v3274_v17 = vrot.slane %v3161_v32, 7  ;;  %v3276_v61 = vrot.slane %v3162_v39, 7  ;;  %v1212_v48 = vsel %vm569_vm0, %v1078_v28, %v1211_v4  ;;  %v5122_v37 = vunpack.c.l.bf16 %v1211_v4 }
 0x1fd   : > { %v5124_v15 = vunpack.c.l.bf16 %v1212_v48  ;;  %v5126_v26 = vunpack.c.h.bf16 %v1212_v48  ;;  %v1730_v6 = vsel %vm1680_vm12, %v1727_v53, %v1729_v25  ;;  %v1836_v51 = vadd.f32 %v1726_v36, %v1559_v1 }
 0x1fe   : > { %v3275_v16 = vsel %vm3232_vm13, %v3273_v49, %v3274_v17  ;;  %v3277_v14 = vsel %vm3232_vm13, %v3274_v17, %v3276_v61  ;;  %v1837_v50 = vadd.f32 %v1728_v12, %v1560_v3  ;;  %v1838_v34 = vadd.f32 %v1730_v6, %v1561_v52 }
 0x1ff   : > { %v3353_v55 = vpack.c.bf16 %v3277_v14, %v3275_v16  ;;  %v1888_v28 = vmul.f32 %v4181_v7, %v5032_v20  ;;  %v1889_v43 = vmul.f32 %v4181_v7, %v5034_v63  ;;  %v1890_v31 = vmul.f32 %v4181_v7, %v5005_v35 }
 0x200   : > { %v1931_v60 = vmul.f32 %v4191_v21, %v5020_v8  ;;  %v1932_v41 = vmul.f32 %v4191_v21, %v5022_v42  ;;  %v2152_v9 = vmul.f32 %v4194_v22, %v5042_v18  ;;  %v2153_v13 = vmul.f32 %v4194_v22, %v5044_v11 }
 0x201   : > { %3899 = vmatprep.mubr.msk.bf16.mxu1 %vm280_vm2, %v3353_v55  ;;  %v2154_v57 = vmul.f32 %v4194_v22, %v5039_v54  ;;  %v2428_v44 = vmul.f32 %v4200_v30, %v5116_v56  ;;  %v2429_v5 = vmul.f32 %v4200_v30, %v5118_v38  ;;  %v2430_v36 = vmul.f32 %v4200_v30, %v5090_v62 }
 0x202   : > { %v2004_v2 = vrot.slane %v1931_v60, 1  ;;  %v2005_v33 = vrot.slane %v1932_v41, 1  ;;  %v2266_v23 = vrot.slane %v2152_v9, 2  ;;  %v2267_v58 = vrot.slane %v2153_v13, 2  ;;  %v382_v60 = vld [vmem:[#allocation2 + $0xc8] sm:$0x10] }
 0x203   : > { %v2269_v47 = vrot.slane %v2154_v57, 2  ;;  %v2471_v1 = vmul.f32 %v4213_v45, %v5110_v59  ;;  %v2472_v32 = vmul.f32 %v4213_v45, %v5112_v46  ;;  %v2692_v3 = vmul.f32 %v4209_v40, %v5124_v15  ;;  %v925_v57 = vld [vmem:[#allocation2 + $0xc8] sm:$0xf] }
 0x204   : > { %v2006_v39 = vsel %vm1435_vm10, %v2004_v2, %v2005_v33  ;;  %v2100_v49 = vadd.f32 %v2004_v2, %v1888_v28  ;;  %v2102_v4 = vadd.f32 %v2005_v33, %v1890_v31  ;;  %v2268_v53 = vsel %vm1680_vm12, %v2266_v23, %v2267_v58  ;;  %v325_v31 = vld [vmem:[#allocation2 + $0xc0] sm:$0x8] }
 0x205   : > { %v2101_v52 = vadd.f32 %v2006_v39, %v1889_v43  ;;  %v2270_v25 = vsel %vm1680_vm12, %v2267_v58, %v2269_v47  ;;  %v2544_v17 = vrot.slane %v2471_v1, 1  ;;  %v2545_v12 = vrot.slane %v2472_v32, 1  ;;  %v1002_v47 = vld [vmem:[#allocation2 + $0xc0] sm:$0xf0] }
 0x206   : > { %v2376_v61 = vadd.f32 %v2266_v23, %v2100_v49  ;;  %v2378_v48 = vadd.f32 %v2270_v25, %v2102_v4  ;;  %v2693_v6 = vmul.f32 %v4209_v40, %v5126_v26  ;;  %v2694_v55 = vmul.f32 %v4209_v40, %v5122_v37 }
 0x207   : > { %v2377_v16 = vadd.f32 %v2268_v53, %v2101_v52  ;;  %v2640_v14 = vadd.f32 %v2544_v17, %v2428_v44  ;;  %v2806_v28 = vrot.slane %v2692_v3, 2  ;;  %v2546_v43 = vsel %vm1435_vm10, %v2544_v17, %v2545_v12 }
 0x208   : > { %v2642_v41 = vadd.f32 %v2545_v12, %v2430_v36  ;;  %v2807_v9 = vrot.slane %v2693_v6, 2  ;;  %v2964_v13 = vadd.f32 %v2376_v61, %v1836_v51  ;;  %v2641_v2 = vadd.f32 %v2546_v43, %v2429_v5 }
 0x209   : > { %v2809_v33 = vrot.slane %v2694_v55, 2  ;;  %v2916_v23 = vadd.f32 %v2806_v28, %v2640_v14  ;;  %v2965_v58 = vadd.f32 %v2377_v16, %v1837_v50  ;;  %v2966_v44 = vadd.f32 %v2378_v48, %v1838_v34 }
 0x20a   : > { %v2808_v1 = vsel %vm1680_vm12, %v2806_v28, %v2807_v9  ;;  %v326_v32 = vsel %vm4086_vm7, 0, %v325_v31  ;;  %v383_v39 = vsel %vm4092_vm8, 0, %v382_v60  ;;  %v5175_v51 = vunpack.c.l.bf16 %v925_v57 }
 0x20b   : > { %v2810_v49 = vsel %vm1680_vm12, %v2807_v9, %v2809_v33  ;;  %v2917_v36 = vadd.f32 %v2808_v1, %v2641_v2  ;;  %v3012_v4 = vadd.f32 %v2964_v13, %v2916_v23  ;;  %327 = vst [vmem:[#allocation2 + $0xc0] sm:$0x8] %v326_v32  ;;  %384 = vst [vmem:[#allocation2 + $0xc8] sm:$0x10] %v383_v39  ;;  %v1081_v50 = vrot.slane %v1002_v47, 4 }
 0x20c   : > { %v2918_v5 = vadd.f32 %v2810_v49, %v2642_v41  ;;  %v1082_v3 = vrot.slane %v925_v57, 4  ;;  %v1349_v34 = vmul.f32 %v4159_v29, %v5032_v20  ;;  %v1350_v25 = vmul.f32 %v4159_v29, %v5034_v63 }
 0x20d   : > { %v3013_v52 = vadd.f32 %v2965_v58, %v2917_v36  ;;  %v3067_v53 = vadd.f32 %v4837_v10, %v3012_v4  ;;  %v1351_v17 = vmul.f32 %v4159_v29, %v5005_v35  ;;  %v1391_v12 = vmul.f32 %v4135_v0, %v5020_v8 }
 0x20e   : > { %v3014_v61 = vadd.f32 %v2966_v44, %v2918_v5  ;;  %v1083_v48 = vsel %vm569_vm0, %v1081_v50, %v1082_v3  ;;  %v1392_v6 = vmul.f32 %v4135_v0, %v5022_v42  ;;  %v1614_v31 = vmul.f32 %v4156_v27, %v5042_v18 }
 0x20f   : > { %v3068_v20 = vadd.f32 %v4837_v10, %v3013_v52  ;;  %v3115_v16 = vmax.f32 %v3067_v53, 0.0  ;;  %v5190_v14 = vunpack.c.l.bf16 %v1083_v48  ;;  %v5192_v55 = vunpack.c.h.bf16 %v1083_v48 }
 0x210   : > { %v3069_v63 = vadd.f32 %v4837_v10, %v3014_v61  ;;  %v1466_v28 = vrot.slane %v1391_v12, 1  ;;  %v1467_v35 = vrot.slane %v1392_v6, 1  ;;  %v1615_v8 = vmul.f32 %v4156_v27, %v5044_v11 }
 0x211   : > { %v3116_v60 = vmax.f32 %v3068_v20, 0.0  ;;  %v3163_v43 = vmin.f32 %v3115_v16, 6.0  ;;  %v1616_v42 = vmul.f32 %v4156_v27, %v5039_v54  ;;  %v1731_v11 = vrot.slane %v1614_v31, 2 }
 0x212   : > { %v3117_v41 = vmax.f32 %v3069_v63, 0.0  ;;  %v924_v9 = vld [vmem:[#allocation2 + $0xc0] sm:$0xf8]  ;;  %v1165_v13 = vld [vmem:[#allocation2 + $0xc8] sm:$0x1f]  ;;  %v1468_v57 = vsel %vm1435_vm10, %v1466_v28, %v1467_v35  ;;  %v1562_v2 = vadd.f32 %v1466_v28, %v1349_v34  ;;  %v1564_v10 = vadd.f32 %v1467_v35, %v1351_v17 }
 0x213   : > { %v3164_v33 = vmin.f32 %v3116_v60, 6.0  ;;  %v3278_v23 = vrot.slane %v3163_v43, 7  ;;  %v5202_v58 = vunpack.c.l.bf16 %v924_v9  ;;  %v5204_v18 = vunpack.c.h.bf16 %v924_v9 }
 0x214   : > { %v3165_v47 = vmin.f32 %v3117_v41, 6.0  ;;  %v1213_v1 = vrot.slane %v1165_v13, 4  ;;  %v1563_v44 = vadd.f32 %v1468_v57, %v1350_v25  ;;  %v1732_v39 = vrot.slane %v1615_v8, 2 }
 0x215   : > { %v3279_v32 = vrot.slane %v3164_v33, 7  ;;  %v1734_v54 = vrot.slane %v1616_v42, 2  ;;  %v1891_v49 = vmul.f32 %v4181_v7, %v5116_v56  ;;  %v1839_v3 = vadd.f32 %v1731_v11, %v1562_v2 }
 0x216   : > { %v3281_v36 = vrot.slane %v3165_v47, 7  ;;  %v1214_v4 = vsel %vm569_vm0, %v1081_v50, %v1213_v1  ;;  %v5209_v5 = vunpack.c.l.bf16 %v1213_v1  ;;  %v1733_v25 = vsel %vm1680_vm12, %v1731_v11, %v1732_v39 }
 0x217   : > { %v3280_v34 = vsel %vm3232_vm13, %v3278_v23, %v3279_v32  ;;  %v5212_v52 = vunpack.c.l.bf16 %v1214_v4  ;;  %v5214_v53 = vunpack.c.h.bf16 %v1214_v4  ;;  %v1735_v61 = vsel %vm1680_vm12, %v1732_v39, %v1734_v54 }
 0x218   : > { %v3282_v17 = vsel %vm3232_vm13, %v3279_v32, %v3281_v36  ;;  %v1840_v48 = vadd.f32 %v1733_v25, %v1563_v44  ;;  %v1892_v12 = vmul.f32 %v4181_v7, %v5118_v38  ;;  %v1841_v6 = vadd.f32 %v1735_v61, %v1564_v10 }
 0x219   : > { %v3354_v50 = vpack.c.bf16 %v3282_v17, %v3280_v34  ;;  %v1893_v20 = vmul.f32 %v4181_v7, %v5090_v62  ;;  %v1933_v16 = vmul.f32 %v4191_v21, %v5110_v59  ;;  %v1934_v63 = vmul.f32 %v4191_v21, %v5112_v46  ;;  %v328_v17 = vld [vmem:[#allocation2 + $0xd0] sm:$0x8] }
 0x21a   : > { %v2155_v28 = vmul.f32 %v4194_v22, %v5124_v15  ;;  %v2156_v35 = vmul.f32 %v4194_v22, %v5126_v26  ;;  %v2157_v31 = vmul.f32 %v4194_v22, %v5122_v37  ;;  %v2431_v43 = vmul.f32 %v4200_v30, %v5202_v58 }
 0x21b   : > { %3900 = vmatmul.mubr.msk.bf16.gmra.mrb[16].mxu1 %vm280_vm2, %v3354_v50  ;;  %v2007_v60 = vrot.slane %v1933_v16, 1  ;;  %v2432_v8 = vmul.f32 %v4200_v30, %v5204_v18  ;;  %v2433_v42 = vmul.f32 %v4200_v30, %v5175_v51  ;;  %v2008_v41 = vrot.slane %v1934_v63, 1  ;;  %v385_v63 = vld [vmem:[#allocation2 + $0xd8] sm:$0x10] }
 0x21c   : > { %v2271_v9 = vrot.slane %v2155_v28, 2  ;;  %v2272_v13 = vrot.slane %v2156_v35, 2  ;;  %v2274_v57 = vrot.slane %v2157_v31, 2  ;;  %v2473_v10 = vmul.f32 %v4213_v45, %v5190_v14  ;;  %v927_v28 = vld [vmem:[#allocation2 + $0xd8] sm:$0xf] }
 0x21d   : > { %v2103_v2 = vadd.f32 %v2007_v60, %v1891_v49  ;;  %v2474_v33 = vmul.f32 %v4213_v45, %v5192_v55  ;;  %v2695_v23 = vmul.f32 %v4209_v40, %v5212_v52  ;;  %v2009_v47 = vsel %vm1435_vm10, %v2007_v60, %v2008_v41 }
 0x21e   : > { %v2105_v1 = vadd.f32 %v2008_v41, %v1893_v20  ;;  %v2273_v44 = vsel %vm1680_vm12, %v2271_v9, %v2272_v13  ;;  %v2275_v11 = vsel %vm1680_vm12, %v2272_v13, %v2274_v57  ;;  %v2104_v32 = vadd.f32 %v2009_v47, %v1892_v12  ;;  %v1003_v41 = vld [vmem:[#allocation2 + $0xd0] sm:$0xf0] }
 0x21f   : > { %v2379_v39 = vadd.f32 %v2271_v9, %v2103_v2  ;;  %v2547_v54 = vrot.slane %v2473_v10, 1  ;;  %v2548_v49 = vrot.slane %v2474_v33, 1  ;;  %v2696_v4 = vmul.f32 %v4209_v40, %v5214_v53 }
 0x220   : > { %v2381_v36 = vadd.f32 %v2275_v11, %v2105_v1  ;;  %v2697_v34 = vmul.f32 %v4209_v40, %v5209_v5  ;;  %v2811_v25 = vrot.slane %v2695_v23, 2  ;;  %v2380_v61 = vadd.f32 %v2273_v44, %v2104_v32 }
 0x221   : > { %v2549_v50 = vsel %vm1435_vm10, %v2547_v54, %v2548_v49  ;;  %v2643_v20 = vadd.f32 %v2547_v54, %v2431_v43  ;;  %v2645_v16 = vadd.f32 %v2548_v49, %v2433_v42  ;;  %v2812_v35 = vrot.slane %v2696_v4, 2 }
 0x222   : > { %v2644_v12 = vadd.f32 %v2549_v50, %v2432_v8  ;;  %v2814_v31 = vrot.slane %v2697_v34, 2  ;;  %v2967_v60 = vadd.f32 %v2379_v39, %v1839_v3  ;;  %v2968_v13 = vadd.f32 %v2380_v61, %v1840_v48  ;;  %v5271_v39 = vld [vmem:[%s5863_s4] ss:$0 sm:$0xff] }
 0x223   : > { %v2919_v9 = vadd.f32 %v2811_v25, %v2643_v20  ;;  %v2969_v57 = vadd.f32 %v2381_v36, %v1841_v6  ;;  %v329_v2 = vsel %vm4086_vm7, 0, %v328_v17  ;;  %v2813_v10 = vsel %vm1680_vm12, %v2811_v25, %v2812_v35 }
 0x224   : > { %v2815_v33 = vsel %vm1680_vm12, %v2812_v35, %v2814_v31  ;;  %330 = vst [vmem:[#allocation2 + $0xd0] sm:$0x8] %v329_v2  ;;  %v386_v43 = vsel %vm4092_vm8, 0, %v385_v63  ;;  %v5260_v42 = vunpack.c.l.bf16 %v927_v28  ;;  %v2920_v8 = vadd.f32 %v2813_v10, %v2644_v12 }
 0x225   : > { %v2921_v23 = vadd.f32 %v2815_v33, %v2645_v16  ;;  %v3015_v3 = vadd.f32 %v2967_v60, %v2919_v9  ;;  %387 = vst [vmem:[#allocation2 + $0xd8] sm:$0x10] %v386_v43  ;;  %v1084_v47 = vrot.slane %v1003_v41, 4  ;;  %v1085_v48 = vrot.slane %v927_v28, 4 }
 0x226   : > { %v1352_v6 = vmul.f32 %v4159_v29, %v5116_v56  ;;  %v1353_v1 = vmul.f32 %v4159_v29, %v5118_v38  ;;  %v1354_v44 = vmul.f32 %v4159_v29, %v5090_v62  ;;  %v3016_v11 = vadd.f32 %v2968_v13, %v2920_v8 }
 0x227   : > { %v3017_v32 = vadd.f32 %v2969_v57, %v2921_v23  ;;  %v3070_v54 = vadd.f32 %v5271_v39, %v3015_v3  ;;  %v1393_v49 = vmul.f32 %v4135_v0, %v5110_v59  ;;  %v1086_v56 = vsel %vm569_vm0, %v1084_v47, %v1085_v48 }
 0x228   : > { %v1394_v38 = vmul.f32 %v4135_v0, %v5112_v46  ;;  %v1617_v62 = vmul.f32 %v4156_v27, %v5124_v15  ;;  %v1618_v36 = vmul.f32 %v4156_v27, %v5126_v26  ;;  %v3071_v4 = vadd.f32 %v5271_v39, %v3016_v11 }
 0x229   : > { %v3072_v34 = vadd.f32 %v5271_v39, %v3017_v32  ;;  %v3118_v25 = vmax.f32 %v3070_v54, 0.0  ;;  %v5285_v17 = vunpack.c.l.bf16 %v1086_v56  ;;  %v5287_v61 = vunpack.c.h.bf16 %v1086_v56 }
 0x22a   : > { %v1469_v59 = vrot.slane %v1393_v49, 1  ;;  %v1470_v50 = vrot.slane %v1394_v38, 1  ;;  %v1619_v46 = vmul.f32 %v4156_v27, %v5122_v37  ;;  %v3119_v20 = vmax.f32 %v3071_v4, 0.0 }
 0x22b   : > { %v3120_v16 = vmax.f32 %v3072_v34, 0.0  ;;  %v3166_v15 = vmin.f32 %v3118_v25, 6.0  ;;  %v926_v63 = vld [vmem:[#allocation2 + $0xd0] sm:$0xf8]  ;;  %v1736_v28 = vrot.slane %v1617_v62, 2  ;;  %v1737_v37 = vrot.slane %v1618_v36, 2 }
 0x22c   : > { %v5291_v26 = vunpack.c.l.bf16 %v926_v63  ;;  %v5293_v12 = vunpack.c.h.bf16 %v926_v63  ;;  %v1166_v35 = vld [vmem:[#allocation2 + $0xd8] sm:$0x1f]  ;;  %v1471_v31 = vsel %vm1435_vm10, %v1469_v59, %v1470_v50  ;;  %v1565_v60 = vadd.f32 %v1469_v59, %v1352_v6 }
 0x22d   : > { %v3167_v41 = vmin.f32 %v3119_v20, 6.0  ;;  %v3168_v9 = vmin.f32 %v3120_v16, 6.0  ;;  %v3283_v13 = vrot.slane %v3166_v15, 7  ;;  %v1215_v57 = vrot.slane %v1166_v35, 4  ;;  %v5328_v16 = vpop.f32.mrb[0].mxu1 }
 0x22e   : > { %v1566_v2 = vadd.f32 %v1471_v31, %v1353_v1  ;;  %v1567_v10 = vadd.f32 %v1470_v50, %v1354_v44  ;;  %v1739_v33 = vrot.slane %v1619_v46, 2  ;;  %v1738_v6 = vsel %vm1680_vm12, %v1736_v28, %v1737_v37  ;;  %v5332_v31 = vpop.f32.mrb[1].mxu1 }
 0x22f   : > { %v3284_v43 = vrot.slane %v3167_v41, 7  ;;  %v3286_v8 = vrot.slane %v3168_v9, 7  ;;  %v1216_v23 = vsel %vm569_vm0, %v1084_v47, %v1215_v57  ;;  %v5297_v3 = vunpack.c.l.bf16 %v1215_v57  ;;  %v5338_v57 = vpop.f32.mrb[2].mxu1 }
 0x230   : > { %v5299_v48 = vunpack.c.l.bf16 %v1216_v23  ;;  %v5301_v11 = vunpack.c.h.bf16 %v1216_v23  ;;  %v1740_v32 = vsel %vm1680_vm12, %v1737_v37, %v1739_v33  ;;  %v1842_v44 = vadd.f32 %v1736_v28, %v1565_v60 }
 0x231   : > { %v3285_v54 = vsel %vm3232_vm13, %v3283_v13, %v3284_v43  ;;  %v3287_v1 = vsel %vm3232_vm13, %v3284_v43, %v3286_v8  ;;  %v1843_v49 = vadd.f32 %v1738_v6, %v1566_v2  ;;  %v1844_v38 = vadd.f32 %v1740_v32, %v1567_v10  ;;  %v5343_v43 = vpop.f32.mrb[3].mxu1 }
 0x232   : > { %v3355_v56 = vpack.c.bf16 %v3287_v1, %v3285_v54  ;;  %v1894_v47 = vmul.f32 %v4181_v7, %v5202_v58  ;;  %v1895_v62 = vmul.f32 %v4181_v7, %v5204_v18  ;;  %v1896_v36 = vmul.f32 %v4181_v7, %v5175_v51 }
 0x233   : > { %v1935_v4 = vmul.f32 %v4191_v21, %v5190_v14  ;;  %v1936_v34 = vmul.f32 %v4191_v21, %v5192_v55  ;;  %v2158_v25 = vmul.f32 %v4194_v22, %v5212_v52  ;;  %v2159_v59 = vmul.f32 %v4194_v22, %v5214_v53 }
 0x234   : > { %3903 = vmatprep.mubr.msk.bf16.mxu1 %vm280_vm2, %v3355_v56  ;;  %v2160_v50 = vmul.f32 %v4194_v22, %v5209_v5  ;;  %v2434_v46 = vmul.f32 %v4200_v30, %v5291_v26  ;;  %v2435_v20 = vmul.f32 %v4200_v30, %v5293_v12  ;;  %v2436_v35 = vmul.f32 %v4200_v30, %v5260_v42 }
 0x235   : > { %v2010_v15 = vrot.slane %v1935_v4, 1  ;;  %v2011_v63 = vrot.slane %v1936_v34, 1  ;;  %v2276_v28 = vrot.slane %v2158_v25, 2  ;;  %v2277_v60 = vrot.slane %v2159_v59, 2  ;;  %v331_v59 = vld [vmem:[#allocation2 + $0xe0] sm:$0x8] }
 0x236   : > { %v2279_v41 = vrot.slane %v2160_v50, 2  ;;  %v2475_v9 = vmul.f32 %v4213_v45, %v5285_v17  ;;  %v2476_v13 = vmul.f32 %v4213_v45, %v5287_v61  ;;  %v2698_v33 = vmul.f32 %v4209_v40, %v5299_v48  ;;  %v388_v50 = vld [vmem:[#allocation2 + $0xe8] sm:$0x10] }
 0x237   : > { %v2012_v2 = vsel %vm1435_vm10, %v2010_v15, %v2011_v63  ;;  %v2106_v10 = vadd.f32 %v2010_v15, %v1894_v47  ;;  %v2108_v37 = vadd.f32 %v2011_v63, %v1896_v36  ;;  %v2278_v23 = vsel %vm1680_vm12, %v2276_v28, %v2277_v60 }
 0x238   : > { %v2107_v8 = vadd.f32 %v2012_v2, %v1895_v62  ;;  %v2280_v6 = vsel %vm1680_vm12, %v2277_v60, %v2279_v41  ;;  %v2550_v32 = vrot.slane %v2475_v9, 1  ;;  %v2551_v56 = vrot.slane %v2476_v13, 1  ;;  %v929_v41 = vld [vmem:[#allocation2 + $0xe8] sm:$0xf] }
 0x239   : > { %v2382_v54 = vadd.f32 %v2276_v28, %v2106_v10  ;;  %v2384_v1 = vadd.f32 %v2280_v6, %v2108_v37  ;;  %v2699_v4 = vmul.f32 %v4209_v40, %v5301_v11  ;;  %v2700_v36 = vmul.f32 %v4209_v40, %v5297_v3  ;;  %v1004_v10 = vld [vmem:[#allocation2 + $0xe0] sm:$0xf0] }
 0x23a   : > { %v2383_v34 = vadd.f32 %v2278_v23, %v2107_v8  ;;  %v2646_v47 = vadd.f32 %v2550_v32, %v2434_v46  ;;  %v2816_v25 = vrot.slane %v2698_v33, 2  ;;  %v2552_v62 = vsel %vm1435_vm10, %v2550_v32, %v2551_v56 }
 0x23b   : > { %v2648_v15 = vadd.f32 %v2551_v56, %v2436_v35  ;;  %v2817_v63 = vrot.slane %v2699_v4, 2  ;;  %v2970_v60 = vadd.f32 %v2382_v54, %v1842_v44  ;;  %v2647_v28 = vadd.f32 %v2552_v62, %v2435_v20 }
 0x23c   : > { %v2819_v9 = vrot.slane %v2700_v36, 2  ;;  %v2922_v13 = vadd.f32 %v2816_v25, %v2646_v47  ;;  %v2971_v2 = vadd.f32 %v2383_v34, %v1843_v49  ;;  %v2972_v46 = vadd.f32 %v2384_v1, %v1844_v38 }
 0x23d   : > { %v2818_v37 = vsel %vm1680_vm12, %v2816_v25, %v2817_v63  ;;  %v332_v8 = vsel %vm4086_vm7, 0, %v331_v59  ;;  %v389_v33 = vsel %vm4092_vm8, 0, %v388_v50  ;;  %v5358_v44 = vunpack.c.l.bf16 %v929_v41 }
 0x23e   : > { %v2820_v23 = vsel %vm1680_vm12, %v2817_v63, %v2819_v9  ;;  %v2923_v35 = vadd.f32 %v2818_v37, %v2647_v28  ;;  %v3018_v6 = vadd.f32 %v2970_v60, %v2922_v13  ;;  %333 = vst [vmem:[#allocation2 + $0xe0] sm:$0x8] %v332_v8  ;;  %390 = vst [vmem:[#allocation2 + $0xe8] sm:$0x10] %v389_v33  ;;  %v1087_v49 = vrot.slane %v1004_v10, 4 }
 0x23f   : > { %v2924_v20 = vadd.f32 %v2820_v23, %v2648_v15  ;;  %v1088_v32 = vrot.slane %v929_v41, 4  ;;  %v1355_v38 = vmul.f32 %v4159_v29, %v5202_v58  ;;  %v1356_v56 = vmul.f32 %v4159_v29, %v5204_v18 }
 0x240   : > { %v3019_v54 = vadd.f32 %v2971_v2, %v2923_v35  ;;  %v3073_v1 = vadd.f32 %v5271_v39, %v3018_v6  ;;  %v1357_v4 = vmul.f32 %v4159_v29, %v5175_v51  ;;  %v1395_v36 = vmul.f32 %v4135_v0, %v5190_v14 }
 0x241   : > { %v3020_v34 = vadd.f32 %v2972_v46, %v2924_v20  ;;  %v1089_v47 = vsel %vm569_vm0, %v1087_v49, %v1088_v32  ;;  %v1396_v25 = vmul.f32 %v4135_v0, %v5192_v55  ;;  %v1620_v63 = vmul.f32 %v4156_v27, %v5212_v52 }
 0x242   : > { %v3074_v58 = vadd.f32 %v5271_v39, %v3019_v54  ;;  %v3121_v59 = vmax.f32 %v3073_v1, 0.0  ;;  %v5373_v50 = vunpack.c.l.bf16 %v1089_v47  ;;  %v5375_v62 = vunpack.c.h.bf16 %v1089_v47 }
 0x243   : > { %v3075_v18 = vadd.f32 %v5271_v39, %v3020_v34  ;;  %v1472_v15 = vrot.slane %v1395_v36, 1  ;;  %v1473_v51 = vrot.slane %v1396_v25, 1  ;;  %v1621_v14 = vmul.f32 %v4156_v27, %v5214_v53 }
 0x244   : > { %v3122_v60 = vmax.f32 %v3074_v58, 0.0  ;;  %v3169_v41 = vmin.f32 %v3121_v59, 6.0  ;;  %v1622_v55 = vmul.f32 %v4156_v27, %v5209_v5  ;;  %v1741_v53 = vrot.slane %v1620_v63, 2 }
 0x245   : > { %v3123_v28 = vmax.f32 %v3075_v18, 0.0  ;;  %v928_v9 = vld [vmem:[#allocation2 + $0xe0] sm:$0xf8]  ;;  %v1167_v13 = vld [vmem:[#allocation2 + $0xe8] sm:$0x1f]  ;;  %v1474_v2 = vsel %vm1435_vm10, %v1472_v15, %v1473_v51  ;;  %v1568_v10 = vadd.f32 %v1472_v15, %v1355_v38  ;;  %v1570_v37 = vadd.f32 %v1473_v51, %v1357_v4 }
 0x246   : > { %v3170_v46 = vmin.f32 %v3122_v60, 6.0  ;;  %v3288_v8 = vrot.slane %v3169_v41, 7  ;;  %v5385_v33 = vunpack.c.l.bf16 %v928_v9  ;;  %v5387_v52 = vunpack.c.h.bf16 %v928_v9 }
 0x247   : > { %v3171_v23 = vmin.f32 %v3123_v28, 6.0  ;;  %v1217_v35 = vrot.slane %v1167_v13, 4  ;;  %v1569_v6 = vadd.f32 %v1474_v2, %v1356_v56  ;;  %v1742_v32 = vrot.slane %v1621_v14, 2 }
 0x248   : > { %v3289_v20 = vrot.slane %v3170_v46, 7  ;;  %v1744_v5 = vrot.slane %v1622_v55, 2  ;;  %v1897_v54 = vmul.f32 %v4181_v7, %v5291_v26  ;;  %v1845_v34 = vadd.f32 %v1741_v53, %v1568_v10 }
 0x249   : > { %v3291_v1 = vrot.slane %v3171_v23, 7  ;;  %v1218_v38 = vsel %vm569_vm0, %v1087_v49, %v1217_v35  ;;  %v5392_v4 = vunpack.c.l.bf16 %v1217_v35  ;;  %v1743_v56 = vsel %vm1680_vm12, %v1741_v53, %v1742_v32 }
 0x24a   : > { %v3290_v47 = vsel %vm3232_vm13, %v3288_v8, %v3289_v20  ;;  %v5395_v36 = vunpack.c.l.bf16 %v1218_v38  ;;  %v5397_v25 = vunpack.c.h.bf16 %v1218_v38  ;;  %v1745_v59 = vsel %vm1680_vm12, %v1742_v32, %v1744_v5 }
 0x24b   : > { %v3292_v58 = vsel %vm3232_vm13, %v3289_v20, %v3291_v1  ;;  %v1846_v18 = vadd.f32 %v1743_v56, %v1569_v6  ;;  %v1898_v15 = vmul.f32 %v4181_v7, %v5293_v12  ;;  %v1847_v51 = vadd.f32 %v1745_v59, %v1570_v37 }
 0x24c   : > { %v3356_v49 = vpack.c.bf16 %v3292_v58, %v3290_v47  ;;  %v1899_v63 = vmul.f32 %v4181_v7, %v5260_v42  ;;  %v1937_v60 = vmul.f32 %v4191_v21, %v5285_v17  ;;  %v1938_v41 = vmul.f32 %v4191_v21, %v5287_v61 }
 0x24d   : > { %v2161_v14 = vmul.f32 %v4194_v22, %v5299_v48  ;;  %v2162_v55 = vmul.f32 %v4194_v22, %v5301_v11  ;;  %v2163_v28 = vmul.f32 %v4194_v22, %v5297_v3  ;;  %v2437_v13 = vmul.f32 %v4200_v30, %v5385_v33 }
 0x24e   : > { %3904 = vmatmul.mubr.msk.bf16.gmra.mrb[20].mxu1 %vm280_vm2, %v3356_v49  ;;  %v2013_v9 = vrot.slane %v1937_v60, 1  ;;  %v2438_v2 = vmul.f32 %v4200_v30, %v5387_v52  ;;  %v2439_v10 = vmul.f32 %v4200_v30, %v5358_v44  ;;  %v2014_v37 = vrot.slane %v1938_v41, 1 }
 0x24f   : > { %v2281_v46 = vrot.slane %v2161_v14, 2  ;;  %v2282_v8 = vrot.slane %v2162_v55, 2  ;;  %v2284_v23 = vrot.slane %v2163_v28, 2  ;;  %v2477_v6 = vmul.f32 %v4213_v45, %v5373_v50  ;;  %v334_v14 = vld [vmem:[#allocation2 + $0xf0] sm:$0x8] }
 0x250   : > { %v2109_v35 = vadd.f32 %v2013_v9, %v1897_v54  ;;  %v2478_v53 = vmul.f32 %v4213_v45, %v5375_v62  ;;  %v2701_v20 = vmul.f32 %v4209_v40, %v5395_v36  ;;  %v2015_v32 = vsel %vm1435_vm10, %v2013_v9, %v2014_v37 }
 0x251   : > { %v2111_v5 = vadd.f32 %v2014_v37, %v1899_v63  ;;  %v2283_v1 = vsel %vm1680_vm12, %v2281_v46, %v2282_v8  ;;  %v2285_v38 = vsel %vm1680_vm12, %v2282_v8, %v2284_v23  ;;  %v2110_v47 = vadd.f32 %v2015_v32, %v1898_v15  ;;  %v391_v37 = vld [vmem:[#allocation2 + $0xf8] sm:$0x10]  ;;  %v931_v8 = vld [vmem:[#allocation2 + $0xf8] sm:$0xf] }
 0x252   : > { %v2385_v56 = vadd.f32 %v2281_v46, %v2109_v35  ;;  %v2553_v58 = vrot.slane %v2477_v6, 1  ;;  %v2554_v54 = vrot.slane %v2478_v53, 1  ;;  %v2702_v49 = vmul.f32 %v4209_v40, %v5397_v25  ;;  %v1005_v6 = vld [vmem:[#allocation2 + $0xf0] sm:$0xf0] }
 0x253   : > { %v2387_v59 = vadd.f32 %v2285_v38, %v2111_v5  ;;  %v2703_v60 = vmul.f32 %v4209_v40, %v5392_v4  ;;  %v2821_v41 = vrot.slane %v2701_v20, 2  ;;  %v2386_v55 = vadd.f32 %v2283_v1, %v2110_v47 }
 0x254   : > { %v2555_v63 = vsel %vm1435_vm10, %v2553_v58, %v2554_v54  ;;  %v2649_v28 = vadd.f32 %v2553_v58, %v2437_v13  ;;  %v2651_v9 = vadd.f32 %v2554_v54, %v2439_v10  ;;  %v2822_v46 = vrot.slane %v2702_v49, 2 }
 0x255   : > { %v2650_v15 = vadd.f32 %v2555_v63, %v2438_v2  ;;  %v2824_v23 = vrot.slane %v2703_v60, 2  ;;  %v2973_v35 = vadd.f32 %v2385_v56, %v1845_v34  ;;  %v5437_v53 = vpop.f32.mrb[4].mxu1  ;;  %v2974_v5 = vadd.f32 %v2386_v55, %v1846_v18 }
 0x256   : > { %v2925_v32 = vadd.f32 %v2821_v41, %v2649_v28  ;;  %v2975_v38 = vadd.f32 %v2387_v59, %v1847_v51  ;;  %v335_v20 = vsel %vm4086_vm7, 0, %v334_v14  ;;  %v5441_v1 = vpop.f32.mrb[5].mxu1  ;;  %v2823_v13 = vsel %vm1680_vm12, %v2821_v41, %v2822_v46 }
 0x257   : > { %5888 = vst [vmem:[#allocation4_spill] sm:$0xff] %v5441_v1  ;;  %v2825_v10 = vsel %vm1680_vm12, %v2822_v46, %v2824_v23  ;;  %336 = vst [vmem:[#allocation2 + $0xf0] sm:$0x8] %v335_v20  ;;  %v392_v2 = vsel %vm4092_vm8, 0, %v391_v37  ;;  %v5447_v34 = vunpack.c.l.bf16 %v931_v8  ;;  %v5449_v47 = vpop.f32.mrb[6].mxu1  ;;  %v2926_v56 = vadd.f32 %v2823_v13, %v2650_v15 }
 0x258   : > { %5889 = vst [vmem:[#allocation5_spill] sm:$0xff] %v5449_v47  ;;  %v2927_v18 = vadd.f32 %v2825_v10, %v2651_v9  ;;  %v3021_v51 = vadd.f32 %v2973_v35, %v2925_v32  ;;  %393 = vst [vmem:[#allocation2 + $0xf8] sm:$0x10] %v392_v2  ;;  %v1090_v58 = vrot.slane %v1005_v6, 4  ;;  %v5451_v54 = vpop.f32.mrb[7].mxu1  ;;  %v1091_v59 = vrot.slane %v931_v8, 4 }
 0x259   : > { %5890 = vst [vmem:[#allocation6_spill] sm:$0xff] %v5451_v54  ;;  %v1358_v49 = vmul.f32 %v4159_v29, %v5291_v26  ;;  %v1359_v60 = vmul.f32 %v4159_v29, %v5293_v12  ;;  %v1360_v41 = vmul.f32 %v4159_v29, %v5260_v42  ;;  %v3022_v14 = vadd.f32 %v2974_v5, %v2926_v56 }
 0x25a   : > { %v3023_v55 = vadd.f32 %v2975_v38, %v2927_v18  ;;  %v3076_v63 = vadd.f32 %v5271_v39, %v3021_v51  ;;  %v1397_v28 = vmul.f32 %v4135_v0, %v5285_v17  ;;  %v1092_v9 = vsel %vm569_vm0, %v1090_v58, %v1091_v59 }
 0x25b   : > { %v1398_v37 = vmul.f32 %v4135_v0, %v5287_v61  ;;  %v1623_v26 = vmul.f32 %v4156_v27, %v5299_v48  ;;  %v1624_v12 = vmul.f32 %v4156_v27, %v5301_v11  ;;  %v3077_v42 = vadd.f32 %v5271_v39, %v3022_v14 }
 0x25c   : > { %v3078_v8 = vadd.f32 %v5271_v39, %v3023_v55  ;;  %v3124_v15 = vmax.f32 %v3076_v63, 0.0  ;;  %v5471_v46 = vunpack.c.l.bf16 %v1092_v9  ;;  %v5473_v23 = vunpack.c.h.bf16 %v1092_v9 }
 0x25d   : > { %v1475_v17 = vrot.slane %v1397_v28, 1  ;;  %v1476_v35 = vrot.slane %v1398_v37, 1  ;;  %v1625_v61 = vmul.f32 %v4156_v27, %v5297_v3  ;;  %v3125_v6 = vmax.f32 %v3077_v42, 0.0 }
 0x25e   : > { %v3126_v32 = vmax.f32 %v3078_v8, 0.0  ;;  %v3172_v48 = vmin.f32 %v3124_v15, 6.0  ;;  %v930_v5 = vld [vmem:[#allocation2 + $0xf0] sm:$0xf8]  ;;  %v1746_v38 = vrot.slane %v1623_v26, 2  ;;  %v1747_v3 = vrot.slane %v1624_v12, 2 }
 0x25f   : > { %v5477_v11 = vunpack.c.l.bf16 %v930_v5  ;;  %v5479_v20 = vunpack.c.h.bf16 %v930_v5  ;;  %v1168_v13 = vld [vmem:[#allocation2 + $0xf8] sm:$0x1f]  ;;  %v1477_v10 = vsel %vm1435_vm10, %v1475_v17, %v1476_v35  ;;  %v1571_v2 = vadd.f32 %v1475_v17, %v1358_v49 }
 0x260   : > { %v3173_v56 = vmin.f32 %v3125_v6, 6.0  ;;  %v3174_v18 = vmin.f32 %v3126_v32, 6.0  ;;  %v3293_v51 = vrot.slane %v3172_v48, 7  ;;  %v1219_v59 = vrot.slane %v1168_v13, 4 }
 0x261   : > { %v1572_v14 = vadd.f32 %v1477_v10, %v1359_v60  ;;  %v1573_v55 = vadd.f32 %v1476_v35, %v1360_v41  ;;  %v1749_v63 = vrot.slane %v1625_v61, 2  ;;  %v1748_v49 = vsel %vm1680_vm12, %v1746_v38, %v1747_v3 }
 0x262   : > { %v3294_v28 = vrot.slane %v3173_v56, 7  ;;  %v3296_v9 = vrot.slane %v3174_v18, 7  ;;  %v1220_v37 = vsel %vm569_vm0, %v1090_v58, %v1219_v59  ;;  %v5483_v26 = vunpack.c.l.bf16 %v1219_v59 }
 0x263   : > { %v5485_v42 = vunpack.c.l.bf16 %v1220_v37  ;;  %v5487_v8 = vunpack.c.h.bf16 %v1220_v37  ;;  %v1750_v15 = vsel %vm1680_vm12, %v1747_v3, %v1749_v63  ;;  %v1848_v41 = vadd.f32 %v1746_v38, %v1571_v2 }
 0x264   : > { %v3295_v17 = vsel %vm3232_vm13, %v3293_v51, %v3294_v28  ;;  %v3297_v60 = vsel %vm3232_vm13, %v3294_v28, %v3296_v9  ;;  %v1849_v12 = vadd.f32 %v1748_v49, %v1572_v14  ;;  %v1850_v61 = vadd.f32 %v1750_v15, %v1573_v55 }
 0x265   : > { %v3357_v35 = vpack.c.bf16 %v3297_v60, %v3295_v17  ;;  %v1900_v58 = vmul.f32 %v4181_v7, %v5385_v33  ;;  %v1901_v6 = vmul.f32 %v4181_v7, %v5387_v52  ;;  %v1902_v32 = vmul.f32 %v4181_v7, %v5358_v44 }
 0x266   : > { %v1939_v48 = vmul.f32 %v4191_v21, %v5373_v50  ;;  %v1940_v5 = vmul.f32 %v4191_v21, %v5375_v62  ;;  %v2164_v38 = vmul.f32 %v4194_v22, %v5395_v36  ;;  %v2165_v13 = vmul.f32 %v4194_v22, %v5397_v25 }
 0x267   : > { %3907 = vmatprep.mubr.msk.bf16.mxu1 %vm280_vm2, %v3357_v35  ;;  %v2166_v10 = vmul.f32 %v4194_v22, %v5392_v4  ;;  %v2440_v2 = vmul.f32 %v4200_v30, %v5477_v11  ;;  %v2441_v56 = vmul.f32 %v4200_v30, %v5479_v20  ;;  %v2442_v14 = vmul.f32 %v4200_v30, %v5447_v34 }
 0x268   : > { %v2016_v18 = vrot.slane %v1939_v48, 1  ;;  %v2017_v51 = vrot.slane %v1940_v5, 1  ;;  %v2286_v59 = vrot.slane %v2164_v38, 2  ;;  %v2287_v55 = vrot.slane %v2165_v13, 2 }
 0x269   : > { %v2289_v3 = vrot.slane %v2166_v10, 2  ;;  %v2479_v63 = vmul.f32 %v4213_v45, %v5471_v46  ;;  %v2480_v28 = vmul.f32 %v4213_v45, %v5473_v23  ;;  %v2704_v15 = vmul.f32 %v4209_v40, %v5485_v42 }
 0x26a   : > { %v2018_v9 = vsel %vm1435_vm10, %v2016_v18, %v2017_v51  ;;  %v2112_v37 = vadd.f32 %v2016_v18, %v1900_v58  ;;  %v2114_v49 = vadd.f32 %v2017_v51, %v1902_v32  ;;  %v2288_v60 = vsel %vm1680_vm12, %v2286_v59, %v2287_v55  ;;  %v337_v18 = vld [vmem:[#allocation2 + $0x100] sm:$0x8]  ;;  %v394_v51 = vld [vmem:[#allocation2 + $0x108] sm:$0x10] }
 0x26b   : > { %v2113_v17 = vadd.f32 %v2018_v9, %v1901_v6  ;;  %v2290_v35 = vsel %vm1680_vm12, %v2287_v55, %v2289_v3  ;;  %v2556_v48 = vrot.slane %v2479_v63, 1  ;;  %v2557_v13 = vrot.slane %v2480_v28, 1  ;;  %v5530_v3 = vld [vmem:[#allocation2 + $0x108] sm:$0xf] }
 0x26c   : > { %v2388_v5 = vadd.f32 %v2286_v59, %v2112_v37  ;;  %v2390_v38 = vadd.f32 %v2290_v35, %v2114_v49  ;;  %v2705_v10 = vmul.f32 %v4209_v40, %v5487_v8  ;;  %v2706_v58 = vmul.f32 %v4209_v40, %v5483_v26  ;;  %v1006_v49 = vld [vmem:[#allocation2 + $0x100] sm:$0xf0] }
 0x26d   : > { %v2389_v54 = vadd.f32 %v2288_v60, %v2113_v17  ;;  %v2652_v47 = vadd.f32 %v2556_v48, %v2440_v2  ;;  %v2826_v32 = vrot.slane %v2704_v15, 2  ;;  %v2558_v6 = vsel %vm1435_vm10, %v2556_v48, %v2557_v13 }
 0x26e   : > { %v2654_v9 = vadd.f32 %v2557_v13, %v2442_v14  ;;  %v2827_v1 = vrot.slane %v2705_v10, 2  ;;  %v2976_v55 = vadd.f32 %v2388_v5, %v1848_v41  ;;  %v2653_v59 = vadd.f32 %v2558_v6, %v2441_v56 }
 0x26f   : > { %v2829_v63 = vrot.slane %v2706_v58, 2  ;;  %v2928_v28 = vadd.f32 %v2826_v32, %v2652_v47  ;;  %v2977_v37 = vadd.f32 %v2389_v54, %v1849_v12  ;;  %v2978_v17 = vadd.f32 %v2390_v38, %v1850_v61 }
 0x270   : > { %v2828_v2 = vsel %vm1680_vm12, %v2826_v32, %v2827_v1  ;;  %v338_v15 = vsel %vm4086_vm7, 0, %v337_v18  ;;  %v395_v60 = vsel %vm4092_vm8, 0, %v394_v51  ;;  %v5872_v56 = vunpack.c.l.bf16 %v5530_v3 }
 0x271   : > { %v2830_v14 = vsel %vm1680_vm12, %v2827_v1, %v2829_v63  ;;  %v2929_v35 = vadd.f32 %v2828_v2, %v2653_v59  ;;  %v3024_v41 = vadd.f32 %v2976_v55, %v2928_v28  ;;  %339 = vst [vmem:[#allocation2 + $0x100] sm:$0x8] %v338_v15  ;;  %396 = vst [vmem:[#allocation2 + $0x108] sm:$0x10] %v395_v60  ;;  %v1093_v54 = vrot.slane %v1006_v49, 4 }
 0x272   : > { %v2930_v47 = vadd.f32 %v2830_v14, %v2654_v9  ;;  %v1094_v12 = vrot.slane %v5530_v3, 4  ;;  %v1361_v61 = vmul.f32 %v4159_v29, %v5385_v33  ;;  %v1362_v38 = vmul.f32 %v4159_v29, %v5387_v52 }
 0x273   : > { %v3025_v48 = vadd.f32 %v2977_v37, %v2929_v35  ;;  %v3079_v5 = vadd.f32 %v5271_v39, %v3024_v41  ;;  %v1363_v1 = vmul.f32 %v4159_v29, %v5358_v44  ;;  %v1399_v58 = vmul.f32 %v4135_v0, %v5373_v50 }
 0x274   : > { %v3026_v13 = vadd.f32 %v2978_v17, %v2930_v47  ;;  %v5548_v10 = vsel %vm569_vm0, %v1093_v54, %v1094_v12  ;;  %v1400_v32 = vmul.f32 %v4135_v0, %v5375_v62  ;;  %v1626_v55 = vmul.f32 %v4156_v27, %v5395_v36 }
 0x275   : > { %v3080_v33 = vadd.f32 %v5271_v39, %v3025_v48  ;;  %v3127_v18 = vmax.f32 %v3079_v5, 0.0  ;;  %v5871_v51 = vunpack.c.l.bf16 %v5548_v10  ;;  %v5869_v52 = vunpack.c.h.bf16 %v5548_v10 }
 0x276   : > { %v3081_v6 = vadd.f32 %v5271_v39, %v3026_v13  ;;  %v1478_v44 = vrot.slane %v1399_v58, 1  ;;  %v1479_v9 = vrot.slane %v1400_v32, 1  ;;  %v1627_v50 = vmul.f32 %v4156_v27, %v5397_v25 }
 0x277   : > { %v3128_v59 = vmax.f32 %v3080_v33, 0.0  ;;  %v3175_v63 = vmin.f32 %v3127_v18, 6.0  ;;  %v1628_v62 = vmul.f32 %v4156_v27, %v5392_v4  ;;  %v1751_v12 = vrot.slane %v1626_v55, 2 }
 0x278   : > { %v3129_v28 = vmax.f32 %v3081_v6, 0.0  ;;  %v5564_v37 = vld [vmem:[#allocation2 + $0x100] sm:$0xf8]  ;;  %v1169_v49 = vld [vmem:[#allocation2 + $0x108] sm:$0x1f]  ;;  %v1480_v2 = vsel %vm1435_vm10, %v1478_v44, %v1479_v9  ;;  %v1574_v17 = vadd.f32 %v1478_v44, %v1361_v61  ;;  %v1576_v15 = vadd.f32 %v1479_v9, %v1363_v1 }
 0x279   : > { %v3176_v60 = vmin.f32 %v3128_v59, 6.0  ;;  %v3298_v14 = vrot.slane %v3175_v63, 7  ;;  %v984_v36 = vunpack.c.l.bf16 %v5564_v37  ;;  %v985_v35 = vunpack.c.h.bf16 %v5564_v37 }
 0x27a   : > { %v3177_v41 = vmin.f32 %v3129_v28, 6.0  ;;  %v1221_v47 = vrot.slane %v1169_v49, 4  ;;  %v1575_v25 = vadd.f32 %v1480_v2, %v1362_v38  ;;  %v1752_v4 = vrot.slane %v1627_v50, 2 }
 0x27b   : > { %v3299_v48 = vrot.slane %v3176_v60, 7  ;;  %v1754_v5 = vrot.slane %v1628_v62, 2  ;;  %v1903_v13 = vmul.f32 %v4181_v7, %v5477_v11  ;;  %v1851_v32 = vadd.f32 %v1751_v12, %v1574_v17 }
 0x27c   : > { %v3301_v58 = vrot.slane %v3177_v41, 7  ;;  %v5572_v61 = vsel %vm569_vm0, %v1093_v54, %v1221_v47  ;;  %v5574_v1 = vunpack.c.l.bf16 %v1221_v47  ;;  %v1753_v6 = vsel %vm1680_vm12, %v1751_v12, %v1752_v4 }
 0x27d   : > { %v3300_v33 = vsel %vm3232_vm13, %v3298_v14, %v3299_v48  ;;  %v5870_v18 = vunpack.c.l.bf16 %v5572_v61  ;;  %v5873_v38 = vunpack.c.h.bf16 %v5572_v61  ;;  %v1755_v9 = vsel %vm1680_vm12, %v1752_v4, %v1754_v5 }
 0x27e   : > { %v3302_v44 = vsel %vm3232_vm13, %v3299_v48, %v3301_v58  ;;  %v1852_v55 = vadd.f32 %v1753_v6, %v1575_v25  ;;  %v1904_v54 = vmul.f32 %v4181_v7, %v5479_v20  ;;  %v1853_v63 = vadd.f32 %v1755_v9, %v1576_v15 }
 0x27f   : > { %v3358_v59 = vpack.c.bf16 %v3302_v44, %v3300_v33  ;;  %v1905_v50 = vmul.f32 %v4181_v7, %v5447_v34  ;;  %v1941_v62 = vmul.f32 %v4191_v21, %v5471_v46  ;;  %v1942_v28 = vmul.f32 %v4191_v21, %v5473_v23 }
 0x280   : > { %v2167_v49 = vmul.f32 %v4194_v22, %v5485_v42  ;;  %v2168_v2 = vmul.f32 %v4194_v22, %v5487_v8  ;;  %v2169_v17 = vmul.f32 %v4194_v22, %v5483_v26  ;;  %v2443_v60 = vmul.f32 %v4200_v30, %v984_v36 }
 0x281   : > { %3908 = vmatmul.mubr.msk.bf16.gmra.mrb[24].mxu1 %vm280_vm2, %v3358_v59  ;;  %v2019_v15 = vrot.slane %v1941_v62, 1  ;;  %v2444_v14 = vmul.f32 %v4200_v30, %v985_v35  ;;  %v2445_v41 = vmul.f32 %v4200_v30, %v5872_v56  ;;  %v2020_v47 = vrot.slane %v1942_v28, 1 }
 0x282   : > { %v2291_v25 = vrot.slane %v2167_v49, 2  ;;  %v2292_v12 = vrot.slane %v2168_v2, 2  ;;  %v2294_v48 = vrot.slane %v2169_v17, 2  ;;  %v2481_v5 = vmul.f32 %v4213_v45, %v5871_v51  ;;  %v340_v51 = vld [vmem:[#allocation2 + $0x110] sm:$0x8] }
 0x283   : > { %v2115_v4 = vadd.f32 %v2019_v15, %v1903_v13  ;;  %v2482_v58 = vmul.f32 %v4213_v45, %v5869_v52  ;;  %v2707_v33 = vmul.f32 %v4209_v40, %v5870_v18  ;;  %v2021_v6 = vsel %vm1435_vm10, %v2019_v15, %v2020_v47 }
 0x284   : > { %v2117_v44 = vadd.f32 %v2020_v47, %v1905_v50  ;;  %v2293_v9 = vsel %vm1680_vm12, %v2291_v25, %v2292_v12  ;;  %v2295_v59 = vsel %vm1680_vm12, %v2292_v12, %v2294_v48  ;;  %v2116_v13 = vadd.f32 %v2021_v6, %v1904_v54  ;;  %v397_v12 = vld [vmem:[#allocation2 + $0x118] sm:$0x10] }
 0x285   : > { %v2391_v62 = vadd.f32 %v2291_v25, %v2115_v4  ;;  %v2559_v28 = vrot.slane %v2481_v5, 1  ;;  %v2560_v49 = vrot.slane %v2482_v58, 1  ;;  %v2708_v17 = vmul.f32 %v4209_v40, %v5873_v38  ;;  %v1007_v5 = vld [vmem:[#allocation2 + $0x110] sm:$0xf0]  ;;  %v5628_v38 = vld [vmem:[#allocation2 + $0x118] sm:$0xf] }
 0x286   : > { %v2393_v2 = vadd.f32 %v2295_v59, %v2117_v44  ;;  %v2709_v52 = vmul.f32 %v4209_v40, %v5574_v1  ;;  %v2831_v18 = vrot.slane %v2707_v33, 2  ;;  %v2392_v15 = vadd.f32 %v2293_v9, %v2116_v13 }
 0x287   : > { %v2561_v50 = vsel %vm1435_vm10, %v2559_v28, %v2560_v49  ;;  %v2655_v47 = vadd.f32 %v2559_v28, %v2443_v60  ;;  %v2657_v56 = vadd.f32 %v2560_v49, %v2445_v41  ;;  %v2832_v25 = vrot.slane %v2708_v17, 2 }
 0x288   : > { %v2656_v54 = vadd.f32 %v2561_v50, %v2444_v14  ;;  %v2834_v48 = vrot.slane %v2709_v52, 2  ;;  %v2979_v4 = vadd.f32 %v2391_v62, %v1851_v32  ;;  %v5624_v58 = vpop.f32.mrb[8].mxu1  ;;  %v2980_v44 = vadd.f32 %v2392_v15, %v1852_v55 }
 0x289   : > { %v2931_v6 = vadd.f32 %v2831_v18, %v2655_v47  ;;  %v2981_v59 = vadd.f32 %v2393_v2, %v1853_v63  ;;  %v341_v33 = vsel %vm4086_vm7, 0, %v340_v51  ;;  %v5630_v9 = vpop.f32.mrb[9].mxu1  ;;  %v2833_v60 = vsel %vm1680_vm12, %v2831_v18, %v2832_v25 }
 0x28a   : > { %v2835_v14 = vsel %vm1680_vm12, %v2832_v25, %v2834_v48  ;;  %342 = vst [vmem:[#allocation2 + $0x110] sm:$0x8] %v341_v33  ;;  %v398_v52 = vsel %vm4092_vm8, 0, %v397_v12  ;;  %v989_v32 = vunpack.c.l.bf16 %v5628_v38  ;;  %v5637_v41 = vpop.f32.mrb[10].mxu1  ;;  %v2932_v55 = vadd.f32 %v2833_v60, %v2656_v54 }
 0x28b   : > { %v2933_v63 = vadd.f32 %v2835_v14, %v2657_v56  ;;  %v3027_v19 = vadd.f32 %v2979_v4, %v2931_v6  ;;  %399 = vst [vmem:[#allocation2 + $0x118] sm:$0x10] %v398_v52  ;;  %v1096_v51 = vrot.slane %v1007_v5, 4  ;;  %v5639_v13 = vpop.f32.mrb[11].mxu1  ;;  %v1097_v62 = vrot.slane %v5628_v38, 4 }
 0x28c   : > { %v1364_v18 = vmul.f32 %v4159_v29, %v5477_v11  ;;  %v1365_v24 = vmul.f32 %v4159_v29, %v5479_v20  ;;  %v1366_v28 = vmul.f32 %v4159_v29, %v5447_v34  ;;  %v3028_v49 = vadd.f32 %v2980_v44, %v2932_v55 }
 0x28d   : > { %v3029_v2 = vadd.f32 %v2981_v59, %v2933_v63  ;;  %v3082_v56 = vadd.f32 %v5271_v39, %v3027_v19  ;;  %v1401_v17 = vmul.f32 %v4135_v0, %v5471_v46  ;;  %v5652_v15 = vsel %vm569_vm0, %v1096_v51, %v1097_v62 }
 0x28e   : > { %v1402_v50 = vmul.f32 %v4135_v0, %v5473_v23  ;;  %v1629_v11 = vmul.f32 %v4156_v27, %v5485_v42  ;;  %v1630_v20 = vmul.f32 %v4156_v27, %v5487_v8  ;;  %v3083_v29 = vadd.f32 %v5271_v39, %v3028_v49 }
 0x28f   : > { %v3084_v34 = vadd.f32 %v5271_v39, %v3029_v2  ;;  %v3130_v47 = vmax.f32 %v3082_v56, 0.0  ;;  %v1151_v12 = vunpack.c.l.bf16 %v5652_v15  ;;  %v1152_v46 = vunpack.c.h.bf16 %v5652_v15 }
 0x290   : > { %v1481_v54 = vrot.slane %v1401_v17, 1  ;;  %v1482_v25 = vrot.slane %v1402_v50, 1  ;;  %v1631_v0 = vmul.f32 %v4156_v27, %v5483_v26  ;;  %v3131_v23 = vmax.f32 %v3083_v29, 0.0 }
 0x291   : > { %v3132_v48 = vmax.f32 %v3084_v34, 0.0  ;;  %v3178_v42 = vmin.f32 %v3130_v47, 6.0  ;;  %v934_v4 = vld [vmem:[#allocation2 + $0x110] sm:$0xf8]  ;;  %v1756_v5 = vrot.slane %v1629_v11, 2  ;;  %v1757_v19 = vrot.slane %v1630_v20, 2 }
 0x292   : > { %v987_v8 = vunpack.c.l.bf16 %v934_v4  ;;  %v988_v6 = vunpack.c.h.bf16 %v934_v4  ;;  %v1170_v44 = vld [vmem:[#allocation2 + $0x118] sm:$0x1f]  ;;  %v1483_v39 = vsel %vm1435_vm10, %v1481_v54, %v1482_v25  ;;  %v1577_v59 = vadd.f32 %v1481_v54, %v1364_v18 }
 0x293   : > { %v3179_v33 = vmin.f32 %v3131_v23, 6.0  ;;  %v3180_v60 = vmin.f32 %v3132_v48, 6.0  ;;  %v3303_v14 = vrot.slane %v3178_v42, 7  ;;  %v1223_v52 = vrot.slane %v1170_v44, 4 }
 0x294   : > { %v1578_v55 = vadd.f32 %v1483_v39, %v1365_v24  ;;  %v1579_v63 = vadd.f32 %v1482_v25, %v1366_v28  ;;  %v1759_v62 = vrot.slane %v1631_v0, 2  ;;  %v1758_v15 = vsel %vm1680_vm12, %v1756_v5, %v1757_v19 }
 0x295   : > { %v3304_v27 = vrot.slane %v3179_v33, 7  ;;  %v3306_v26 = vrot.slane %v3180_v60, 7  ;;  %v1224_v49 = vsel %vm569_vm0, %v1096_v51, %v1223_v52  ;;  %v1314_v2 = vunpack.c.l.bf16 %v1223_v52 }
 0x296   : > { %v1312_v56 = vunpack.c.l.bf16 %v1224_v49  ;;  %v1313_v17 = vunpack.c.h.bf16 %v1224_v49  ;;  %v1760_v50 = vsel %vm1680_vm12, %v1757_v19, %v1759_v62  ;;  %v1854_v29 = vadd.f32 %v1756_v5, %v1577_v59  ;;  %v5712_v62 = vld [vmem:[%s5865_s6] ss:$0 sm:$0xff] }
 0x297   : > { %v3305_v18 = vsel %vm3232_vm13, %v3303_v14, %v3304_v27  ;;  %v3307_v11 = vsel %vm3232_vm13, %v3304_v27, %v3306_v26  ;;  %v1855_v24 = vadd.f32 %v1758_v15, %v1578_v55  ;;  %v1856_v20 = vadd.f32 %v1760_v50, %v1579_v63 }
 0x298   : > { %v3359_v28 = vpack.c.bf16 %v3307_v11, %v3305_v18  ;;  %v1906_v34 = vmul.f32 %v4181_v7, %v984_v36  ;;  %v1907_v51 = vmul.f32 %v4181_v7, %v985_v35  ;;  %v5891_v47 = vunpack.c.l.bf16 %v5530_v3 }
 0x299   : > { %v5892_v25 = vunpack.c.l.bf16 %v5548_v10  ;;  %v5893_v23 = vunpack.c.h.bf16 %v5548_v10  ;;  %v5894_v42 = vunpack.c.l.bf16 %v5572_v61  ;;  %v5895_v37 = vunpack.c.h.bf16 %v5572_v61 }
 0x29a   : > { %v1908_v54 = vmul.f32 %v4181_v7, %v5891_v47  ;;  %3911 = vmatprep.mubr.msk.bf16.mxu1 %vm280_vm2, %v3359_v28  ;;  %v2172_v7 = vmul.f32 %v4194_v22, %v5574_v1  ;;  %v2446_v35 = vmul.f32 %v4200_v30, %v987_v8  ;;  %v2447_v4 = vmul.f32 %v4200_v30, %v988_v6 }
 0x29b   : > { %v1943_v0 = vmul.f32 %v4191_v21, %v5892_v25  ;;  %v1944_v48 = vmul.f32 %v4191_v21, %v5893_v23  ;;  %v2170_v36 = vmul.f32 %v4194_v22, %v5894_v42  ;;  %v2171_v3 = vmul.f32 %v4194_v22, %v5895_v37  ;;  %v3962_v23 = vld [vmem:[%s5863_s4] ss:$0 sm:$0xff] }
 0x29c   : > { %v2448_v44 = vmul.f32 %v4200_v30, %v989_v32  ;;  %v2299_v59 = vrot.slane %v2172_v7, 2  ;;  %v2483_v61 = vmul.f32 %v4213_v45, %v1151_v12  ;;  %v2484_v33 = vmul.f32 %v4213_v45, %v1152_v46  ;;  %v5896_v42 = vld [vmem:[#allocation3_spill] sm:$0xff] }
 0x29d   : > { %v2022_v10 = vrot.slane %v1943_v0, 1  ;;  %v2023_v5 = vrot.slane %v1944_v48, 1  ;;  %v2296_v21 = vrot.slane %v2170_v36, 2  ;;  %v2297_v39 = vrot.slane %v2171_v3, 2 }
 0x29e   : > { %v2710_v8 = vmul.f32 %v4209_v40, %v1312_v56  ;;  %v2562_v52 = vrot.slane %v2483_v61, 1  ;;  %v2563_v55 = vrot.slane %v2484_v33, 1  ;;  %v2711_v12 = vmul.f32 %v4209_v40, %v1313_v17  ;;  %v3964_v33 = vld [vmem:[%s4045_s8 + $0x10] sm:$0xff]  }
 0x29f   : > { %v2024_v60 = vsel %vm1435_vm10, %v2022_v10, %v2023_v5  ;;  %v2118_v22 = vadd.f32 %v2022_v10, %v1906_v34  ;;  %v2120_v1 = vadd.f32 %v2023_v5, %v1908_v54  ;;  %v2298_v14 = vsel %vm1680_vm12, %v2296_v21, %v2297_v39 }
 0x2a0   : > { %v2119_v6 = vadd.f32 %v2024_v60, %v1907_v51  ;;  %v2300_v38 = vsel %vm1680_vm12, %v2297_v39, %v2299_v59  ;;  %v2658_v45 = vadd.f32 %v2562_v52, %v2446_v35  ;;  %v2712_v46 = vmul.f32 %v4209_v40, %v1314_v2  ;;  %v3961_v2 = vld [vmem:[%s4045_s8 + $0x8] sm:$0xff]   ;;  %v3963_v35 = vld [vmem:[%s4045_s8 + $0x18] sm:$0xff]   ;;  %v5900_v60 = vld [vmem:[#allocation5_spill] sm:$0xff] }
 0x2a1   : > { %v2394_v30 = vadd.f32 %v2296_v21, %v2118_v22  ;;  %v2396_v32 = vadd.f32 %v2300_v38, %v2120_v1  ;;  %v2836_v19 = vrot.slane %v2710_v8, 2  ;;  %v2564_v27 = vsel %vm1435_vm10, %v2562_v52, %v2563_v55  ;;  %v5899_v39 = vld [vmem:[#allocation4_spill] sm:$0xff] }
 0x2a2   : > { %v2395_v63 = vadd.f32 %v2298_v14, %v2119_v6  ;;  %v2660_v26 = vadd.f32 %v2563_v55, %v2448_v44  ;;  %v2837_v49 = vrot.slane %v2711_v12, 2  ;;  %v2659_v15 = vadd.f32 %v2564_v27, %v2447_v4  ;;  %v5901_v14 = vld [vmem:[#allocation6_spill] sm:$0xff] }
 0x2a3   : > { %v2982_v56 = vadd.f32 %v2394_v30, %v1854_v29  ;;  %v2839_v50 = vrot.slane %v2712_v46, 2  ;;  %v2934_v17 = vadd.f32 %v2836_v19, %v2658_v45  ;;  %v2984_v28 = vadd.f32 %v2396_v32, %v1856_v20  ;;  %v3965_v46 = vld [vmem:[%s4045_s8 + $0x28] sm:$0xff]  }
 0x2a4   : > { %v2983_v18 = vadd.f32 %v2395_v63, %v1855_v24  ;;  %v2838_v11 = vsel %vm1680_vm12, %v2836_v19, %v2837_v49  ;;  %v3475_v40 = vadd.f32 %v5328_v16, %v5712_v62  ;;  %v3595_v34 = vunpack.c.l.bf16 %v3961_v2 }
 0x2a5   : > { %v2840_v51 = vsel %vm1680_vm12, %v2837_v49, %v2839_v50  ;;  %v2935_v47 = vadd.f32 %v2838_v11, %v2659_v15  ;;  %v3030_v54 = vadd.f32 %v2982_v56, %v2934_v17  ;;  %v3467_v29 = vadd.f32 %v5712_v62, %v5332_v31  ;;  %v3966_v56 = vld [vmem:[%s4045_s8 + $0x20] sm:$0xff]  }
 0x2a6   : > { %v2936_v24 = vadd.f32 %v2840_v51, %v2660_v26  ;;  %v3627_v20 = vadd.f32 %v3595_v34, %v3475_v40  ;;  %v3478_v16 = vadd.f32 %v5338_v57, %v5712_v62  ;;  %v3596_v25 = vunpack.c.h.bf16 %v3961_v2 }
 0x2a7   : > { %v3031_v0 = vadd.f32 %v2983_v18, %v2935_v47  ;;  %v3085_v48 = vadd.f32 %v3962_v23, %v3030_v54  ;;  %v5897_v36 = vunpack.c.l.bf16 %v5896_v42  ;;  %v3470_v31 = vadd.f32 %v5712_v62, %v5343_v43  ;;  %v3967_v54 = vld [vmem:[%s4045_s8 + $0x38] sm:$0xff]  }
 0x2a8   : > { %v3032_v3 = vadd.f32 %v2984_v28, %v2936_v24  ;;  %3659 = vst.msk [vmem:[%s5724_s11 + $0x10] sm:$0xff] %vm520_vm1, %v3627_v20  ;;  %v3628_v7 = vadd.f32 %v3596_v25, %v3478_v16  ;;  %v3491_v57 = vadd.f32 %v5437_v53, %v5712_v62  ;;  %v3599_v4 = vunpack.c.l.bf16 %v3963_v35  ;;  %v3968_v24 = vld [vmem:[%s4045_s8 + $0x30] sm:$0xff]  }
 0x2a9   : > { %v3625_v37 = vadd.f32 %v5897_v36, %v3467_v29  ;;  %v3086_v10 = vadd.f32 %v3962_v23, %v3031_v0  ;;  %v3133_v5 = vmax.f32 %v3085_v48, 0.0  ;;  %v5898_v21 = vunpack.c.h.bf16 %v5896_v42 }
 0x2aa   : > { %v3483_v43 = vadd.f32 %v5712_v62, %v5899_v39  ;;  %v3087_v59 = vadd.f32 %v3962_v23, %v3032_v3  ;;  %3660 = vst.msk [vmem:[%s5724_s11 + $0x18] sm:$0xff] %vm520_vm1, %v3628_v7  ;;  %v3631_v61 = vadd.f32 %v3599_v4, %v3491_v57  ;;  %v3597_v53 = vunpack.c.l.bf16 %v3964_v33  ;;  %v3969_v4 = vld [vmem:[%s4045_s8 + $0x48] sm:$0xff]  }
 0x2ab   : > { %3657 = vst.msk [vmem:[%s5724_s11] sm:$0xff] %vm520_vm1, %v3625_v37  ;;  %v3626_v44 = vadd.f32 %v5898_v21, %v3470_v31  ;;  %v3494_v22 = vadd.f32 %v5900_v60, %v5712_v62  ;;  %v3134_v1 = vmax.f32 %v3086_v10, 0.0  ;;  %v3181_v8 = vmin.f32 %v3133_v5, 6.0  ;;  %v3970_v21 = vld [vmem:[%s4045_s8 + $0x40] sm:$0xff]  }
 0x2ac   : > { %v3600_v6 = vunpack.c.h.bf16 %v3963_v35  ;;  %v3486_v38 = vadd.f32 %v5712_v62, %v5901_v14  ;;  %v3135_v52 = vmax.f32 %v3087_v59, 0.0  ;;  %3663 = vst.msk [vmem:[%s5724_s11 + $0x30] sm:$0xff] %vm520_vm1, %v3631_v61  ;;  %v3629_v30 = vadd.f32 %v3597_v53, %v3483_v43 }
 0x2ad   : > { %3658 = vst.msk [vmem:[%s5724_s11 + $0x8] sm:$0xff] %vm520_vm1, %v3626_v44  ;;  %v3598_v32 = vunpack.c.h.bf16 %v3964_v33  ;;  %v3507_v55 = vadd.f32 %v5624_v58, %v5712_v62  ;;  %v3182_v12 = vmin.f32 %v3134_v1, 6.0  ;;  %v3308_v63 = vrot.slane %v3181_v8, 7 }
 0x2ae   : > { %v3632_v45 = vadd.f32 %v3600_v6, %v3494_v22  ;;  %v3603_v19 = vunpack.c.l.bf16 %v3965_v46  ;;  %v3183_v27 = vmin.f32 %v3135_v52, 6.0  ;;  %3661 = vst.msk [vmem:[%s5724_s11 + $0x20] sm:$0xff] %vm520_vm1, %v3629_v30  ;;  %v3499_v49 = vadd.f32 %v5712_v62, %v5630_v9  ;;  %v3971_v52 = vld [vmem:[%s4045_s8 + $0x58] sm:$0xff]  }
 0x2af   : > { %v3630_v26 = vadd.f32 %v3598_v32, %v3486_v38  ;;  %v3601_v15 = vunpack.c.l.bf16 %v3966_v56  ;;  %v3309_v50 = vrot.slane %v3182_v12, 7  ;;  %v3510_v17 = vadd.f32 %v5637_v41, %v5712_v62 }
 0x2b0   : > { %3664 = vst.msk [vmem:[%s5724_s11 + $0x38] sm:$0xff] %vm520_vm1, %v3632_v45  ;;  %v3635_v58 = vadd.f32 %v3603_v19, %v3507_v55  ;;  %v3604_v18 = vunpack.c.h.bf16 %v3965_v46  ;;  %v3311_v11 = vrot.slane %v3183_v27, 7  ;;  %v3502_v9 = vadd.f32 %v5712_v62, %v5639_v13  ;;  %v3972_v55 = vld [vmem:[%s4045_s8 + $0x50] sm:$0xff]  }
 0x2b1   : > { %3662 = vst.msk [vmem:[%s5724_s11 + $0x28] sm:$0xff] %vm520_vm1, %v3630_v26  ;;  %v3633_v28 = vadd.f32 %v3601_v15, %v3499_v49  ;;  %v3602_v40 = vunpack.c.h.bf16 %v3966_v56  ;;  %v3310_v2 = vsel %vm3232_vm13, %v3308_v63, %v3309_v50  ;;  %v3607_v13 = vunpack.c.l.bf16 %v3967_v54 }
 0x2b2   : > { %3667 = vst.msk [vmem:[%s5724_s11 + $0x50] sm:$0xff] %vm520_vm1, %v3635_v58  ;;  %v3636_v34 = vadd.f32 %v3604_v18, %v3510_v17  ;;  %v3312_v51 = vsel %vm3232_vm13, %v3309_v50, %v3311_v11  ;;  %v3605_v20 = vunpack.c.l.bf16 %v3968_v24  ;;  %v3608_v0 = vunpack.c.h.bf16 %v3967_v54  ;;  %v3973_v11 = vld [vmem:[%s4045_s8 + $0x68] sm:$0xff]  }
 0x2b3   : > { %3665 = vst.msk [vmem:[%s5724_s11 + $0x40] sm:$0xff] %vm520_vm1, %v3633_v28  ;;  %v3634_v41 = vadd.f32 %v3602_v40, %v3502_v9  ;;  %v3360_v47 = vpack.c.bf16 %v3312_v51, %v3310_v2  ;;  %v3606_v42 = vunpack.c.h.bf16 %v3968_v24  ;;  %v3611_v10 = vunpack.c.l.bf16 %v3969_v4  ;;  %v3974_v40 = vld [vmem:[%s4045_s8 + $0x60] sm:$0xff]  }
 0x2b4   : > { %3668 = vst.msk [vmem:[%s5724_s11 + $0x58] sm:$0xff] %vm520_vm1, %v3636_v34  ;;  %v3609_v44 = vunpack.c.l.bf16 %v3970_v21  ;;  %v3612_v59 = vunpack.c.h.bf16 %v3969_v4  ;;  %v3610_v53 = vunpack.c.h.bf16 %v3970_v21  ;;  %v3615_v30 = vunpack.c.l.bf16 %v3971_v52 }
 0x2b5   : > { %3666 = vst.msk [vmem:[%s5724_s11 + $0x48] sm:$0xff] %vm520_vm1, %v3634_v41  ;;  %3912 = vmatmul.mubr.msk.bf16.gmra.mrb[28].mxu1 %vm280_vm2, %v3360_v47  ;;  %v3613_v12 = vunpack.c.l.bf16 %v3972_v55  ;;  %v3616_v46 = vunpack.c.h.bf16 %v3971_v52  ;;  %v3614_v26 = vunpack.c.h.bf16 %v3972_v55  ;;  %v3619_v28 = vunpack.c.l.bf16 %v3973_v11 }
 0x2b6   : > { %v3617_v2 = vunpack.c.l.bf16 %v3974_v40  ;;  %v3620_v41 = vunpack.c.h.bf16 %v3973_v11 }
 0x2bb   : > { %v3897_v29 = vpop.f32.mrb[12].mxu1 }
 0x2bc   : > { %v3523_v16 = vadd.f32 %v3897_v29, %v5712_v62  ;;  %v3514_v25 = vpop.f32.mrb[13].mxu1 }
 0x2bd   : > { %v3515_v23 = vadd.f32 %v5712_v62, %v3514_v25  ;;  %v3898_v48 = vpop.f32.mrb[14].mxu1 }
 0x2be   : > { %v3639_v36 = vadd.f32 %v3607_v13, %v3523_v16  ;;  %v3526_v37 = vadd.f32 %v3898_v48, %v5712_v62  ;;  %v3517_v31 = vpop.f32.mrb[15].mxu1  ;;  %v3618_v13 = vunpack.c.h.bf16 %v3974_v40  ;;  %v3975_v48 = vld [vmem:[%s4045_s8 + $0x78] sm:$0xff]  }
 0x2bf   : > { %v3637_v3 = vadd.f32 %v3605_v20, %v3515_v23  ;;  %v3518_v7 = vadd.f32 %v5712_v62, %v3517_v31 }
 0x2c0   : > { %3671 = vst.msk [vmem:[%s5724_s11 + $0x70] sm:$0xff] %vm520_vm1, %v3639_v36  ;;  %v3640_v57 = vadd.f32 %v3608_v0, %v3526_v37  ;;  %v3976_v37 = vld [vmem:[%s4045_s8 + $0x70] sm:$0xff]  }
 0x2c1   : > { %3669 = vst.msk [vmem:[%s5724_s11 + $0x60] sm:$0xff] %vm520_vm1, %v3637_v3  ;;  %v3638_v35 = vadd.f32 %v3606_v42, %v3518_v7  ;;  %v3623_v42 = vunpack.c.l.bf16 %v3975_v48  ;;  %v3621_v31 = vunpack.c.l.bf16 %v3976_v37 }
 0x2c2   : > { %3672 = vst.msk [vmem:[%s5724_s11 + $0x78] sm:$0xff] %vm520_vm1, %v3640_v57  ;;  %v3624_v57 = vunpack.c.h.bf16 %v3975_v48 }
 0x2c3   : > { %3670 = vst.msk [vmem:[%s5724_s11 + $0x68] sm:$0xff] %vm520_vm1, %v3638_v35 }
 0x2ee   : > { %v3901_v5 = vpop.f32.mrb[16].mxu1 }
 0x2ef   : > { %v3539_v39 = vadd.f32 %v3901_v5, %v5712_v62  ;;  %v3530_v43 = vpop.f32.mrb[17].mxu1 }
 0x2f0   : > { %v3531_v61 = vadd.f32 %v5712_v62, %v3530_v43  ;;  %v3902_v33 = vpop.f32.mrb[18].mxu1 }
 0x2f1   : > { %v3643_v60 = vadd.f32 %v3611_v10, %v3539_v39  ;;  %v3542_v22 = vadd.f32 %v3902_v33, %v5712_v62  ;;  %v3533_v1 = vpop.f32.mrb[19].mxu1  ;;  %v3622_v10 = vunpack.c.h.bf16 %v3976_v37 }
 0x2f2   : > { %v3641_v8 = vadd.f32 %v3609_v44, %v3531_v61  ;;  %v3534_v6 = vadd.f32 %v5712_v62, %v3533_v1 }
 0x2f3   : > { %3675 = vst.msk [vmem:[%s5724_s11 + $0x90] sm:$0xff] %vm520_vm1, %v3643_v60  ;;  %v3644_v14 = vadd.f32 %v3612_v59, %v3542_v22 }
 0x2f4   : > { %3673 = vst.msk [vmem:[%s5724_s11 + $0x80] sm:$0xff] %vm520_vm1, %v3641_v8  ;;  %v3642_v38 = vadd.f32 %v3610_v53, %v3534_v6 }
 0x2f5   : > { %3676 = vst.msk [vmem:[%s5724_s11 + $0x98] sm:$0xff] %vm520_vm1, %v3644_v14 }
 0x2f6   : > { %3674 = vst.msk [vmem:[%s5724_s11 + $0x88] sm:$0xff] %vm520_vm1, %v3642_v38 }
 0x321   : > { %v3905_v32 = vpop.f32.mrb[20].mxu1 }
 0x322   : > { %v3555_v63 = vadd.f32 %v3905_v32, %v5712_v62  ;;  %v3546_v45 = vpop.f32.mrb[21].mxu1 }
 0x323   : > { %v3547_v19 = vadd.f32 %v5712_v62, %v3546_v45  ;;  %v3906_v27 = vpop.f32.mrb[22].mxu1 }
 0x324   : > { %v3647_v49 = vadd.f32 %v3615_v30, %v3555_v63  ;;  %v3558_v56 = vadd.f32 %v3906_v27, %v5712_v62  ;;  %v3549_v15 = vpop.f32.mrb[23].mxu1 }
 0x325   : > { %v3645_v50 = vadd.f32 %v3613_v12, %v3547_v19  ;;  %v3550_v58 = vadd.f32 %v5712_v62, %v3549_v15 }
 0x326   : > { %3679 = vst.msk [vmem:[%s5724_s11 + $0xb0] sm:$0xff] %vm520_vm1, %v3647_v49  ;;  %v3648_v17 = vadd.f32 %v3616_v46, %v3558_v56 }
 0x327   : > { %3677 = vst.msk [vmem:[%s5724_s11 + $0xa0] sm:$0xff] %vm520_vm1, %v3645_v50  ;;  %v3646_v18 = vadd.f32 %v3614_v26, %v3550_v58 }
 0x328   : > { %3680 = vst.msk [vmem:[%s5724_s11 + $0xb8] sm:$0xff] %vm520_vm1, %v3648_v17 }
 0x329   : > { %3678 = vst.msk [vmem:[%s5724_s11 + $0xa8] sm:$0xff] %vm520_vm1, %v3646_v18 }
 0x354   : > { %v3909_v9 = vpop.f32.mrb[24].mxu1 }
 0x355   : > { %v3571_v34 = vadd.f32 %v3909_v9, %v5712_v62  ;;  %v3562_v51 = vpop.f32.mrb[25].mxu1 }
 0x356   : > { %v3563_v47 = vadd.f32 %v5712_v62, %v3562_v51  ;;  %v3910_v54 = vpop.f32.mrb[26].mxu1 }
 0x357   : > { %v3651_v29 = vadd.f32 %v3619_v28, %v3571_v34  ;;  %v3574_v24 = vadd.f32 %v3910_v54, %v5712_v62  ;;  %v3565_v20 = vpop.f32.mrb[27].mxu1 }
 0x358   : > { %v3649_v16 = vadd.f32 %v3617_v2, %v3563_v47  ;;  %v3566_v25 = vadd.f32 %v5712_v62, %v3565_v20 }
 0x359   : > { %3683 = vst.msk [vmem:[%s5724_s11 + $0xd0] sm:$0xff] %vm520_vm1, %v3651_v29  ;;  %v3652_v0 = vadd.f32 %v3620_v41, %v3574_v24 }
 0x35a   : > { %3681 = vst.msk [vmem:[%s5724_s11 + $0xc0] sm:$0xff] %vm520_vm1, %v3649_v16  ;;  %v3650_v23 = vadd.f32 %v3618_v13, %v3566_v25 }
 0x35b   : > { %3684 = vst.msk [vmem:[%s5724_s11 + $0xd8] sm:$0xff] %vm520_vm1, %v3652_v0 }
 0x35c   : > { %3682 = vst.msk [vmem:[%s5724_s11 + $0xc8] sm:$0xff] %vm520_vm1, %v3650_v23 }
 0x388   : > { %v3913_v36 = vpop.f32.mrb[28].mxu1 }
 0x389   : > { %v3587_v3 = vadd.f32 %v3913_v36, %v5712_v62  ;;  %v3578_v7 = vpop.f32.mrb[29].mxu1 }
 0x38a   : > { %v3579_v35 = vadd.f32 %v5712_v62, %v3578_v7  ;;  %v3914_v4 = vpop.f32.mrb[30].mxu1 }
 0x38b   : > { %v3655_v5 = vadd.f32 %v3623_v42, %v3587_v3  ;;  %v3590_v21 = vadd.f32 %v3914_v4, %v5712_v62  ;;  %v3581_v44 = vpop.f32.mrb[31].mxu1 }
 0x38c   : > { %v3653_v39 = vadd.f32 %v3621_v31, %v3579_v35  ;;  %v3582_v43 = vadd.f32 %v5712_v62, %v3581_v44 }
 0x38d   : > { %3687 = vst.msk [vmem:[%s5724_s11 + $0xf0] sm:$0xff] %vm520_vm1, %v3655_v5  ;;  %v3656_v59 = vadd.f32 %v3624_v57, %v3590_v21 }
 0x38e   : > { %3685 = vst.msk [vmem:[%s5724_s11 + $0xe0] sm:$0xff] %vm520_vm1, %v3653_v39  ;;  %v3654_v61 = vadd.f32 %v3622_v10, %v3582_v43 }
 0x38f   : > { %3688 = vst.msk [vmem:[%s5724_s11 + $0xf8] sm:$0xff] %vm520_vm1, %v3656_v59 }
 0x390   : > { %3686 = vst.msk [vmem:[%s5724_s11 + $0xe8] sm:$0xff] %vm520_vm1, %v3654_v61 }
 0x391 PF: > { %s17_s24 = sadd.s32 1, %s3983_s24  }
 0x392   : > { %p14_p4 = scmp.ge.s32.totalorder %s17_s24, 4  }
 0x394   :  { %16 = sbr.rel (!%p14_p4) target bundleno = 1 (0x1), region = 80 }

</bundles_post_ra>
